<compile_context>
chip_gen: v6e
topology: v6e:2x2x1
jax: 0.10.0
libtpu: 0.0.40
codegen_flags: <defaults>
</compile_context>

<pallas_src>
import functools

import jax
import jax.numpy as jnp
from jax import lax
from jax.experimental import pallas as pl
from jax.experimental.pallas import tpu as pltpu


# ----------------------------- fused Pallas kernel -------------------------- #

def _fused_kernel(*refs, stride, expansion, identity, th, wout, hidden):
    """One (batch, row-tile) step: 1x1 expand -> 3x3 depthwise -> 1x1 project."""
    if expansion != 1:
        x_ref, we_ref, b1_ref, wdw_ref, b2_ref, wpj_ref, b3_ref, o_ref = refs
    else:
        x_ref, wdw_ref, b2_ref, wpj_ref, b3_ref, o_ref = refs

    t = pl.program_id(1)
    th_in = (th - 1) * stride + 3                        # rows incl. 3x3 halo
    row0 = pl.multiple_of(t * th * stride, th * stride)  # start row in padded img

    # The x block is the whole padded image of one batch element; it stays
    # resident in VMEM across all row tiles of that image (index_map const in t),
    # so the halo rows are obtained by an in-VMEM slice (recompute-halo).
    x_tile = x_ref[0, pl.ds(row0, th_in), :, :]          # (th_in, Wp, Cin) f32
    wp_pad = x_tile.shape[1]
    cin = x_tile.shape[2]

    # --- 1x1 expand conv (BN scale folded into weights) + bias + ReLU6 ---------
    if expansion != 1:
        xf = x_tile.reshape(th_in * wp_pad, cin)
        h = jnp.dot(xf.astype(jnp.bfloat16), we_ref[...],
                    preferred_element_type=jnp.float32)
        h = jnp.clip(h + b1_ref[...], 0.0, 6.0)
        h3 = h.reshape(th_in, wp_pad, hidden)            # f32, VMEM-resident only
    else:
        h3 = x_tile.astype(jnp.float32)

    # --- 3x3 depthwise conv: full-rate accumulate, single decimation -----------
    rfull = (th - 1) * stride + 1
    cfull = (wout - 1) * stride + 1
    wdw = wdw_ref[...]                                   # (3, 3, hidden) f32 (scale folded)
    acc = jnp.zeros((rfull, cfull, hidden), jnp.float32)
    for kh in range(3):
        for kw in range(3):
            acc = acc + h3[kh:kh + rfull, kw:kw + cfull, :] * wdw[kh, kw, :][None, None, :]
    if stride > 1:
        acc = lax.slice(acc, (0, 0, 0), (rfull, cfull, hidden), (stride, stride, 1))
    y = jnp.clip(acc + b2_ref[...], 0.0, 6.0)            # (th, wout, hidden) f32

    # --- 1x1 projection conv + bias (+ residual), f32 epilogue -----------------
    yf = y.reshape(th * wout, hidden)
    out = jnp.dot(yf.astype(jnp.bfloat16), wpj_ref[...],
                  preferred_element_type=jnp.float32)
    out = out + b3_ref[...]
    if identity:
        res = x_tile[1:1 + th, 1:1 + wout, :]            # center pixels (stride==1)
        out = out + res.reshape(th * wout, cin)          # residual add in f32
    o_ref[0] = out.reshape(th, wout, out.shape[-1]).astype(o_ref.dtype)


# ------------------------------ wrapper ------------------------------------- #

def _pick_row_tile(hout, wout, max_pixels=1024):
    """Largest divisor of hout with th*wout <= max_pixels; prefer >= 2 row tiles."""
    divs = [d for d in range(1, hout + 1) if hout % d == 0]
    fits = [d for d in divs if d * wout <= max_pixels] or [1]
    th = max(fits)
    if th == hout and hout > 1:
        smaller = [d for d in fits if d < hout]
        if smaller:
            th = max(smaller)        # keep >N grid steps for pipelining / 2 TCs
    return th


def inverted_residual_forward(x_nchw, prep, *, stride, expansion, in_c, out_c):
    identity = (stride == 1) and (in_c == out_c)
    n, _, h, w = x_nchw.shape
    hidden = prep["wdw"].shape[-1]

    hout = (h + 2 - 3) // stride + 1
    wout = (w + 2 - 3) // stride + 1
    th = _pick_row_tile(hout, wout)
    num_tiles = hout // th

    # NCHW -> NHWC + 1px halo pad: one XLA pass over the small Cin-channel input.
    # TODO(synk): an NHWC end-to-end model would remove this boundary transpose.
    xp = jnp.pad(jnp.transpose(x_nchw, (0, 2, 3, 1)), ((0, 0), (1, 1), (1, 1), (0, 0)))
    hp, wpd = h + 2, w + 2

    kern = functools.partial(_fused_kernel, stride=stride, expansion=expansion,
                             identity=identity, th=th, wout=wout, hidden=hidden)

    def full(shape):
        return pl.BlockSpec(shape, lambda b, t: (0,) * len(shape))

    x_spec = pl.BlockSpec((1, hp, wpd, in_c), lambda b, t: (b, 0, 0, 0))
    in_specs = [x_spec]
    args = [xp]
    if expansion != 1:
        in_specs += [full((in_c, hidden)), full((1, hidden))]
        args += [prep["we"], prep["b1"].reshape(1, hidden)]
    in_specs += [full((3, 3, hidden)), full((1, 1, hidden)),
                 full((hidden, out_c)), full((1, out_c))]
    args += [prep["wdw"], prep["b2"].reshape(1, 1, hidden),
             prep["wpj"], prep["b3"].reshape(1, out_c)]

    out_nhwc = pl.pallas_call(
        kern,
        out_shape=jax.ShapeDtypeStruct((n, hout, wout, out_c), x_nchw.dtype),
        grid=(n, num_tiles),
        in_specs=in_specs,
        out_specs=pl.BlockSpec((1, th, wout, out_c), lambda b, t: (b, t, 0, 0)),
        compiler_params=pltpu.CompilerParams(
            dimension_semantics=("parallel", "parallel"),
            vmem_limit_bytes=32 * 1024 * 1024),
    )(*args)

    # NHWC -> NCHW to match the PyTorch module interface (small Cout tensor).
    return jnp.transpose(out_nhwc, (0, 3, 1, 2))


# ------------------------------ parameters ---------------------------------- #

def _bn_params(c, idx):
    """Deterministic eval-mode BN params (gamma, beta, running_mean, running_var)."""
    i = jnp.arange(c, dtype=jnp.float32)
    gamma = 1.0 + 0.02 * i + 0.01 * idx
    beta = 0.01 * i - 0.005 * idx
    mean = 0.005 * i
    var = 1.0 + 0.03 * i
    return gamma, beta, mean, var


def _fold_bn(gamma, beta, mean, var, eps=1e-5):
    scale = gamma / jnp.sqrt(var + eps)
    return scale, beta - mean * scale


def make_params(key, in_c, out_c, expansion):
    hidden = round(expansion * in_c)
    k1, k2, k3 = jax.random.split(key, 3)
    params = {}
    if expansion != 1:
        params["w_expand"] = 0.1 * jax.random.normal(k1, (in_c, hidden), jnp.float32)
        params["bn1"] = _bn_params(hidden, 1)
    params["w_dw"] = 0.1 * jax.random.normal(k2, (3, 3, hidden), jnp.float32)
    params["bn2"] = _bn_params(hidden, 2)
    params["w_proj"] = 0.1 * jax.random.normal(k3, (hidden, out_c), jnp.float32)
    params["bn3"] = _bn_params(out_c, 3)
    return params


def prepare_params(params, *, expansion):
    """Fold eval-mode BN scale into conv weights; cast MXU weights to bf16."""
    prep = {}
    if expansion != 1:
        s1, b1 = _fold_bn(*params["bn1"])
        prep["we"] = (params["w_expand"] * s1[None, :]).astype(jnp.bfloat16)
        prep["b1"] = b1.astype(jnp.float32)
    s2, b2 = _fold_bn(*params["bn2"])
    prep["wdw"] = (params["w_dw"] * s2[None, None, :]).astype(jnp.float32)
    prep["b2"] = b2.astype(jnp.float32)
    s3, b3 = _fold_bn(*params["bn3"])
    prep["wpj"] = (params["w_proj"] * s3[None, :]).astype(jnp.bfloat16)
    prep["b3"] = b3.astype(jnp.float32)
    return prep


# ------------------------------ pure-JAX reference --------------------------- #

def reference_forward(x_nchw, prep, *, stride, expansion, identity):
    """Independent lax.conv / einsum reference using the same folded bf16 weights."""
    x = jnp.transpose(x_nchw, (0, 2, 3, 1)).astype(jnp.float32)
    hi = lax.Precision.HIGHEST
    if expansion != 1:
        we = prep["we"].astype(jnp.float32)
        h = jnp.einsum("nhwc,cd->nhwd", x.astype(jnp.bfloat16).astype(jnp.float32),
                       we, precision=hi)
        h = jnp.clip(h + prep["b1"], 0.0, 6.0)
    else:
        h = x
    c = h.shape[-1]
    d = lax.conv_general_dilated(
        h, prep["wdw"].reshape(3, 3, 1, c), (stride, stride), ((1, 1), (1, 1)),
        dimension_numbers=("NHWC", "HWIO", "NHWC"),
        feature_group_count=c, precision=hi)
    d = jnp.clip(d + prep["b2"], 0.0, 6.0)
    wpj = prep["wpj"].astype(jnp.float32)
    y = jnp.einsum("nhwc,cd->nhwd", d.astype(jnp.bfloat16).astype(jnp.float32),
                   wpj, precision=hi) + prep["b3"]
    if identity:
        y = y + x
    return jnp.transpose(y, (0, 3, 1, 2))


# --------------------------------- main -------------------------------------- #

if __name__ == "__main__":
    in_c, out_c, stride, expansion = 4, 4, 1, 6      # exercises the residual branch
    n, h, w = 2, 16, 16

    key = jax.random.PRNGKey(0)
    kx, kp = jax.random.split(key)
    x = jax.random.normal(kx, (n, in_c, h, w), jnp.float32)
    params = make_params(kp, in_c, out_c, expansion)
    prep = prepare_params(params, expansion=expansion)

    fwd = jax.jit(functools.partial(inverted_residual_forward, stride=stride,
                                    expansion=expansion, in_c=in_c, out_c=out_c))
    out = fwd(x, prep)
    jax.block_until_ready(out)

    hout = (h + 2 - 3) // stride + 1
    wout = (w + 2 - 3) // stride + 1
    assert out.shape == (n, out_c, hout, wout)

    identity = (stride == 1) and (in_c == out_c)
    ref = reference_forward(x, prep, stride=stride, expansion=expansion,
                            identity=identity)
    err = float(jnp.max(jnp.abs(out - ref)))
    assert err < 2e-2, f"max abs error vs reference: {err}"
    print("KERNEL_OK")
</pallas_src>

<mosaic_0001>
module attributes {stable_mosaic.version = 11 : i64} {
  func.func @_fused_kernel(%arg0: i32, %arg1: i32, %arg2: memref<1x18x18x4xf32, #tpu.memory_space<vmem>>, %arg3: memref<4x24xbf16, #tpu.memory_space<vmem>>, %arg4: memref<1x24xf32, #tpu.memory_space<vmem>>, %arg5: memref<3x3x24xf32, #tpu.memory_space<vmem>>, %arg6: memref<1x1x24xf32, #tpu.memory_space<vmem>>, %arg7: memref<24x4xbf16, #tpu.memory_space<vmem>>, %arg8: memref<1x4xf32, #tpu.memory_space<vmem>>, %arg9: memref<1x8x16x4xf32, #tpu.memory_space<vmem>>) attributes {dimension_semantics = [#tpu.dimension_semantics<parallel>, #tpu.dimension_semantics<parallel>], iteration_bounds = array<i64: 2, 2>, scalar_prefetch = 0 : i64, scratch_operands = 0 : i64, tpu.core_type = #tpu.core_type<tc>, window_params = [{transform_indices = @transform_0, window_bounds = array<i64: 1, 18, 18, 4>}, {pipeline_mode = #tpu.pipeline_mode<synchronous>, transform_indices = @transform_1, window_bounds = array<i64: 4, 24>}, {pipeline_mode = #tpu.pipeline_mode<synchronous>, transform_indices = @transform_2, window_bounds = array<i64: 1, 24>}, {pipeline_mode = #tpu.pipeline_mode<synchronous>, transform_indices = @transform_3, window_bounds = array<i64: 3, 3, 24>}, {pipeline_mode = #tpu.pipeline_mode<synchronous>, transform_indices = @transform_4, window_bounds = array<i64: 1, 1, 24>}, {pipeline_mode = #tpu.pipeline_mode<synchronous>, transform_indices = @transform_5, window_bounds = array<i64: 24, 4>}, {pipeline_mode = #tpu.pipeline_mode<synchronous>, transform_indices = @transform_6, window_bounds = array<i64: 1, 4>}, {transform_indices = @transform_7, window_bounds = array<i64: 1, 8, 16, 4>}]} {
    %c8_i32 = arith.constant 8 : i32
    %0 = arith.muli %arg1, %c8_i32 : i32
    %c1_i32 = arith.constant 1 : i32
    %1 = arith.muli %0, %c1_i32 : i32
    %2 = tpu.assume_multiple %1, 8 : i32
    %c0 = arith.constant 0 : index
    %3 = arith.index_cast %2 : i32 to index
    %c0_0 = arith.constant 0 : index
    %c0_1 = arith.constant 0 : index
    %4 = vector.load %arg2[%c0, %3, %c0_0, %c0_1] : memref<1x18x18x4xf32, #tpu.memory_space<vmem>>, vector<1x10x18x4xf32>
    %5 = vector.shape_cast %4 : vector<1x10x18x4xf32> to vector<10x18x4xf32>
    %6 = vector.shape_cast %5 : vector<10x18x4xf32> to vector<180x4xf32>
    %7 = arith.truncf %6 : vector<180x4xf32> to vector<180x4xbf16>
    %c0_2 = arith.constant 0 : index
    %c0_3 = arith.constant 0 : index
    %8 = vector.load %arg3[%c0_2, %c0_3] : memref<4x24xbf16, #tpu.memory_space<vmem>>, vector<4x24xbf16>
    %cst = arith.constant dense<0.000000e+00> : vector<180x24xf32>
    %9 = tpu.matmul %7, %8, %cst {dimension_numbers = #tpu.dot_dimension_numbers<[1], [0], [0], [1], [0, 0, 1, 1], [], []>} : vector<180x4xbf16>, vector<4x24xbf16>, vector<180x24xf32> -> vector<180x24xf32>
    %c0_4 = arith.constant 0 : index
    %c0_5 = arith.constant 0 : index
    %10 = vector.load %arg4[%c0_4, %c0_5] : memref<1x24xf32, #tpu.memory_space<vmem>>, vector<1x24xf32>
    %11 = vector.broadcast %10 : vector<1x24xf32> to vector<180x24xf32>
    %12 = arith.addf %9, %11 : vector<180x24xf32>
    %cst_6 = arith.constant 0.000000e+00 : f32
    %cst_7 = arith.constant 6.000000e+00 : f32
    %13 = vector.broadcast %cst_6 : f32 to vector<180x24xf32>
    %14 = arith.maximumf %13, %12 : vector<180x24xf32>
    %15 = vector.broadcast %cst_7 : f32 to vector<180x24xf32>
    %16 = arith.minimumf %15, %14 : vector<180x24xf32>
    %17 = vector.shape_cast %16 : vector<180x24xf32> to vector<10x18x24xf32>
    %c0_8 = arith.constant 0 : index
    %c0_9 = arith.constant 0 : index
    %c0_10 = arith.constant 0 : index
    %18 = vector.load %arg5[%c0_8, %c0_9, %c0_10] : memref<3x3x24xf32, #tpu.memory_space<vmem>>, vector<3x3x24xf32>
    %cst_11 = arith.constant 0.000000e+00 : f32
    %19 = vector.broadcast %cst_11 : f32 to vector<8x16x24xf32>
    %20 = vector.extract_strided_slice %17 {offsets = [0, 0, 0], sizes = [8, 16, 24], strides = [1, 1, 1]} : vector<10x18x24xf32> to vector<8x16x24xf32>
    %21 = vector.extract_strided_slice %18 {offsets = [0, 0, 0], sizes = [1, 1, 24], strides = [1, 1, 1]} : vector<3x3x24xf32> to vector<1x1x24xf32>
    %22 = vector.shape_cast %21 : vector<1x1x24xf32> to vector<24xf32>
    %23 = vector.shape_cast %22 : vector<24xf32> to vector<1x1x24xf32>
    %24 = vector.broadcast %23 : vector<1x1x24xf32> to vector<8x16x24xf32>
    %25 = arith.mulf %20, %24 : vector<8x16x24xf32>
    %26 = arith.addf %19, %25 : vector<8x16x24xf32>
    %27 = vector.extract_strided_slice %17 {offsets = [0, 1, 0], sizes = [8, 16, 24], strides = [1, 1, 1]} : vector<10x18x24xf32> to vector<8x16x24xf32>
    %28 = vector.extract_strided_slice %18 {offsets = [0, 1, 0], sizes = [1, 1, 24], strides = [1, 1, 1]} : vector<3x3x24xf32> to vector<1x1x24xf32>
    %29 = vector.shape_cast %28 : vector<1x1x24xf32> to vector<24xf32>
    %30 = vector.shape_cast %29 : vector<24xf32> to vector<1x1x24xf32>
    %31 = vector.broadcast %30 : vector<1x1x24xf32> to vector<8x16x24xf32>
    %32 = arith.mulf %27, %31 : vector<8x16x24xf32>
    %33 = arith.addf %26, %32 : vector<8x16x24xf32>
    %34 = vector.extract_strided_slice %17 {offsets = [0, 2, 0], sizes = [8, 16, 24], strides = [1, 1, 1]} : vector<10x18x24xf32> to vector<8x16x24xf32>
    %35 = vector.extract_strided_slice %18 {offsets = [0, 2, 0], sizes = [1, 1, 24], strides = [1, 1, 1]} : vector<3x3x24xf32> to vector<1x1x24xf32>
    %36 = vector.shape_cast %35 : vector<1x1x24xf32> to vector<24xf32>
    %37 = vector.shape_cast %36 : vector<24xf32> to vector<1x1x24xf32>
    %38 = vector.broadcast %37 : vector<1x1x24xf32> to vector<8x16x24xf32>
    %39 = arith.mulf %34, %38 : vector<8x16x24xf32>
    %40 = arith.addf %33, %39 : vector<8x16x24xf32>
    %41 = vector.extract_strided_slice %17 {offsets = [1, 0, 0], sizes = [8, 16, 24], strides = [1, 1, 1]} : vector<10x18x24xf32> to vector<8x16x24xf32>
    %42 = vector.extract_strided_slice %18 {offsets = [1, 0, 0], sizes = [1, 1, 24], strides = [1, 1, 1]} : vector<3x3x24xf32> to vector<1x1x24xf32>
    %43 = vector.shape_cast %42 : vector<1x1x24xf32> to vector<24xf32>
    %44 = vector.shape_cast %43 : vector<24xf32> to vector<1x1x24xf32>
    %45 = vector.broadcast %44 : vector<1x1x24xf32> to vector<8x16x24xf32>
    %46 = arith.mulf %41, %45 : vector<8x16x24xf32>
    %47 = arith.addf %40, %46 : vector<8x16x24xf32>
    %48 = vector.extract_strided_slice %17 {offsets = [1, 1, 0], sizes = [8, 16, 24], strides = [1, 1, 1]} : vector<10x18x24xf32> to vector<8x16x24xf32>
    %49 = vector.extract_strided_slice %18 {offsets = [1, 1, 0], sizes = [1, 1, 24], strides = [1, 1, 1]} : vector<3x3x24xf32> to vector<1x1x24xf32>
    %50 = vector.shape_cast %49 : vector<1x1x24xf32> to vector<24xf32>
    %51 = vector.shape_cast %50 : vector<24xf32> to vector<1x1x24xf32>
    %52 = vector.broadcast %51 : vector<1x1x24xf32> to vector<8x16x24xf32>
    %53 = arith.mulf %48, %52 : vector<8x16x24xf32>
    %54 = arith.addf %47, %53 : vector<8x16x24xf32>
    %55 = vector.extract_strided_slice %17 {offsets = [1, 2, 0], sizes = [8, 16, 24], strides = [1, 1, 1]} : vector<10x18x24xf32> to vector<8x16x24xf32>
    %56 = vector.extract_strided_slice %18 {offsets = [1, 2, 0], sizes = [1, 1, 24], strides = [1, 1, 1]} : vector<3x3x24xf32> to vector<1x1x24xf32>
    %57 = vector.shape_cast %56 : vector<1x1x24xf32> to vector<24xf32>
    %58 = vector.shape_cast %57 : vector<24xf32> to vector<1x1x24xf32>
    %59 = vector.broadcast %58 : vector<1x1x24xf32> to vector<8x16x24xf32>
    %60 = arith.mulf %55, %59 : vector<8x16x24xf32>
    %61 = arith.addf %54, %60 : vector<8x16x24xf32>
    %62 = vector.extract_strided_slice %17 {offsets = [2, 0, 0], sizes = [8, 16, 24], strides = [1, 1, 1]} : vector<10x18x24xf32> to vector<8x16x24xf32>
    %63 = vector.extract_strided_slice %18 {offsets = [2, 0, 0], sizes = [1, 1, 24], strides = [1, 1, 1]} : vector<3x3x24xf32> to vector<1x1x24xf32>
    %64 = vector.shape_cast %63 : vector<1x1x24xf32> to vector<24xf32>
    %65 = vector.shape_cast %64 : vector<24xf32> to vector<1x1x24xf32>
    %66 = vector.broadcast %65 : vector<1x1x24xf32> to vector<8x16x24xf32>
    %67 = arith.mulf %62, %66 : vector<8x16x24xf32>
    %68 = arith.addf %61, %67 : vector<8x16x24xf32>
    %69 = vector.extract_strided_slice %17 {offsets = [2, 1, 0], sizes = [8, 16, 24], strides = [1, 1, 1]} : vector<10x18x24xf32> to vector<8x16x24xf32>
    %70 = vector.extract_strided_slice %18 {offsets = [2, 1, 0], sizes = [1, 1, 24], strides = [1, 1, 1]} : vector<3x3x24xf32> to vector<1x1x24xf32>
    %71 = vector.shape_cast %70 : vector<1x1x24xf32> to vector<24xf32>
    %72 = vector.shape_cast %71 : vector<24xf32> to vector<1x1x24xf32>
    %73 = vector.broadcast %72 : vector<1x1x24xf32> to vector<8x16x24xf32>
    %74 = arith.mulf %69, %73 : vector<8x16x24xf32>
    %75 = arith.addf %68, %74 : vector<8x16x24xf32>
    %76 = vector.extract_strided_slice %17 {offsets = [2, 2, 0], sizes = [8, 16, 24], strides = [1, 1, 1]} : vector<10x18x24xf32> to vector<8x16x24xf32>
    %77 = vector.extract_strided_slice %18 {offsets = [2, 2, 0], sizes = [1, 1, 24], strides = [1, 1, 1]} : vector<3x3x24xf32> to vector<1x1x24xf32>
    %78 = vector.shape_cast %77 : vector<1x1x24xf32> to vector<24xf32>
    %79 = vector.shape_cast %78 : vector<24xf32> to vector<1x1x24xf32>
    %80 = vector.broadcast %79 : vector<1x1x24xf32> to vector<8x16x24xf32>
    %81 = arith.mulf %76, %80 : vector<8x16x24xf32>
    %82 = arith.addf %75, %81 : vector<8x16x24xf32>
    %c0_12 = arith.constant 0 : index
    %c0_13 = arith.constant 0 : index
    %c0_14 = arith.constant 0 : index
    %83 = vector.load %arg6[%c0_12, %c0_13, %c0_14] : memref<1x1x24xf32, #tpu.memory_space<vmem>>, vector<1x1x24xf32>
    %84 = vector.broadcast %83 : vector<1x1x24xf32> to vector<8x16x24xf32>
    %85 = arith.addf %82, %84 : vector<8x16x24xf32>
    %cst_15 = arith.constant 0.000000e+00 : f32
    %cst_16 = arith.constant 6.000000e+00 : f32
    %86 = vector.broadcast %cst_15 : f32 to vector<8x16x24xf32>
    %87 = arith.maximumf %86, %85 : vector<8x16x24xf32>
    %88 = vector.broadcast %cst_16 : f32 to vector<8x16x24xf32>
    %89 = arith.minimumf %88, %87 : vector<8x16x24xf32>
    %90 = vector.shape_cast %89 : vector<8x16x24xf32> to vector<128x24xf32>
    %91 = arith.truncf %90 : vector<128x24xf32> to vector<128x24xbf16>
    %c0_17 = arith.constant 0 : index
    %c0_18 = arith.constant 0 : index
    %92 = vector.load %arg7[%c0_17, %c0_18] : memref<24x4xbf16, #tpu.memory_space<vmem>>, vector<24x4xbf16>
    %cst_19 = arith.constant dense<0.000000e+00> : vector<128x4xf32>
    %93 = tpu.matmul %91, %92, %cst_19 {dimension_numbers = #tpu.dot_dimension_numbers<[1], [0], [0], [1], [0, 0, 1, 1], [], []>} : vector<128x24xbf16>, vector<24x4xbf16>, vector<128x4xf32> -> vector<128x4xf32>
    %c0_20 = arith.constant 0 : index
    %c0_21 = arith.constant 0 : index
    %94 = vector.load %arg8[%c0_20, %c0_21] : memref<1x4xf32, #tpu.memory_space<vmem>>, vector<1x4xf32>
    %95 = vector.broadcast %94 : vector<1x4xf32> to vector<128x4xf32>
    %96 = arith.addf %93, %95 : vector<128x4xf32>
    %97 = vector.extract_strided_slice %5 {offsets = [1, 1, 0], sizes = [8, 16, 4], strides = [1, 1, 1]} : vector<10x18x4xf32> to vector<8x16x4xf32>
    %98 = vector.shape_cast %97 : vector<8x16x4xf32> to vector<128x4xf32>
    %99 = arith.addf %96, %98 : vector<128x4xf32>
    %100 = vector.shape_cast %99 : vector<128x4xf32> to vector<8x16x4xf32>
    %c0_22 = arith.constant 0 : index
    %c0_23 = arith.constant 0 : index
    %c0_24 = arith.constant 0 : index
    %c0_25 = arith.constant 0 : index
    %101 = vector.load %arg9[%c0_22, %c0_23, %c0_24, %c0_25] : memref<1x8x16x4xf32, #tpu.memory_space<vmem>>, vector<1x8x16x4xf32>
    %102 = vector.shape_cast %101 : vector<1x8x16x4xf32> to vector<8x16x4xf32>
    %103 = vector.shape_cast %100 : vector<8x16x4xf32> to vector<1x8x16x4xf32>
    tpu.vector_store %arg9[%c0_22, %c0_23, %c0_24, %c0_25], %103 {strides = array<i32>} : memref<1x8x16x4xf32, #tpu.memory_space<vmem>>, vector<1x8x16x4xf32>,
    return
  }
  func.func @transform_0(%arg0: i32, %arg1: i32) -> (i32, i32, i32, i32) {
    %c0_i32 = arith.constant 0 : i32
    %c0_i32_0 = arith.constant 0 : i32
    %c0_i32_1 = arith.constant 0 : i32
    %c0_i32_2 = arith.constant 0 : i32
    return %arg0, %c0_i32, %c0_i32_0, %c0_i32_1 : i32, i32, i32, i32
  }
  func.func @transform_1(%arg0: i32, %arg1: i32) -> (i32, i32) {
    %c0_i32 = arith.constant 0 : i32
    %c0_i32_0 = arith.constant 0 : i32
    %c0_i32_1 = arith.constant 0 : i32
    return %c0_i32, %c0_i32_0 : i32, i32
  }
  func.func @transform_2(%arg0: i32, %arg1: i32) -> (i32, i32) {
    %c0_i32 = arith.constant 0 : i32
    %c0_i32_0 = arith.constant 0 : i32
    %c0_i32_1 = arith.constant 0 : i32
    return %c0_i32, %c0_i32_0 : i32, i32
  }
  func.func @transform_3(%arg0: i32, %arg1: i32) -> (i32, i32, i32) {
    %c0_i32 = arith.constant 0 : i32
    %c0_i32_0 = arith.constant 0 : i32
    %c0_i32_1 = arith.constant 0 : i32
    %c0_i32_2 = arith.constant 0 : i32
    return %c0_i32, %c0_i32_0, %c0_i32_1 : i32, i32, i32
  }
  func.func @transform_4(%arg0: i32, %arg1: i32) -> (i32, i32, i32) {
    %c0_i32 = arith.constant 0 : i32
    %c0_i32_0 = arith.constant 0 : i32
    %c0_i32_1 = arith.constant 0 : i32
    %c0_i32_2 = arith.constant 0 : i32
    return %c0_i32, %c0_i32_0, %c0_i32_1 : i32, i32, i32
  }
  func.func @transform_5(%arg0: i32, %arg1: i32) -> (i32, i32) {
    %c0_i32 = arith.constant 0 : i32
    %c0_i32_0 = arith.constant 0 : i32
    %c0_i32_1 = arith.constant 0 : i32
    return %c0_i32, %c0_i32_0 : i32, i32
  }
  func.func @transform_6(%arg0: i32, %arg1: i32) -> (i32, i32) {
    %c0_i32 = arith.constant 0 : i32
    %c0_i32_0 = arith.constant 0 : i32
    %c0_i32_1 = arith.constant 0 : i32
    return %c0_i32, %c0_i32_0 : i32, i32
  }
  func.func @transform_7(%arg0: i32, %arg1: i32) -> (i32, i32, i32, i32) {
    %c0_i32 = arith.constant 0 : i32
    %c0_i32_0 = arith.constant 0 : i32
    %c0_i32_1 = arith.constant 0 : i32
    return %arg0, %arg1, %c0_i32, %c0_i32_0 : i32, i32, i32, i32
  }
}

</mosaic_0001>

<bundles_post_ra>
// kernel: inverted_residual_forward.1
= control target key start
LH: loop header
LB: loop body
LE: loop exit
PB: predicated region body
PF: predicated region fallthrough
CT: control target
= control target key end

     0   :  { %s5606_s24 = smov 0   ;;  %s5608_s25 = smov 0   ;;  %s8443_s0 = inlined_call_operand.vmem [shape: f32[2,18,18,4], index: 0, kind: input, shape index: {}]   ;;  %s8444_s1 = inlined_call_operand.vmem [shape: bf16[4,24], index: 1, kind: input, shape index: {}]   ;;  %s8445_s2 = inlined_call_operand.vmem [shape: f32[1,24], index: 2, kind: input, shape index: {}]   ;;  %s8446_s3 = inlined_call_operand.vmem [shape: f32[3,3,24], index: 3, kind: input, shape index: {}]   ;;  %s8447_s4 = inlined_call_operand.vmem [shape: f32[1,1,24], index: 4, kind: input, shape index: {}]   ;;  %s8448_s5 = inlined_call_operand.vmem [shape: bf16[24,4], index: 5, kind: input, shape index: {}]   ;;  %s8449_s6 = inlined_call_operand.vmem [shape: f32[1,4], index: 6, kind: input, shape index: {}]   ;;  %s8450_s7 = inlined_call_operand.vmem [shape: f32[2,16,16,4], index: 7, kind: output, shape index: {}]  }
   0x1   :  { %s5610_s26 = smov 0   ;;  %s5612_s27 = smov 0  }
   0x2   :  { %s5614_s28 = smov 0  }
   0x3 LB: > { %s26_s29 = sadd.s32 1, %s5555_s26  ;;  %s29_s30 = sadd.s32 1, %s5559_s27  ;;  %s5563_s28 = sphi %s5614_s28, %s17_s28   ;;  %s5559_s27 = sphi %s5612_s27, %s9336_s27   ;;  %s5555_s26 = sphi %s5610_s26, %s9335_s26   ;;  %s5551_s25 = sphi %s5608_s25, %s9334_s25   ;;  %s5547_s24 = sphi %s5606_s24, %s9333_s24  }
   0x4   : > { %p27_p0 = scmp.ge.s32.totalorder %s26_s29, 2  ;;  %p5292_p1 = scmp.ge.s32.totalorder %s5563_s28, 1 }
   0x5   : > { %p251_p2 = scmp.lt.s32.totalorder %s5563_s28, 5 }
   0x6   : > { %s9338_s29 = smov (%p27_p0, %s26_s29), 0  ;;  %s9340_s30 = smov (!%p27_p0, %s29_s30), %s5559_s27 }
   0x7   : > { %p252_p3 = pnand %p5292_p1, %p251_p2  ;;  %p31_p4 = scmp.ge.s32.totalorder %s9340_s30, 2 }
   0x9   : > { %s9342_s30 = smov (%p31_p4, %s9340_s30), 0  ;;  %255 = sbr.rel (%p252_p3) target bundleno = 996 (0x3e4), region = 48 }
   0xe   : > { %v1195_v0 = vld [vmem:[%s8444_s1] sm:$0x3]  ;;  %vm1240_vm0 = vcmask 1041408   ;;  %p288_p5 = scmp.lt.s32.totalorder %s5551_s25, 1  ;;  %v372_v1 = vlaneseq  ;;  %v5565_v3 = vmov 1983009808  }
   0xf   : > { %5424 = vmatprep.subr.msk.bf16.mxu0 %vm1240_vm0, %v1195_v0  ;;  %v1242_v2 = vsel %vm1240_vm0, %v1195_v0, 0  ;;  %5425 = vmatprep.subr.msk.bf16.mxu1 %vm1240_vm0, %v1195_v0  ;;  %v370_v4 = vunpack.c.l.s4 %v5565_v3  ;;  %s5299_s10 = smul.u32 192, %s5547_s24  ;;  %vm1203_vm1 = vcmask 31744   ;;  %vm2092_vm2 = vcmask 1040384   ;;  %s5294_s19 = sshll.u32 %s5547_s24, 3 }
  0x10   : > { %5377 = vmatpush3.bf16.msra.mxu0 %v1242_v2  ;;  %s9344_s25 = smov (!%p288_p5, %s5551_s25), 1  ;;  %v5643_v5 = vshrl.u32 %v372_v1, 7  ;;  %5423 = vmatpush3.bf16.msra.mxu1 %v1242_v2  ;;  %vm2093_vm3 = vcmask 1042434   ;;  %vm2095_vm5 = vcmask 1044484   ;;  %vm2097_vm7 = vcmask 1046534   ;;  %p8255_p6 = scmp.lt.s32.totalorder %s5294_s19, 15 }
  0x11   : > { %s5427_s11 = smul.u32 432, %s9344_s25  ;;  %v371_v6 = vunpack.c.0.s8 %v370_v4  ;;  %vm2094_vm4 = vmor %vm2092_vm2, %vm2093_vm3  ;;  %vm5006_vm9 = vcmask 1043456   ;;  %vm4981_vm10 = vcmask 195584   ;;  %s5296_s23 = sshll.u32 %s9344_s25, 5  ;;  %vm5107_vm11 = vcmask 1046528  }
  0x12   : > { %vm2096_vm6 = vmor %vm2094_vm4, %vm2095_vm5  ;;  %s9346_s19 = smov (!%p8255_p6, %s5294_s19), 15 }
  0x13   : > { %s292_s14 = scalar_lea.vmem %s8443_s0, %s5427_s11  ;;  %v5651_v7 = vsub.s32 %v371_v6, %v5643_v5  ;;  %vm5804_vm8 = vmor %vm2096_vm6, %vm2097_vm7  ;;  %s5295_s22 = sshll.u32 %s9346_s19, 1 }
  0x14   : > { %s5653_s15 = scalar_lea.vmem %s292_s14, %s5299_s10  ;;  %s8318_s25 = sadd.s32 %s5296_s23, %s5295_s22 }
  0x15   : > { %8777 = vst [vmem:[#allocation2_spill] sm:$0xff] %v5651_v7  ;;  %v308_v8 = vld [vmem:[%s5653_s15] sm:$0xff]  ;;  %v309_v9 = vld [vmem:[%s5653_s15 + $0x8] sm:$0xff]  ;;  %v311_v14 = vld [vmem:[%s5653_s15 + $0x18] sm:$0xff]  ;;  %s5297_s8 = sshll.u32 %s8318_s25, 3 }
  0x16   : > { %v368_v10 = vcombine.high %v308_v8, %v308_v8  ;;  %v375_v11 = vrot.slane %v308_v8, %v5651_v7  ;;  %v385_v12 = vcombine.high %v309_v9, %v309_v9  ;;  %v392_v13 = vrot.slane %v309_v9, %v5651_v7  ;;  %v312_v15 = vld [vmem:[%s5653_s15 + $0x20] sm:$0xff]  ;;  %v5300_v24 = vld.sshfl [vmem:[%s5653_s15 + $0x10] sm:$0x3 pattern:$0x76325410]  ;;  %v315_v47 = vld [vmem:[%s5653_s15 + $0x38] sm:$0xff]  ;;  %s8336_s11 = scalar_lea.vmem %s8450_s7, %s5297_s8 }
  0x17   : > { %v409_v16 = vcombine.high %v311_v14, %v311_v14  ;;  %v416_v17 = vrot.slane %v311_v14, %v5651_v7  ;;  %v426_v18 = vcombine.high %v312_v15, %v312_v15  ;;  %v433_v19 = vrot.slane %v312_v15, %v5651_v7  ;;  %v5517_v37 = vld.sshfl [vmem:[%s5653_s15 + $0x28] sm:$0x3 pattern:$0x76325410]  ;;  %v314_v42 = vld [vmem:[%s5653_s15 + $0x30] sm:$0xff] }
  0x18   : > { %v382_v20 = vrot.slane %v368_v10, %v5651_v7  ;;  %v383_v21 = vcombine.high %v375_v11, %v375_v11  ;;  %v399_v22 = vrot.slane %v385_v12, %v5651_v7  ;;  %v400_v23 = vcombine.high %v392_v13, %v392_v13  ;;  %v5518_v55 = vld.sshfl [vmem:[%s5653_s15 + $0x40] sm:$0x3 pattern:$0x76325410]  ;;  %v317_v63 = vld [vmem:[%s5653_s15 + $0x48] sm:$0xff]  ;;  %v318_v0 = vld [vmem:[%s5653_s15 + $0x50] sm:$0xff] }
  0x19   : > { %v423_v25 = vrot.slane %v409_v16, %v5651_v7  ;;  %v424_v26 = vcombine.high %v416_v17, %v416_v17  ;;  %v440_v27 = vrot.slane %v426_v18, %v5651_v7  ;;  %v441_v28 = vcombine.high %v433_v19, %v433_v19 }
  0x1a   : > { %v384_v29 = vcombine.high %v382_v20, %v382_v20  ;;  %v401_v30 = vcombine.high %v399_v22, %v399_v22  ;;  %v778_v31 = vcombine.low %v375_v11, %v383_v21  ;;  %v795_v32 = vcombine.low %v392_v13, %v400_v23  ;;  %v5519_v23 = vld.sshfl [vmem:[%s5653_s15 + $0x58] sm:$0x3 pattern:$0x76325410] }
  0x1b   : > { %v425_v33 = vcombine.high %v423_v25, %v423_v25  ;;  %v812_v34 = vcombine.low %v5300_v24, %v416_v17  ;;  %v813_v35 = vcombine.low %v424_v26, %v423_v25  ;;  %v830_v36 = vcombine.low %v441_v28, %v440_v27 }
  0x1c   : > { %v779_v38 = vcombine.low %v382_v20, %v384_v29  ;;  %v786_v39 = vrot.slane %v778_v31, %v5651_v7  ;;  %v796_v40 = vcombine.low %v399_v22, %v401_v30  ;;  %v803_v41 = vrot.slane %v795_v32, %v5651_v7 }
  0x1d   : > { %v820_v43 = vrot.slane %v812_v34, %v5651_v7  ;;  %v827_v44 = vrot.slane %v813_v35, %v5651_v7  ;;  %v829_v45 = vcombine.low %v425_v33, %v433_v19  ;;  %v844_v46 = vrot.slane %v830_v36, %v5651_v7  ;;  %v321_v36 = vld [vmem:[%s5653_s15 + $0x68] sm:$0xff] }
  0x1e   : > { %v793_v48 = vrot.slane %v779_v38, %v5651_v7  ;;  %v810_v49 = vrot.slane %v796_v40, %v5651_v7  ;;  %v442_v50 = vcombine.high %v440_v27, %v440_v27  ;;  %v450_v53 = vcombine.high %v314_v42, %v314_v42  ;;  %v320_v27 = vld [vmem:[%s5653_s15 + $0x60] sm:$0xff] }
  0x1f   : > { %v828_v51 = vcombine.low %v820_v43, %v827_v44  ;;  %v837_v52 = vrot.slane %v829_v45, %v5651_v7  ;;  %v457_v54 = vrot.slane %v314_v42, %v5651_v7  ;;  %v474_v58 = vrot.slane %v315_v47, %v5651_v7 }
  0x20   : > { %v794_v56 = vcombine.low %v786_v39, %v793_v48  ;;  %v811_v57 = vcombine.low %v803_v41, %v810_v49  ;;  %v846_v59 = vcombine.low %v442_v50, %v5517_v37  ;;  %v464_v61 = vrot.slane %v450_v53, %v5651_v7  ;;  %v5520_v41 = vld.sshfl [vmem:[%s5653_s15 + $0x70] sm:$0x3 pattern:$0x76325410]  ;;  %v323_v49 = vld [vmem:[%s5653_s15 + $0x78] sm:$0xff] }
  0x21   : > { %v845_v60 = vcombine.low %v837_v52, %v844_v46  ;;  %v465_v62 = vcombine.high %v457_v54, %v457_v54  ;;  %v467_v1 = vcombine.high %v315_v47, %v315_v47  ;;  %v482_v3 = vcombine.high %v474_v58, %v474_v58 }
  0x22   : > { %v1183_v2 = vpack.c.bf16 %v811_v57, %v794_v56  ;;  %v854_v4 = vrot.slane %v846_v59, %v5651_v7  ;;  %v466_v8 = vcombine.high %v464_v61, %v464_v61  ;;  %v491_v12 = vcombine.high %v317_v63, %v317_v63 }
  0x23   : > { %v1184_v6 = vpack.c.bf16 %v845_v60, %v828_v51  ;;  %v847_v9 = vcombine.low %v457_v54, %v465_v62  ;;  %v481_v10 = vrot.slane %v467_v1, %v5651_v7  ;;  %v864_v11 = vcombine.low %v474_v58, %v482_v3  ;;  %v324_v62 = vld [vmem:[%s5653_s15 + $0x80] sm:$0xff] }
  0x24   : > { %5378 = vmatprep.mubr.msk.bf16.mxu0 %vm1203_vm1, %v1183_v2  ;;  %v498_v13 = vrot.slane %v317_v63, %v5651_v7  ;;  %v515_v14 = vrot.slane %v318_v0, %v5651_v7  ;;  %v863_v16 = vcombine.low %v464_v61, %v466_v8  ;;  %v508_v18 = vcombine.high %v318_v0, %v318_v0 }
  0x25   : > { %5379 = vmatmul.mubr.msk.bf16.vlgmr.msra.gmra.mxu0 %vm1203_vm1, %v1184_v6  ;;  %v861_v15 = vrot.slane %v847_v9, %v5651_v7  ;;  %v483_v17 = vcombine.high %v481_v10, %v481_v10  ;;  %v878_v19 = vrot.slane %v864_v11, %v5651_v7  ;;  %v505_v20 = vrot.slane %v491_v12, %v5651_v7  ;;  %v5521_v11 = vld.sshfl [vmem:[%s5653_s15 + $0x88] sm:$0x3 pattern:$0x76325410]  ;;  %v326_v12 = vld [vmem:[%s5653_s15 + $0x90] sm:$0xff] }
  0x26   : > { %v506_v21 = vcombine.high %v498_v13, %v498_v13  ;;  %v881_v22 = vcombine.low %v5518_v55, %v498_v13  ;;  %v871_v25 = vrot.slane %v863_v16, %v5651_v7  ;;  %v522_v28 = vrot.slane %v508_v18, %v5651_v7 }
  0x27   : > { %v862_v24 = vcombine.low %v854_v4, %v861_v15  ;;  %v880_v26 = vcombine.low %v481_v10, %v483_v17  ;;  %v507_v29 = vcombine.high %v505_v20, %v505_v20  ;;  %v523_v32 = vcombine.high %v515_v14, %v515_v14 }
  0x28   : > { %v895_v30 = vrot.slane %v881_v22, %v5651_v7  ;;  %v897_v31 = vcombine.low %v506_v21, %v505_v20  ;;  %v879_v33 = vcombine.low %v871_v25, %v878_v19  ;;  %v524_v35 = vcombine.high %v522_v28, %v522_v28 }
  0x29   : > { %v888_v34 = vrot.slane %v880_v26, %v5651_v7  ;;  %v898_v37 = vcombine.low %v507_v29, %v515_v14  ;;  %v532_v39 = vcombine.high %v320_v27, %v320_v27  ;;  %v539_v40 = vrot.slane %v320_v27, %v5651_v7  ;;  %v327_v26 = vld [vmem:[%s5653_s15 + $0x98] sm:$0xff] }
  0x2a   : > { %v905_v38 = vrot.slane %v897_v31, %v5651_v7  ;;  %v1185_v42 = vpack.c.bf16 %v879_v33, %v862_v24  ;;  %v914_v44 = vcombine.low %v523_v32, %v522_v28  ;;  %v915_v45 = vcombine.low %v524_v35, %v5519_v23  ;;  %v5522_v31 = vld.sshfl [vmem:[%s5653_s15 + $0xa0] sm:$0x3 pattern:$0x76325410] }
  0x2b   : > { %v896_v43 = vcombine.low %v888_v34, %v895_v30  ;;  %v912_v46 = vrot.slane %v898_v37, %v5651_v7  ;;  %v546_v47 = vrot.slane %v532_v39, %v5651_v7  ;;  %v547_v48 = vcombine.high %v539_v40, %v539_v40 }
  0x2c   : > { %v549_v50 = vcombine.high %v321_v36, %v321_v36  ;;  %5382 = vmatprep.mubr.msk.bf16.mxu0 %vm1203_vm1, %v1185_v42  ;;  %v922_v51 = vrot.slane %v914_v44, %v5651_v7  ;;  %v929_v52 = vrot.slane %v915_v45, %v5651_v7  ;;  %v556_v53 = vrot.slane %v321_v36, %v5651_v7  ;;  %v335_v45 = vld [vmem:[%s5653_s15 + $0xd8] sm:$0xff] }
  0x2d   : > { %v913_v54 = vcombine.low %v905_v38, %v912_v46  ;;  %v548_v55 = vcombine.high %v546_v47, %v546_v47  ;;  %v931_v56 = vcombine.low %v539_v40, %v547_v48  ;;  %v573_v60 = vcombine.high %v323_v49, %v323_v49  ;;  %v329_v38 = vld [vmem:[%s5653_s15 + $0xa8] sm:$0xff] }
  0x2e   : > { %v563_v57 = vrot.slane %v549_v50, %v5651_v7  ;;  %v930_v58 = vcombine.low %v922_v51, %v929_v52  ;;  %v564_v59 = vcombine.high %v556_v53, %v556_v53  ;;  %v580_v61 = vrot.slane %v323_v49, %v5651_v7  ;;  %v336_v50 = vld [vmem:[%s5653_s15 + $0xe0] sm:$0xff] }
  0x2f   : > { %v1186_v63 = vpack.c.bf16 %v913_v54, %v896_v43  ;;  %v932_v0 = vcombine.low %v546_v47, %v548_v55  ;;  %v939_v1 = vrot.slane %v931_v56, %v5651_v7  ;;  %v587_v3 = vrot.slane %v573_v60, %v5651_v7 }
  0x30   : > { %v565_v2 = vcombine.high %v563_v57, %v563_v57  ;;  %v588_v4 = vcombine.high %v580_v61, %v580_v61  ;;  %v948_v6 = vcombine.low %v556_v53, %v564_v59  ;;  %v965_v8 = vcombine.low %v5520_v41, %v580_v61  ;;  %v5523_v41 = vld.sshfl [vmem:[%s5653_s15 + $0xd0] sm:$0x3 pattern:$0x76325410] }
  0x31   : > { %5383 = vmatmul.mubr.msk.bf16.gmra.mxu0 %vm1203_vm1, %v1186_v63  ;;  %v946_v9 = vrot.slane %v932_v0, %v5651_v7  ;;  %v590_v13 = vcombine.high %v324_v62, %v324_v62  ;;  %v597_v14 = vrot.slane %v324_v62, %v5651_v7  ;;  %v589_v18 = vcombine.high %v587_v3, %v587_v3 }
  0x32   : > { %v949_v10 = vcombine.low %v563_v57, %v565_v2  ;;  %v956_v15 = vrot.slane %v948_v6, %v5651_v7  ;;  %v966_v16 = vcombine.low %v588_v4, %v587_v3  ;;  %v973_v17 = vrot.slane %v965_v8, %v5651_v7 }
  0x33   : > { %v947_v19 = vcombine.low %v939_v1, %v946_v9  ;;  %v604_v21 = vrot.slane %v590_v13, %v5651_v7  ;;  %v605_v22 = vcombine.high %v597_v14, %v597_v14  ;;  %v621_v24 = vrot.slane %v326_v12, %v5651_v7 }
  0x34   : > { %v963_v20 = vrot.slane %v949_v10, %v5651_v7  ;;  %v980_v23 = vrot.slane %v966_v16, %v5651_v7  ;;  %v982_v25 = vcombine.low %v589_v18, %v597_v14  ;;  %v614_v35 = vcombine.high %v326_v12, %v326_v12  ;;  %v330_v16 = vld [vmem:[%s5653_s15 + $0xb0] sm:$0xff] }
  0x35   : > { %v1187_v27 = vpack.c.bf16 %v947_v19, %v930_v58  ;;  %v606_v29 = vcombine.high %v604_v21, %v604_v21  ;;  %v983_v30 = vcombine.low %v605_v22, %v604_v21  ;;  %v629_v33 = vcombine.high %v621_v24, %v621_v24 }
  0x36   : > { %v964_v28 = vcombine.low %v956_v15, %v963_v20  ;;  %v981_v32 = vcombine.low %v973_v17, %v980_v23  ;;  %v990_v34 = vrot.slane %v982_v25, %v5651_v7  ;;  %v631_v39 = vcombine.high %v327_v26, %v327_v26  ;;  %v5301_v15 = vld.sshfl [vmem:[%s5653_s15 + $0xe8] sm:$0x3 pattern:$0x76325410] }
  0x37   : > { %5386 = vmatprep.mubr.msk.bf16.mxu0 %vm1203_vm1, %v1187_v27  ;;  %v997_v36 = vrot.slane %v983_v30, %v5651_v7  ;;  %v999_v37 = vcombine.low %v606_v29, %v5521_v11  ;;  %v638_v40 = vrot.slane %v327_v26, %v5651_v7  ;;  %v1000_v43 = vcombine.low %v621_v24, %v629_v33  ;;  %v5524_v24 = vld.sshfl [vmem:[%s5653_s15 + $0xb8] sm:$0x3 pattern:$0x76325410] }
  0x38   : > { %v1188_v42 = vpack.c.bf16 %v981_v32, %v964_v28  ;;  %v628_v44 = vrot.slane %v614_v35, %v5651_v7  ;;  %v645_v48 = vrot.slane %v631_v39, %v5651_v7  ;;  %v662_v53 = vrot.slane %v329_v38, %v5651_v7 }
  0x39   : > { %v998_v46 = vcombine.low %v990_v34, %v997_v36  ;;  %v1007_v47 = vrot.slane %v999_v37, %v5651_v7  ;;  %v646_v49 = vcombine.high %v638_v40, %v638_v40  ;;  %v1014_v51 = vrot.slane %v1000_v43, %v5651_v7 }
  0x3a   : > { %5387 = vmatmul.mubr.msk.bf16.gmra.mxu0 %vm1203_vm1, %v1188_v42  ;;  %v630_v52 = vcombine.high %v628_v44, %v628_v44  ;;  %v647_v54 = vcombine.high %v645_v48, %v645_v48  ;;  %v737_v56 = vcombine.high %v335_v45, %v335_v45  ;;  %v744_v57 = vrot.slane %v335_v45, %v5651_v7  ;;  %v333_v42 = vld [vmem:[%s5653_s15 + $0xc8] sm:$0xff] }
  0x3b   : > { %v1017_v55 = vcombine.low %v638_v40, %v646_v49  ;;  %v1015_v58 = vcombine.low %v1007_v47, %v1014_v51  ;;  %v1034_v60 = vcombine.low %v5522_v31, %v662_v53  ;;  %v754_v61 = vcombine.high %v336_v50, %v336_v50  ;;  %v332_v31 = vld [vmem:[%s5653_s15 + $0xc0] sm:$0xff] }
  0x3c   : > { %v1016_v59 = vcombine.low %v628_v44, %v630_v52  ;;  %v1033_v63 = vcombine.low %v645_v48, %v647_v54  ;;  %v751_v0 = vrot.slane %v737_v56, %v5651_v7  ;;  %v752_v1 = vcombine.high %v744_v57, %v744_v57 }
  0x3d   : > { %v1031_v62 = vrot.slane %v1017_v55, %v5651_v7  ;;  %v1189_v2 = vpack.c.bf16 %v1015_v58, %v998_v46  ;;  %v1048_v4 = vrot.slane %v1034_v60, %v5651_v7  ;;  %v761_v6 = vrot.slane %v336_v50, %v5651_v7 }
  0x3e   : > { %v1024_v3 = vrot.slane %v1016_v59, %v5651_v7  ;;  %v1041_v8 = vrot.slane %v1033_v63, %v5651_v7  ;;  %v753_v9 = vcombine.high %v751_v0, %v751_v0  ;;  %v768_v10 = vrot.slane %v754_v61, %v5651_v7 }
  0x3f   : > { %v1118_v11 = vcombine.low %v5523_v41, %v744_v57  ;;  %5390 = vmatprep.mubr.msk.bf16.mxu0 %vm1203_vm1, %v1189_v2  ;;  %v769_v13 = vcombine.high %v761_v6, %v761_v6  ;;  %v1119_v14 = vcombine.low %v752_v1, %v751_v0  ;;  %v655_v17 = vcombine.high %v329_v38, %v329_v38 }
  0x40   : > { %v1032_v12 = vcombine.low %v1024_v3, %v1031_v62  ;;  %v1049_v18 = vcombine.low %v1041_v8, %v1048_v4  ;;  %v770_v19 = vcombine.high %v768_v10, %v768_v10  ;;  %v1135_v21 = vcombine.low %v753_v9, %v761_v6 }
  0x41   : > { %v1126_v20 = vrot.slane %v1118_v11, %v5651_v7  ;;  %v1133_v22 = vrot.slane %v1119_v14, %v5651_v7  ;;  %v1136_v23 = vcombine.low %v769_v13, %v768_v10  ;;  %v669_v25 = vrot.slane %v655_v17, %v5651_v7  ;;  %v1914_v17 = vld [vmem:[%s8446_s3 + $0x4] sm:$0x7] }
  0x42   : > { %v670_v26 = vcombine.high %v662_v53, %v662_v53  ;;  %v1190_v27 = vpack.c.bf16 %v1049_v18, %v1032_v12  ;;  %v1143_v28 = vrot.slane %v1135_v21, %v5651_v7  ;;  %v1152_v29 = vcombine.low %v770_v19, %v5301_v15  ;;  %v1913_v15 = vld [vmem:[%s8446_s3] sm:$0x7] }
  0x43   : > { %v672_v30 = vcombine.high %v330_v16, %v330_v16  ;;  %v1134_v32 = vcombine.low %v1126_v20, %v1133_v22  ;;  %v1150_v33 = vrot.slane %v1136_v23, %v5651_v7  ;;  %v671_v34 = vcombine.high %v669_v25, %v669_v25 }
  0x44   : > { %v679_v35 = vrot.slane %v330_v16, %v5651_v7  ;;  %5391 = vmatmul.mubr.msk.bf16.gmra.mxu0 %vm1203_vm1, %v1190_v27  ;;  %v1159_v36 = vrot.slane %v1152_v29, %v5651_v7  ;;  %v1050_v38 = vcombine.low %v670_v26, %v669_v25  ;;  %v696_v43 = vcombine.high %v332_v31, %v332_v31  ;;  %v1915_v25 = vld [vmem:[%s8446_s3 + $0x8] sm:$0x7] }
  0x45   : > { %v686_v37 = vrot.slane %v672_v30, %v5651_v7  ;;  %v1151_v39 = vcombine.low %v1143_v28, %v1150_v33  ;;  %v703_v47 = vrot.slane %v332_v31, %v5651_v7  ;;  %v713_v54 = vcombine.high %v333_v42, %v333_v42 }
  0x46   : > { %v687_v40 = vcombine.high %v679_v35, %v679_v35  ;;  %v1051_v41 = vcombine.low %v671_v34, %v679_v35  ;;  %v1194_v44 = vpack.c.bf16 %v1159_v36, %v1159_v36  ;;  %v1058_v46 = vrot.slane %v1050_v38, %v5651_v7 }
  0x47   : > { %v688_v45 = vcombine.high %v686_v37, %v686_v37  ;;  %v1193_v48 = vpack.c.bf16 %v1151_v39, %v1134_v32  ;;  %v710_v51 = vrot.slane %v696_v43, %v5651_v7  ;;  %v711_v53 = vcombine.high %v703_v47, %v703_v47 }
  0x48   : > { %v1065_v49 = vrot.slane %v1051_v41, %v5651_v7  ;;  %v1067_v50 = vcombine.low %v687_v40, %v686_v37  ;;  %v720_v55 = vrot.slane %v333_v42, %v5651_v7  ;;  %v727_v60 = vrot.slane %v713_v54, %v5651_v7 }
  0x49   : > { %v1068_v52 = vcombine.low %v688_v45, %v5524_v24  ;;  %5398 = vmatprep.mubr.msk.bf16.mxu1 %vm1203_vm1, %v1193_v48  ;;  %v712_v58 = vcombine.high %v710_v51, %v710_v51  ;;  %v1084_v62 = vcombine.low %v703_v47, %v711_v53  ;;  %v2072_v14 = vsub.s32 1, %v5643_v5 }
  0x4a   : > { %v1066_v56 = vcombine.low %v1058_v46, %v1065_v49  ;;  %v1075_v57 = vrot.slane %v1067_v50, %v5651_v7  ;;  %5399 = vmatmul.mubr.msk.bf16.vlgmr.msra.gmra.mxu1 %vm1203_vm1, %v1194_v44  ;;  %v728_v61 = vcombine.high %v720_v55, %v720_v55  ;;  %v729_v1 = vcombine.high %v727_v60, %v727_v60 }
  0x4b   : > { %v1082_v59 = vrot.slane %v1068_v52, %v5651_v7  ;;  %v1085_v63 = vcombine.low %v710_v51, %v712_v58  ;;  %v1092_v2 = vrot.slane %v1084_v62, %v5651_v7  ;;  %v2073_v16 = vrot.slane %v1913_v15, %v2072_v14 }
  0x4c   : > { %v1101_v3 = vcombine.low %v720_v55, %v728_v61  ;;  %v1102_v8 = vcombine.low %v727_v60, %v729_v1  ;;  %v1918_v19 = vsub.s32 0, %v5643_v5  ;;  %v2900_v21 = vrot.slane %v1914_v17, %v2072_v14 }
  0x4d   : > { %v1083_v0 = vcombine.low %v1075_v57, %v1082_v59  ;;  %v1099_v4 = vrot.slane %v1085_v63, %v5651_v7  ;;  %v2082_v18 = vrot.slane %v2073_v16, %v5651_v7  ;;  %v2075_v20 = vcombine.high %v2073_v16, %v2073_v16  ;;  %v5864_v16 = vld [vmem:[%s8445_s2] ss:$0 sm:$0xff] }
  0x4e   : > { %v1109_v9 = vrot.slane %v1101_v3, %v5651_v7  ;;  %v1116_v11 = vrot.slane %v1102_v8, %v5651_v7  ;;  %v1919_v23 = vrot.slane %v1913_v15, %v1918_v19  ;;  %v2591_v24 = vsub.s32 2, %v5643_v5 }
  0x4f   : > { %v1191_v6 = vpack.c.bf16 %v1083_v0, %v1066_v56  ;;  %v1100_v10 = vcombine.low %v1092_v2, %v1099_v4  ;;  %v2090_v22 = vcombine.high %v2082_v18, %v2082_v18  ;;  %v2089_v26 = vrot.slane %v2075_v20, %v5651_v7 }
  0x50   : > { %v1117_v12 = vcombine.low %v1109_v9, %v1116_v11  ;;  %v5796_v27 = vrot.slane %v2082_v18, 7  ;;  %v2902_v28 = vcombine.high %v2900_v21, %v2900_v21  ;;  %v2909_v30 = vrot.slane %v2900_v21, %v5651_v7 }
  0x51   : > { %5394 = vmatprep.mubr.msk.bf16.mxu0 %vm1203_vm1, %v1191_v6  ;;  %v2101_v29 = vrot.slane %v2090_v22, 7  ;;  %v3720_v31 = vrot.slane %v1915_v25, %v2072_v14  ;;  %v1921_v32 = vcombine.high %v1919_v23, %v1919_v23  ;;  %v5800_v33 = vrot.slane %v1919_v23, %v5651_v7 }
  0x52   : > { %v1192_v13 = vpack.c.bf16 %v1117_v12, %v1100_v10  ;;  %8778 = vst [vmem:[#allocation3_spill] sm:$0xff] %v5796_v27  ;;  %v2592_v5 = vrot.slane %v1913_v15, %v2591_v24  ;;  %v2091_v34 = vcombine.high %v2089_v26, %v2089_v26  ;;  %v2104_v35 = vrot.slane %v2089_v26, 7 }
  0x53   : > { %8779 = vst [vmem:[#allocation4_spill] sm:$0xff] %v5800_v33  ;;  %v2100_v36 = vrot.slane %v5796_v27, 2  ;;  %v2916_v37 = vrot.slane %v2902_v28, %v5651_v7  ;;  %v2103_v39 = vrot.slane %v2101_v29, 2  ;;  %v2917_v40 = vcombine.high %v2909_v30, %v2909_v30 }
  0x54   : > { %5395 = vmatmul.mubr.msk.bf16.gmra.mxu0 %vm1203_vm1, %v1192_v13  ;;  %v3729_v41 = vrot.slane %v3720_v31, %v5651_v7  ;;  %v5810_v42 = vrot.slane %v1921_v32, %v5651_v7  ;;  %v5814_v43 = vcombine.high %v5800_v33, %v5800_v33  ;;  %v2594_v44 = vcombine.high %v2592_v5, %v2592_v5 }
  0x55   : > { %v2746_v45 = vrot.slane %v1914_v17, %v1918_v19  ;;  %v2106_v46 = vrot.slane %v2104_v35, 2  ;;  %v2107_v47 = vrot.slane %v2091_v34, 7  ;;  %v3412_v48 = vrot.slane %v1914_v17, %v2591_v24 }
  0x56   : > { %8782 = vst [vmem:[#allocation5_spill] sm:$0xff] %v5810_v42  ;;  %8783 = vst [vmem:[#allocation6_spill] sm:$0xff] %v5814_v43  ;;  %v3722_v49 = vcombine.high %v3720_v31, %v3720_v31  ;;  %v5818_v50 = vsel %vm5804_vm8, %v2100_v36, %v2101_v29  ;;  %v5821_v51 = vrot.slane %v2592_v5, %v5651_v7  ;;  %v5823_v52 = vrot.slane %v2909_v30, 7 }
  0x57   : > { %8784 = vst [vmem:[#allocation7_spill] sm:$0xff] %v5818_v50  ;;  %v2918_v53 = vcombine.high %v2916_v37, %v2916_v37  ;;  %v5827_v54 = vsel %vm5804_vm8, %v2103_v39, %v2104_v35  ;;  %v2921_v55 = vrot.slane %v2917_v40, 7  ;;  %v3566_v56 = vrot.slane %v1915_v25, %v1918_v19 }
  0x58   : > { %8785 = vst [vmem:[#allocation8_spill] sm:$0xff] %v5821_v51  ;;  %8786 = vst [vmem:[#allocation9_spill] sm:$0xff] %v5823_v52  ;;  %v3737_v57 = vcombine.high %v3729_v41, %v3729_v41  ;;  %v5830_v58 = vrot.slane %v2594_v44, %v5651_v7  ;;  %v2748_v59 = vcombine.high %v2746_v45, %v2746_v45  ;;  %v2924_v61 = vrot.slane %v2916_v37, 7 }
  0x59   : > { %8787 = vst [vmem:[#allocation10_spill] sm:$0xff] %v5827_v54  ;;  %v5833_v60 = vrot.slane %v2746_v45, %v5651_v7  ;;  %v5837_v62 = vsel %vm5804_vm8, %v2106_v46, %v2107_v47  ;;  %v3414_v63 = vcombine.high %v3412_v48, %v3412_v48  ;;  %v3736_v0 = vrot.slane %v3722_v49, %v5651_v7 }
  0x5a   : > { %8788 = vst [vmem:[#allocation11_spill] sm:$0xff] %v5830_v58  ;;  %8790 = vst [vmem:[#allocation13_spill] sm:$0xff] %v5837_v62  ;;  %v4232_v1 = vrot.slane %v1915_v25, %v2591_v24  ;;  %v5840_v2 = vrot.slane %v2107_v47, 2  ;;  %v2920_v3 = vrot.slane %v5823_v52, 2  ;;  %v5844_v4 = vrot.slane %v3412_v48, %v5651_v7 }
  0x5b   : > { %8789 = vst [vmem:[#allocation12_spill] sm:$0xff] %v5833_v60  ;;  %v2927_v6 = vrot.slane %v2918_v53, 7  ;;  %v5848_v8 = vcombine.high %v5821_v51, %v5821_v51  ;;  %v2923_v9 = vrot.slane %v2921_v55, 2  ;;  %v3568_v10 = vcombine.high %v3566_v56, %v3566_v56 }
  0x5c   : > { %8791 = vst [vmem:[#allocation14_spill] sm:$0xff] %v5840_v2  ;;  %8792 = vst [vmem:[#allocation15_spill] sm:$0xff] %v5844_v4  ;;  %v3741_v11 = vrot.slane %v3737_v57, 7  ;;  %v5852_v12 = vcombine.high %v5830_v58, %v5830_v58  ;;  %v5855_v13 = vrot.slane %v2748_v59, %v5651_v7  ;;  %v5859_v14 = vcombine.high %v5833_v60, %v5833_v60 }
  0x5d   : > { %8793 = vst [vmem:[#allocation16_spill] sm:$0xff] %v5848_v8  ;;  %v2926_v15 = vrot.slane %v2924_v61, 2  ;;  %v5867_v17 = vrot.slane %v3414_v63, %v5651_v7  ;;  %v3738_v18 = vcombine.high %v3736_v0, %v3736_v0  ;;  %v3744_v19 = vrot.slane %v3736_v0, 7 }
  0x5e   : > { %8794 = vst [vmem:[#allocation17_spill] sm:$0xff] %v5852_v12  ;;  %8795 = vst [vmem:[#allocation18_spill] sm:$0xff] %v5855_v13  ;;  %v4234_v20 = vcombine.high %v4232_v1, %v4232_v1  ;;  %v5871_v21 = vsel %vm5804_vm8, %v2920_v3, %v2921_v55  ;;  %v5875_v22 = vcombine.high %v5844_v4, %v5844_v4  ;;  %v5881_v24 = vrot.slane %v2927_v6, 2 }
  0x5f   : > { %8796 = vst [vmem:[#allocation19_spill] sm:$0xff] %v5859_v14  ;;  %8797 = vst [vmem:[#allocation20_spill] sm:$0xff] %v5867_v17  ;;  %v5879_v23 = vcombine.high %v5810_v42, %v5810_v42  ;;  %v5885_v26 = vsel %vm5804_vm8, %v2923_v9, %v2924_v61  ;;  %v5888_v28 = vrot.slane %v3568_v10, %v5651_v7  ;;  %v3743_v29 = vrot.slane %v3741_v11, 2 }
  0x60   : > { %8798 = vst [vmem:[#allocation21_spill] sm:$0xff] %v5871_v21  ;;  %8799 = vst [vmem:[#allocation22_spill] sm:$0xff] %v5875_v22  ;;  %v5890_v30 = vrot.slane %v3729_v41, 7  ;;  %v5897_v32 = vsel %vm5804_vm8, %v5840_v2, %v5796_v27  ;;  %v5901_v5 = vcombine.high %v5855_v13, %v5855_v13  ;;  %v5905_v34 = vsel %vm5804_vm8, %v2926_v15, %v2927_v6  ;;  %v5339_v41 = vld [vmem:[%s8447_s4] ss:$0 sm:$0xff] }
  0x61   : > { %8800 = vst [vmem:[#allocation23_spill] sm:$0xff] %v5879_v23  ;;  %8801 = vst [vmem:[#allocation24_spill] sm:$0xff] %v5881_v24  ;;  %v3746_v36 = vrot.slane %v3744_v19, 2  ;;  %v3747_v37 = vrot.slane %v3738_v18, 7  ;;  %v5908_v39 = vrot.slane %v4232_v1, %v5651_v7  ;;  %v5911_v40 = vrot.slane %v4234_v20, %v5651_v7 }
  0x62   : > { %8802 = vst [vmem:[#allocation25_spill] sm:$0xff] %v5885_v26  ;;  %8803 = vst [vmem:[#allocation26_spill] sm:$0xff] %v5888_v28  ;;  %v5921_v46 = vsel %vm5804_vm8, %v5881_v24, %v5823_v52  ;;  %v5925_v47 = vcombine.high %v5867_v17, %v5867_v17  ;;  %v5928_v49 = vrot.slane %v3566_v56, %v5651_v7  ;;  %v3740_v57 = vrot.slane %v5890_v30, 2 }
  0x63   : > { %8804 = vst [vmem:[#allocation27_spill] sm:$0xff] %v5890_v30  ;;  %8805 = vst [vmem:[#allocation28_spill] sm:$0xff] %v5897_v32  ;;  %v5932_v53 = vcombine.high %v5888_v28, %v5888_v28  ;;  %v5936_v55 = vsel %vm5804_vm8, %v3743_v29, %v3744_v19  ;;  %v4389_v0 = vcombine.high %v5339_v41, %v5339_v41  ;;  %v5944_v3 = vrot.slane %v3747_v37, 2 }
  0x64   : > { %8806 = vst [vmem:[#allocation29_spill] sm:$0xff] %v5901_v5  ;;  %8807 = vst [vmem:[#allocation30_spill] sm:$0xff] %v5905_v34  ;;  %v5942_v56 = vsel %vm5804_vm8, %v3746_v36, %v3747_v37  ;;  %v5948_v6 = vcombine.high %v5911_v40, %v5911_v40  ;;  %v5952_v9 = vcombine.high %v5908_v39, %v5908_v39 }
  0x65   : > { %8808 = vst [vmem:[#allocation31_spill] sm:$0xff] %v5908_v39  ;;  %8809 = vst [vmem:[#allocation32_spill] sm:$0xff] %v5911_v40  ;;  %v5964_v29 = vcombine.high %v5928_v49, %v5928_v49 }
  0x66   : > { %8810 = vst [vmem:[#allocation33_spill] sm:$0xff] %v5921_v46  ;;  %8811 = vst [vmem:[#allocation34_spill] sm:$0xff] %v5925_v47 }
  0x67   : > { %8812 = vst [vmem:[#allocation35_spill] sm:$0xff] %v5928_v49  ;;  %8813 = vst [vmem:[#allocation36_spill] sm:$0xff] %v5932_v53 }
  0x68   : > { %8814 = vst [vmem:[#allocation37_spill] sm:$0xff] %v5936_v55  ;;  %8815 = vst [vmem:[#allocation38_spill] sm:$0xff] %v5942_v56 }
  0x69   : > { %8816 = vst [vmem:[#allocation39_spill] sm:$0xff] %v5944_v3  ;;  %8817 = vst [vmem:[#allocation40_spill] sm:$0xff] %v5948_v6 }
  0x6a   : > { %8818 = vst [vmem:[#allocation41_spill] sm:$0xff] %v5952_v9  ;;  %8820 = vst [vmem:[#allocation43_spill] sm:$0xff] %v5964_v29 }
  0xe5   : > { %v5380_v25 = vpop.f32.mrf.mxu0 }
  0xe6   : > { %v1287_v31 = vadd.f32 %v5380_v25, %v5864_v16  ;;  %v5960_v25 = vsel %vm5804_vm8, %v3740_v57, %v3741_v11  ;;  %v5979_v11 = vrot.slane %v4389_v0, %v5651_v7 }
  0xe7   : > { %v1278_v35 = vpop.f32.mrf.mxu0  ;;  %8819 = vst [vmem:[#allocation42_spill] sm:$0xff] %v5960_v25 }
  0xe8   : > { %v1374_v44 = vmax.f32 %v1287_v31, 0.0  ;;  %v1279_v45 = vadd.f32 %v5864_v16, %v1278_v35  ;;  %v5970_v31 = vsel %vm5804_vm8, %v5944_v3, %v5890_v30  ;;  %8822 = vst [vmem:[#allocation45_spill] sm:$0xff] %v5979_v11 }
  0xe9   : > { %v5381_v48 = vpop.f32.mrf.mxu0  ;;  %8821 = vst [vmem:[#allocation44_spill] sm:$0xff] %v5970_v31 }
  0xea   : > { %v1397_v59 = vmin.f32 %v1374_v44, 6.0  ;;  %v1372_v61 = vmax.f32 %v1279_v45, 0.0  ;;  %v1290_v63 = vadd.f32 %v5381_v48, %v5864_v16 }
  0xeb   : > { %v1281_v1 = vpop.f32.mrf.mxu0 }
  0xec   : > { %v1475_v10 = vcombine.high %v1397_v59, %v1397_v59  ;;  %v1482_v15 = vrot.slane %v1397_v59, %v5651_v7  ;;  %v1395_v18 = vmin.f32 %v1372_v61, 6.0  ;;  %v1375_v19 = vmax.f32 %v1290_v63, 0.0 }
  0xed   : > { %v5956_v20 = vadd.f32 %v5864_v16, %v1281_v1 }
  0xee   : > { %v5973_v35 = vrot.slane %v1475_v10, %v5651_v7  ;;  %v1490_v36 = vcombine.high %v1482_v15, %v1482_v15  ;;  %v5976_v37 = vmul.f32 %v5840_v2, %v1482_v15  ;;  %v5982_v41 = vmul.f32 %v5852_v12, %v1482_v15 }
  0xef   : > { %v1441_v44 = vcombine.high %v1395_v18, %v1395_v18  ;;  %v1448_v45 = vrot.slane %v1395_v18, %v5651_v7  ;;  %v5985_v48 = vmin.f32 %v1375_v19, 6.0 }
  0xf0   : > { %v5989_v57 = vcombine.high %v5973_v35, %v5973_v35  ;;  %v1950_v59 = vmul.f32 %v5800_v33, %v1490_v36  ;;  %v2126_v61 = vmul.f32 %v5796_v27, %v1490_v36  ;;  %v1951_v0 = vmul.f32 %v5814_v43, %v5973_v35 }
  0xf1   : > { %v2127_v1 = vmul.f32 %v5818_v50, %v5973_v35  ;;  %v2937_v15 = vmul.f32 %v5823_v52, %v1490_v36  ;;  %v2623_v11 = vmul.f32 %v5821_v51, %v5973_v35  ;;  %v1455_v31 = vrot.slane %v1441_v44, %v5651_v7 }
  0xf2   : > { %v2128_v18 = vmul.f32 %v5827_v54, %v5989_v57  ;;  %v5316_v19 = vrot.slane %v2126_v61, 9  ;;  %v2624_v17 = vmul.f32 %v5848_v8, %v5989_v57  ;;  %v1456_v39 = vcombine.high %v1448_v45, %v1448_v45 }
  0xf3   : > { %v2288_v63 = vrot.slane %v2127_v1, 7  ;;  %v5323_v9 = vrot.slane %v2937_v15, 9  ;;  %v6007_v28 = vcombine.high %v1455_v31, %v1455_v31  ;;  %v1942_v10 = vmul.f32 %v5800_v33, %v1448_v45 }
  0xf4   : > { %v2291_v55 = vrot.slane %v2128_v18, 7  ;;  %v2117_v29 = vmul.f32 %v5796_v27, %v1448_v45  ;;  %v1944_v49 = vmul.f32 %v5810_v42, %v1455_v31  ;;  %v2118_v44 = vmul.f32 %v5818_v50, %v1456_v39 }
  0xf5   : > { %v2289_v61 = vsel %vm5804_vm8, %v5316_v19, %v2288_v63  ;;  %v2290_v25 = vrot.slane %v2288_v63, 2  ;;  %v1943_v30 = vmul.f32 %v5814_v43, %v1456_v39  ;;  %v2119_v15 = vmul.f32 %v5827_v54, %v1455_v31 }
  0xf6   : > { %v2533_v1 = vadd.f32 %v2289_v61, %v1950_v59  ;;  %v2120_v18 = vmul.f32 %v5837_v62, %v6007_v28  ;;  %v6021_v45 = vrot.slane %v2291_v55, 2  ;;  %v5315_v40 = vrot.slane %v2117_v29, 9 }
  0xf7   : > { %v2292_v6 = vsel %vm5804_vm8, %v2290_v25, %v2291_v55  ;;  %v2263_v19 = vrot.slane %v2118_v44, 7  ;;  %v2266_v3 = vrot.slane %v2119_v15, 7  ;;  %v2615_v56 = vmul.f32 %v5821_v51, %v1456_v39 }
  0xf8   : > { %v2534_v63 = vadd.f32 %v2292_v6, %v1951_v0  ;;  %v2269_v53 = vrot.slane %v2120_v18, 7  ;;  %v6024_v59 = vadd.f32 %v2623_v11, %v2533_v1  ;;  %v2616_v27 = vmul.f32 %v5848_v8, %v1455_v31 }
  0xf9   : > { %v2264_v61 = vsel %vm5804_vm8, %v5315_v40, %v2263_v19  ;;  %v2265_v52 = vrot.slane %v2263_v19, 2  ;;  %v2268_v25 = vrot.slane %v2266_v3, 2  ;;  %v2617_v29 = vmul.f32 %v5830_v58, %v6007_v28 }
  0xfa   : > { %8823 = vst [vmem:[#allocation46_spill] sm:$0xff] %v6024_v59  ;;  %v6029_v24 = vadd.f32 %v2624_v17, %v2534_v63  ;;  %v2525_v55 = vadd.f32 %v2264_v61, %v1942_v10  ;;  %v6035_v0 = vrot.slane %v2269_v53, 2  ;;  %v2769_v39 = vmul.f32 %v5833_v60, %v1490_v36 }
  0xfb   : > { %v2267_v6 = vsel %vm5804_vm8, %v2265_v52, %v2266_v3  ;;  %v2770_v40 = vmul.f32 %v5859_v14, %v5973_v35  ;;  %v2270_v31 = vsel %vm5804_vm8, %v2268_v25, %v2269_v53  ;;  %v2938_v10 = vmul.f32 %v5871_v21, %v5973_v35 }
  0xfc   : > { %8824 = vst [vmem:[#allocation47_spill] sm:$0xff] %v6029_v24  ;;  %v2526_v17 = vadd.f32 %v2267_v6, %v1943_v30  ;;  %v2679_v11 = vadd.f32 %v2615_v56, %v2525_v55  ;;  %v2527_v44 = vadd.f32 %v2270_v31, %v1944_v49  ;;  %v2771_v1 = vmul.f32 %v5855_v13, %v5989_v57 }
  0xfd   : > { %v2939_v52 = vmul.f32 %v5885_v26, %v5989_v57  ;;  %v3435_v3 = vmul.f32 %v5844_v4, %v5973_v35  ;;  %v3083_v18 = vrot.slane %v2938_v10, 7  ;;  %v1492_v30 = vcombine.high %v5985_v48, %v5985_v48 }
  0xfe   : > { %v2680_v36 = vadd.f32 %v2616_v27, %v2526_v17  ;;  %v2833_v15 = vadd.f32 %v2769_v39, %v2679_v11  ;;  %v2681_v53 = vadd.f32 %v2617_v29, %v2527_v44  ;;  %v3436_v49 = vmul.f32 %v5875_v22, %v5989_v57  ;;  %v6069_v39 = vpop.f32.mrf.mxu0 }
  0xff   : > { %v3086_v56 = vrot.slane %v2939_v52, 7  ;;  %v6056_v19 = vrot.slane %v5985_v48, %v5651_v7  ;;  %v3084_v61 = vsel %vm5804_vm8, %v5323_v9, %v3083_v18  ;;  %v3085_v35 = vrot.slane %v3083_v18, 2 }
 0x100   : > { %v2834_v63 = vadd.f32 %v2770_v40, %v2680_v36  ;;  %v6061_v27 = vrot.slane %v1492_v30, %v5651_v7  ;;  %v6063_v25 = vadd.f32 %v2771_v1, %v2681_v53  ;;  %v3345_v29 = vadd.f32 %v3084_v61, %v2833_v15 }
 0x101   : > { %8825 = vst [vmem:[#allocation48_spill] sm:$0xff] %v6056_v19  ;;  %v6065_v55 = vrot.slane %v3086_v56, 2  ;;  %v1952_v6 = vmul.f32 %v5810_v42, %v5989_v57  ;;  %v3087_v48 = vsel %vm5804_vm8, %v3085_v35, %v3086_v56  ;;  %v6075_v9 = vcombine.high %v6056_v19, %v6056_v19  ;;  %v6112_v56 = vpop.f32.mrf.mxu0 }
 0x102   : > { %8826 = vst [vmem:[#allocation49_spill] sm:$0xff] %v6063_v25  ;;  %v6079_v40 = vcombine.high %v6061_v27, %v6061_v27  ;;  %v6083_v31 = vmul.f32 %v5879_v23, %v6056_v19  ;;  %v3346_v17 = vadd.f32 %v3087_v48, %v2834_v63  ;;  %v1955_v57 = vmul.f32 %v5814_v43, %v6061_v27 }
 0x103   : > { %8827 = vst [vmem:[#allocation50_spill] sm:$0xff] %v6065_v55  ;;  %8828 = vst [vmem:[#allocation51_spill] sm:$0xff] %v6075_v9  ;;  %v2129_v11 = vmul.f32 %v5837_v62, %v6056_v19  ;;  %v6091_v10 = vmul.f32 %v5818_v50, %v6061_v27  ;;  %v6093_v44 = vadd.f32 %v3435_v3, %v3345_v29  ;;  %v8833_v3 = vmax.f32 %v5956_v20, 0.0 }
 0x104   : > { %8829 = vst [vmem:[#allocation52_spill] sm:$0xff] %v6083_v31  ;;  %v6097_v1 = vmul.f32 %v5827_v54, %v6079_v40  ;;  %v2625_v52 = vmul.f32 %v5830_v58, %v6056_v19  ;;  %v6103_v36 = vmul.f32 %v5821_v51, %v6061_v27  ;;  %v6108_v30 = vmul.f32 %v5848_v8, %v6079_v40 }
 0x105   : > { %8830 = vst [vmem:[#allocation53_spill] sm:$0xff] %v6091_v10  ;;  %8831 = vst [vmem:[#allocation54_spill] sm:$0xff] %v6093_v44  ;;  %v2294_v15 = vrot.slane %v2129_v11, 7  ;;  %v8480_v18 = vrot.slane %v6091_v10, 7  ;;  %v1396_v53 = vmin.f32 %v8833_v3, 6.0  ;;  %v6114_v63 = vadd.f32 %v3436_v49, %v3346_v17 }
 0x106   : > { %8832 = vst [vmem:[#allocation55_spill] sm:$0xff] %v6103_v36  ;;  %v1945_v35 = vmul.f32 %v5879_v23, %v6007_v28  ;;  %v2772_v29 = vmul.f32 %v5901_v5, %v6056_v19  ;;  %v6128_v49 = vmul.f32 %v5833_v60, %v6075_v9  ;;  %v6135_v61 = vmul.f32 %v5859_v14, %v6061_v27 }
 0x107   : > { %8834 = vst [vmem:[#allocation56_spill] sm:$0xff] %v6114_v63  ;;  %v2295_v48 = vsel %vm5804_vm8, %v6021_v45, %v2294_v15  ;;  %v2302_v20 = vrot.slane %v8480_v18, 2  ;;  %v1458_v11 = vcombine.high %v1396_v53, %v1396_v53  ;;  %v6130_v17 = vrot.slane %v2294_v15, 2  ;;  %v6150_v15 = vpop.f32.mrf.mxu0 }
 0x108   : > { %v2535_v3 = vadd.f32 %v2295_v48, %v1952_v6  ;;  %v1465_v28 = vrot.slane %v1396_v53, %v5651_v7  ;;  %v8836_v36 = vrot.slane %v6097_v1, 7  ;;  %v6144_v24 = vmul.f32 %v5855_v13, %v6079_v40 }
 0x109   : > { %8835 = vst [vmem:[#allocation57_spill] sm:$0xff] %v6130_v17  ;;  %v1472_v18 = vrot.slane %v1458_v11, %v5651_v7  ;;  %v6148_v6 = vmul.f32 %v5905_v34, %v6056_v19  ;;  %v2941_v31 = vmul.f32 %v5921_v46, %v6075_v9  ;;  %v6167_v25 = vpop.f32.mrf.mxu0 }
 0x10a   : > { %v2304_v45 = vsel %vm5804_vm8, %v2302_v20, %v8836_v36  ;;  %v6152_v48 = vadd.f32 %v2625_v52, %v2535_v3  ;;  %v1473_v10 = vcombine.high %v1465_v28, %v1465_v28  ;;  %v1946_v20 = vmul.f32 %v5800_v33, %v1465_v28  ;;  %v6163_v52 = vpop.f32.mrf.mxu1 }
 0x10b   : > { %v2538_v53 = vadd.f32 %v2304_v45, %v1955_v57  ;;  %v1474_v36 = vcombine.high %v1472_v18, %v1472_v18  ;;  %v2121_v11 = vmul.f32 %v5897_v32, %v1465_v28  ;;  %v2123_v17 = vmul.f32 %v5827_v54, %v1472_v18  ;;  %8838 = vst [vmem:[#allocation59_spill] sm:$0xff] %v6163_v52 }
 0x10c   : > { %8837 = vst [vmem:[#allocation58_spill] sm:$0xff] %v6152_v48  ;;  %v1947_v14 = vmul.f32 %v5814_v43, %v1473_v10  ;;  %v1948_v63 = vmul.f32 %v5810_v42, %v1472_v18  ;;  %v2122_v44 = vmul.f32 %v5818_v50, %v1473_v10  ;;  %v2618_v57 = vmul.f32 %v5852_v12, %v1465_v28  ;;  %v6172_v54 = vpop.f32.mrf.mxu1 }
 0x10d   : > { %v1949_v3 = vmul.f32 %v5879_v23, %v1474_v36  ;;  %v2124_v45 = vmul.f32 %v5837_v62, %v1474_v36  ;;  %v2272_v48 = vrot.slane %v2121_v11, 7  ;;  %v2278_v19 = vrot.slane %v2123_v17, 7  ;;  %8839 = vst [vmem:[#allocation60_spill] sm:$0xff] %v6172_v54 }
 0x10e   : > { %v2275_v55 = vrot.slane %v2122_v44, 7  ;;  %v2619_v46 = vmul.f32 %v5821_v51, %v1473_v10  ;;  %v2620_v43 = vmul.f32 %v5848_v8, %v1472_v18  ;;  %v2621_v32 = vmul.f32 %v5830_v58, %v1474_v36  ;;  %v5401_v18 = vpop.f32.mrf.mxu1 }
 0x10f   : > { %v2273_v28 = vsel %vm5804_vm8, %v6035_v0, %v2272_v48  ;;  %v2274_v52 = vrot.slane %v2272_v48, 2  ;;  %v2280_v59 = vrot.slane %v2278_v19, 2  ;;  %v2281_v34 = vrot.slane %v2124_v45, 7  ;;  %v5388_v48 = vpop.f32.mrf.mxu0 }
 0x110   : > { %v2277_v11 = vrot.slane %v2275_v55, 2  ;;  %v2528_v17 = vadd.f32 %v2273_v28, %v1945_v35  ;;  %v2942_v44 = vmul.f32 %v5871_v21, %v6061_v27  ;;  %v2943_v10 = vmul.f32 %v5885_v26, %v6079_v40 }
 0x111   : > { %v2276_v36 = vsel %vm5804_vm8, %v2274_v52, %v2275_v55  ;;  %v2282_v8 = vsel %vm5804_vm8, %v2280_v59, %v2281_v34  ;;  %v2283_v51 = vrot.slane %v2281_v34, 2  ;;  %v8509_v0 = vrot.slane %v6148_v6, 7 }
 0x112   : > { %v2279_v35 = vsel %vm5804_vm8, %v2277_v11, %v2278_v19  ;;  %v2529_v45 = vadd.f32 %v2276_v36, %v1946_v20  ;;  %v2531_v28 = vadd.f32 %v2282_v8, %v1948_v63  ;;  %v2682_v21 = vadd.f32 %v2618_v57, %v2528_v17  ;;  %v1310_v20 = vpop.f32.mrf.mxu0 }
 0x113   : > { %v8840_v54 = vrot.slane %v5976_v37, 7  ;;  %v2530_v26 = vadd.f32 %v2279_v35, %v1947_v14  ;;  %v3091_v55 = vrot.slane %v8509_v0, 2  ;;  %v3092_v59 = vrot.slane %v2941_v31, 7 }
 0x114   : > { %v2683_v52 = vadd.f32 %v2619_v46, %v2529_v45  ;;  %v2685_v13 = vadd.f32 %v2621_v32, %v2531_v28  ;;  %v2836_v60 = vadd.f32 %v2772_v29, %v2682_v21  ;;  %v6195_v50 = vadd.f32 %v6108_v30, %v2538_v53 }
 0x115   : > { %v2285_v18 = vsel %vm5804_vm8, %v2283_v51, %v8840_v54  ;;  %v2684_v19 = vadd.f32 %v2620_v43, %v2530_v26  ;;  %v3094_v8 = vrot.slane %v3092_v59, 2  ;;  %v3095_v63 = vrot.slane %v2942_v44, 7 }
 0x116   : > { %v2532_v34 = vadd.f32 %v2285_v18, %v1949_v3  ;;  %8841 = vst [vmem:[#allocation61_spill] sm:$0xff] %v6195_v50  ;;  %v2837_v51 = vadd.f32 %v6128_v49, %v2683_v52  ;;  %v3093_v54 = vsel %vm5804_vm8, %v3091_v55, %v3092_v59  ;;  %v3098_v14 = vrot.slane %v2943_v10, 7 }
 0x117   : > { %v2838_v46 = vadd.f32 %v6135_v61, %v2684_v19  ;;  %v3096_v21 = vsel %vm5804_vm8, %v3094_v8, %v3095_v63  ;;  %v3097_v32 = vrot.slane %v3095_v63, 2  ;;  %v3348_v31 = vadd.f32 %v3093_v54, %v2836_v60 }
 0x118   : > { %v6198_v37 = vadd.f32 %v5982_v41, %v2532_v34  ;;  %v6207_v43 = vadd.f32 %v6144_v24, %v2685_v13  ;;  %v3349_v26 = vadd.f32 %v3096_v21, %v2837_v51  ;;  %v3438_v41 = vmul.f32 %v5925_v47, %v6075_v9  ;;  %v5389_v13 = vpop.f32.mrf.mxu0 }
 0x119   : > { %v3439_v30 = vmul.f32 %v5844_v4, %v6061_v27  ;;  %v3099_v29 = vsel %vm5804_vm8, %v3097_v32, %v3098_v14  ;;  %v6215_v49 = vrot.slane %v3098_v14, 2  ;;  %v1303_v61 = vadd.f32 %v6069_v39, %v5864_v16 }
 0x11a   : > { %v1295_v60 = vadd.f32 %v5864_v16, %v6112_v56  ;;  %v3350_v24 = vadd.f32 %v3099_v29, %v2838_v46  ;;  %v3440_v53 = vmul.f32 %v5875_v22, %v6079_v40  ;;  %v6223_v57 = vadd.f32 %v3438_v41, %v3348_v31  ;;  %v1313_v59 = vpop.f32.mrf.mxu0 }
 0x11b   : > { %v6225_v3 = vadd.f32 %v3439_v30, %v3349_v26  ;;  %v1378_v27 = vmax.f32 %v1303_v61, 0.0  ;;  %v1956_v17 = vmul.f32 %v5810_v42, %v6079_v40  ;;  %v1306_v39 = vadd.f32 %v6150_v15, %v5864_v16  ;;  %v8850_v61 = vld [vmem:[#allocation24_spill] sm:$0xff] }
 0x11c   : > { %8842 = vst [vmem:[#allocation62_spill] sm:$0xff] %v6223_v57  ;;  %v1376_v11 = vmax.f32 %v1295_v60, 0.0  ;;  %v8844_v44 = vrot.slane %v6097_v1, 7  ;;  %v1298_v10 = vadd.f32 %v5864_v16, %v6167_v25  ;;  %v1319_v36 = vadd.f32 %v5388_v48, %v5864_v16 }
 0x11d   : > { %8843 = vst [vmem:[#allocation63_spill] sm:$0xff] %v6225_v3  ;;  %v1311_v35 = vadd.f32 %v5864_v16, %v1310_v20  ;;  %v6237_v45 = vadd.f32 %v3440_v53, %v3350_v24  ;;  %v1401_v28 = vmin.f32 %v1378_v27, 6.0  ;;  %v1379_v55 = vmax.f32 %v1306_v39, 0.0  ;;  %v5392_v39 = vpop.f32.mrf.mxu0 }
 0x11e   : > { %v2305_v56 = vrot.slane %v8844_v44, 2  ;;  %v1399_v18 = vmin.f32 %v1376_v11, 6.0  ;;  %v1377_v40 = vmax.f32 %v1298_v10, 0.0  ;;  %v1382_v34 = vmax.f32 %v1319_v36, 0.0  ;;  %v8854_v36 = vld [vmem:[#allocation3_spill] sm:$0xff]  ;;  %v8857_v44 = vld [vmem:[#allocation12_spill] sm:$0xff] }
 0x11f   : > { %8845 = vst [vmem:[#allocation64_spill] sm:$0xff] %v6237_v45  ;;  %v1380_v52 = vmax.f32 %v1311_v35, 0.0  ;;  %v6240_v15 = vadd.f32 %v5389_v13, %v5864_v16  ;;  %v1543_v1 = vcombine.high %v1401_v28, %v1401_v28  ;;  %v6243_v19 = vrot.slane %v1401_v28, %v5651_v7 }
 0x120   : > { %v1509_v25 = vcombine.high %v1399_v18, %v1399_v18  ;;  %v6246_v48 = vrot.slane %v1399_v18, %v5651_v7  ;;  %v1402_v8 = vmin.f32 %v1379_v55, 6.0  ;;  %v1400_v63 = vmin.f32 %v1377_v40, 6.0  ;;  %v8855_v55 = vld [vmem:[#allocation7_spill] sm:$0xff]  ;;  %v8858_v18 = vld [vmem:[#allocation18_spill] sm:$0xff] }
 0x121   : > { %v6248_v20 = vmin.f32 %v1382_v34, 6.0  ;;  %v6251_v51 = vadd.f32 %v5864_v16, %v1313_v59  ;;  %v6254_v54 = vrot.slane %v1543_v1, %v5651_v7  ;;  %v6263_v21 = vmin.f32 %v1380_v52, 6.0 }
 0x122   : > { %v6257_v14 = vrot.slane %v1509_v25, %v5651_v7  ;;  %v6261_v46 = vcombine.high %v6246_v48, %v6246_v48  ;;  %v6267_v32 = vcombine.high %v6243_v19, %v6243_v19  ;;  %v1957_v31 = vmul.f32 %v5879_v23, %v6246_v48 }
 0x123   : > { %8846 = vst [vmem:[#allocation65_spill] sm:$0xff] %v6254_v54  ;;  %v2133_v26 = vmul.f32 %v5837_v62, %v6246_v48  ;;  %v2629_v41 = vmul.f32 %v5830_v58, %v6246_v48  ;;  %v6277_v30 = vcombine.high %v6254_v54, %v6254_v54  ;;  %v6281_v29 = vmul.f32 %v5840_v2, %v6254_v54 }
 0x124   : > { %8847 = vst [vmem:[#allocation66_spill] sm:$0xff] %v6267_v32  ;;  %v6285_v60 = vmul.f32 %v8850_v61, %v6254_v54  ;;  %v6289_v13 = vmul.f32 %v5901_v5, %v6246_v48  ;;  %v6293_v24 = vmul.f32 %v5852_v12, %v6254_v54  ;;  %v6297_v53 = vmul.f32 %v5925_v47, %v6254_v54 }
 0x125   : > { %8848 = vst [vmem:[#allocation67_spill] sm:$0xff] %v6277_v30  ;;  %8849 = vst [vmem:[#allocation68_spill] sm:$0xff] %v6281_v29  ;;  %v6301_v27 = vcombine.high %v6257_v14, %v6257_v14  ;;  %v2134_v11 = vmul.f32 %v5840_v2, %v6261_v46  ;;  %v1958_v10 = vmul.f32 %v5800_v33, %v6257_v14  ;;  %v2306_v28 = vrot.slane %v2133_v26, 7  ;;  %v8859_v30 = vld [vmem:[#allocation30_spill] sm:$0xff] }
 0x126   : > { %8851 = vst [vmem:[#allocation69_spill] sm:$0xff] %v6285_v60  ;;  %8852 = vst [vmem:[#allocation70_spill] sm:$0xff] %v6293_v24  ;;  %v2135_v35 = vmul.f32 %v8854_v36, %v6257_v14  ;;  %v2630_v34 = vmul.f32 %v5852_v12, %v6261_v46  ;;  %v2777_v0 = vmul.f32 %v8857_v44, %v6257_v14 }
 0x127   : > { %8853 = vst [vmem:[#allocation71_spill] sm:$0xff] %v6297_v53  ;;  %v6313_v59 = vmul.f32 %v8855_v55, %v6301_v27  ;;  %v2309_v40 = vrot.slane %v2134_v11, 7  ;;  %v2307_v52 = vsel %vm5804_vm8, %v2305_v56, %v2306_v28  ;;  %v2308_v1 = vrot.slane %v2306_v28, 2  ;;  %v1326_v53 = vpop.f32.mrf.mxu0  ;;  %v8860_v56 = vld [vmem:[#allocation9_spill] sm:$0xff] }
 0x128   : > { %v5317_v25 = vrot.slane %v2135_v35, 9  ;;  %v2539_v24 = vadd.f32 %v2307_v52, %v1956_v17  ;;  %v2783_v29 = vmul.f32 %v8858_v18, %v6243_v19  ;;  %v6326_v11 = vmul.f32 %v8859_v30, %v6246_v48 }
 0x129   : > { %8856 = vst [vmem:[#allocation72_spill] sm:$0xff] %v6313_v59  ;;  %v8522_v26 = vrot.slane %v6313_v59, 7  ;;  %v2310_v22 = vsel %vm5804_vm8, %v2308_v1, %v2309_v40  ;;  %v6332_v35 = vmul.f32 %v8860_v56, %v6257_v14  ;;  %v1560_v28 = vcombine.high %v1402_v8, %v1402_v8  ;;  %v8864_v40 = vld [vmem:[#allocation46_spill] sm:$0xff] }
 0x12a   : > { %v6335_v60 = vrot.slane %v1402_v8, %v5651_v7  ;;  %v2540_v52 = vadd.f32 %v2310_v22, %v1957_v31  ;;  %v2693_v4 = vadd.f32 %v2629_v41, %v2539_v24  ;;  %v8523_v50 = vrot.slane %v6326_v11, 7  ;;  %v5393_v41 = vpop.f32.mrf.mxu0 }
 0x12b   : > { %8861 = vst [vmem:[#allocation73_spill] sm:$0xff] %v6332_v35  ;;  %v2314_v17 = vsel %vm5804_vm8, %v5317_v25, %v8522_v26  ;;  %v6345_v1 = vadd.f32 %v2777_v0, %v8864_v40  ;;  %v6349_v45 = vrot.slane %v1560_v28, %v5651_v7  ;;  %v1526_v31 = vcombine.high %v1400_v63, %v1400_v63 }
 0x12c   : > { %8862 = vst [vmem:[#allocation74_spill] sm:$0xff] %v6335_v60  ;;  %v6342_v9 = vadd.f32 %v2314_v17, %v1958_v10  ;;  %v6351_v8 = vadd.f32 %v2630_v34, %v2540_v52  ;;  %v6353_v59 = vadd.f32 %v2783_v29, %v2693_v4  ;;  %v6357_v22 = vcombine.high %v6335_v60, %v6335_v60  ;;  %v1329_v26 = vpop.f32.mrf.mxu0 }
 0x12d   : > { %8865 = vst [vmem:[#allocation46_spill] sm:$0xff] %v6345_v1  ;;  %8866 = vst [vmem:[#allocation76_spill] sm:$0xff] %v6349_v45  ;;  %v6361_v24 = vrot.slane %v8523_v50, 2  ;;  %v6364_v0 = vrot.slane %v1400_v63, %v5651_v7  ;;  %v1611_v10 = vcombine.high %v6248_v20, %v6248_v20  ;;  %v6370_v4 = vrot.slane %v6248_v20, %v5651_v7 }
 0x12e   : > { %8863 = vst [vmem:[#allocation75_spill] sm:$0xff] %v6342_v9  ;;  %8867 = vst [vmem:[#allocation77_spill] sm:$0xff] %v6351_v8  ;;  %v6373_v29 = vrot.slane %v1526_v31, %v5651_v7  ;;  %v1577_v34 = vcombine.high %v6263_v21, %v6263_v21  ;;  %v6379_v25 = vrot.slane %v6263_v21, %v5651_v7  ;;  %v1383_v63 = vmax.f32 %v6240_v15, 0.0  ;;  %v5396_v1 = vpop.f32.mrf.mxu0 }
 0x12f   : > { %8868 = vst [vmem:[#allocation78_spill] sm:$0xff] %v6353_v59  ;;  %8869 = vst [vmem:[#allocation79_spill] sm:$0xff] %v6357_v22  ;;  %v6384_v28 = vcombine.high %v6349_v45, %v6349_v45  ;;  %v6388_v20 = vcombine.high %v6364_v0, %v6364_v0  ;;  %v6391_v17 = vrot.slane %v1611_v10, %v5651_v7  ;;  %v1381_v52 = vmax.f32 %v6251_v51, 0.0 }
 0x130   : > { %8870 = vst [vmem:[#allocation80_spill] sm:$0xff] %v6370_v4  ;;  %8871 = vst [vmem:[#allocation81_spill] sm:$0xff] %v6379_v25  ;;  %v6396_v40 = vcombine.high %v6373_v29, %v6373_v29  ;;  %v6400_v15 = vcombine.high %v6370_v4, %v6370_v4  ;;  %v6403_v21 = vrot.slane %v1577_v34, %v5651_v7  ;;  %v1406_v31 = vmin.f32 %v1383_v63, 6.0 }
 0x131   : > { %8872 = vst [vmem:[#allocation82_spill] sm:$0xff] %v6384_v28  ;;  %8873 = vst [vmem:[#allocation83_spill] sm:$0xff] %v6391_v17  ;;  %v6407_v54 = vcombine.high %v6391_v17, %v6391_v17  ;;  %v6411_v51 = vcombine.high %v6379_v25, %v6379_v25  ;;  %v1404_v10 = vmin.f32 %v1381_v52, 6.0  ;;  %v1335_v50 = vadd.f32 %v5392_v39, %v5864_v16 }
 0x132   : > { %8874 = vst [vmem:[#allocation84_spill] sm:$0xff] %v6400_v15  ;;  %8875 = vst [vmem:[#allocation85_spill] sm:$0xff] %v6403_v21  ;;  %v1628_v9 = vcombine.high %v1406_v31, %v1406_v31  ;;  %v6415_v4 = vrot.slane %v1406_v31, %v5651_v7  ;;  %v1327_v34 = vadd.f32 %v5864_v16, %v1326_v53 }
 0x133   : > { %8876 = vst [vmem:[#allocation86_spill] sm:$0xff] %v6407_v54  ;;  %8877 = vst [vmem:[#allocation87_spill] sm:$0xff] %v6411_v51  ;;  %v1338_v63 = vadd.f32 %v5393_v41, %v5864_v16  ;;  %v6421_v15 = vmul.f32 %v5837_v62, %v6407_v54  ;;  %v1594_v17 = vcombine.high %v1404_v10, %v1404_v10 }
 0x134   : > { %8878 = vst [vmem:[#allocation88_spill] sm:$0xff] %v6415_v4  ;;  %v6424_v28 = vrot.slane %v1404_v10, %v5651_v7  ;;  %v1330_v52 = vadd.f32 %v5864_v16, %v1329_v26  ;;  %v6428_v39 = vrot.slane %v1628_v9, %v5651_v7  ;;  %v6432_v31 = vcombine.high %v6415_v4, %v6415_v4 }
 0x135   : > { %8879 = vst [vmem:[#allocation89_spill] sm:$0xff] %v6421_v15  ;;  %v1981_v53 = vmul.f32 %v5879_v23, %v6407_v54  ;;  %v2161_v41 = vmul.f32 %v5840_v2, %v6415_v4  ;;  %v6441_v10 = vmul.f32 %v8850_v61, %v6415_v4  ;;  %v6444_v26 = vrot.slane %v1594_v17, %v5651_v7 }
 0x136   : > { %8880 = vst [vmem:[#allocation90_spill] sm:$0xff] %v6424_v28  ;;  %8881 = vst [vmem:[#allocation91_spill] sm:$0xff] %v6428_v39  ;;  %v6448_v9 = vcombine.high %v6424_v28, %v6424_v28  ;;  %v2654_v25 = vmul.f32 %v5852_v12, %v6415_v4  ;;  %v2153_v51 = vmul.f32 %v8854_v36, %v6424_v28  ;;  %v8887_v45 = vrot.slane %v6421_v15, 7 }
 0x137   : > { %8882 = vst [vmem:[#allocation92_spill] sm:$0xff] %v6432_v31  ;;  %8883 = vst [vmem:[#allocation93_spill] sm:$0xff] %v6441_v10  ;;  %v6452_v31 = vcombine.high %v6428_v39, %v6428_v39  ;;  %v2384_v54 = vrot.slane %v2161_v41, 7  ;;  %v1974_v60 = vmul.f32 %v5800_v33, %v6424_v28  ;;  %v6467_v41 = vcombine.high %v6444_v26, %v6444_v26 }
 0x138   : > { %8884 = vst [vmem:[#allocation94_spill] sm:$0xff] %v6444_v26  ;;  %8885 = vst [vmem:[#allocation95_spill] sm:$0xff] %v6448_v9  ;;  %v2383_v22 = vrot.slane %v8887_v45, 2  ;;  %v2154_v59 = vmul.f32 %v8855_v55, %v6448_v9  ;;  %v6471_v39 = vmul.f32 %v8860_v56, %v6424_v28  ;;  %v1386_v4 = vmax.f32 %v1335_v50, 0.0 }
 0x139   : > { %8886 = vst [vmem:[#allocation96_spill] sm:$0xff] %v6452_v31  ;;  %8888 = vst [vmem:[#allocation97_spill] sm:$0xff] %v6467_v41  ;;  %v5319_v31 = vrot.slane %v2153_v51, 9  ;;  %v1384_v15 = vmax.f32 %v1327_v34, 0.0  ;;  %v1387_v10 = vmax.f32 %v1338_v63, 0.0  ;;  %v6477_v9 = vmul.f32 %v8857_v44, %v6424_v28  ;;  %v8946_v28 = vld [vmem:[#allocation26_spill] sm:$0xff] }
 0x13a   : > { %8889 = vst [vmem:[#allocation98_spill] sm:$0xff] %v6471_v39  ;;  %v2385_v45 = vsel %vm5804_vm8, %v2383_v22, %v2384_v54  ;;  %v2363_v17 = vrot.slane %v2154_v59, 7  ;;  %v1409_v26 = vmin.f32 %v1386_v4, 6.0  ;;  %v1385_v41 = vmax.f32 %v1330_v52, 0.0 }
 0x13b   : > { %v2564_v35 = vadd.f32 %v2385_v45, %v1981_v53  ;;  %8890 = vst [vmem:[#allocation99_spill] sm:$0xff] %v6477_v9  ;;  %v1407_v50 = vmin.f32 %v1384_v15, 6.0  ;;  %v1410_v21 = vmin.f32 %v1387_v10, 6.0  ;;  %v8898_v15 = vld [vmem:[#allocation59_spill] sm:$0xff] }
 0x13c   : > { %v2364_v51 = vsel %vm5804_vm8, %v5319_v31, %v2363_v17  ;;  %v6484_v54 = vrot.slane %v2363_v17, 2  ;;  %v1679_v59 = vcombine.high %v1409_v26, %v1409_v26  ;;  %v6487_v22 = vrot.slane %v1409_v26, %v5651_v7  ;;  %v1342_v31 = vpop.f32.mrf.mxu0 }
 0x13d   : > { %v6482_v3 = vadd.f32 %v2654_v25, %v2564_v35  ;;  %v1645_v34 = vcombine.high %v1407_v50, %v1407_v50  ;;  %v6490_v63 = vrot.slane %v1407_v50, %v5651_v7  ;;  %v1696_v4 = vcombine.high %v1410_v21, %v1410_v21 }
 0x13e   : > { %8892 = vst [vmem:[#allocation101_spill] sm:$0xff] %v6484_v54  ;;  %8893 = vst [vmem:[#allocation102_spill] sm:$0xff] %v6487_v22  ;;  %v6493_v52 = vrot.slane %v1410_v21, %v5651_v7  ;;  %v6495_v53 = vadd.f32 %v2364_v51, %v1974_v60  ;;  %v6498_v35 = vrot.slane %v1679_v59, %v5651_v7  ;;  %v1408_v25 = vmin.f32 %v1385_v41, 6.0  ;;  %v5397_v8 = vpop.f32.mrf.mxu0  ;;  %v8917_v54 = vld [vmem:[#allocation38_spill] sm:$0xff] }
 0x13f   : > { %8891 = vst [vmem:[#allocation100_spill] sm:$0xff] %v6482_v3  ;;  %8894 = vst [vmem:[#allocation103_spill] sm:$0xff] %v6490_v63  ;;  %v1367_v10 = vadd.f32 %v8898_v15, %v5864_v16  ;;  %v6504_v26 = vcombine.high %v6487_v22, %v6487_v22  ;;  %v6507_v17 = vrot.slane %v1645_v34, %v5651_v7 }
 0x140   : > { %8895 = vst [vmem:[#allocation104_spill] sm:$0xff] %v6493_v52  ;;  %8896 = vst [vmem:[#allocation105_spill] sm:$0xff] %v6495_v53  ;;  %v6511_v21 = vcombine.high %v6490_v63, %v6490_v63  ;;  %v6514_v60 = vrot.slane %v1696_v4, %v5651_v7  ;;  %v6518_v41 = vcombine.high %v6498_v35, %v6498_v35 }
 0x141   : > { %8897 = vst [vmem:[#allocation106_spill] sm:$0xff] %v6498_v35  ;;  %8899 = vst [vmem:[#allocation59_spill] sm:$0xff] %v6504_v26  ;;  %v6522_v45 = vcombine.high %v6493_v52, %v6493_v52  ;;  %v1662_v51 = vcombine.high %v1408_v25, %v1408_v25  ;;  %v1394_v50 = vmax.f32 %v1367_v10, 0.0  ;;  %v6526_v59 = vcombine.high %v6507_v17, %v6507_v17  ;;  %v8912_v26 = vld [vmem:[#allocation60_spill] sm:$0xff] }
 0x142   : > { %8900 = vst [vmem:[#allocation107_spill] sm:$0xff] %v6507_v17  ;;  %8901 = vst [vmem:[#allocation108_spill] sm:$0xff] %v6511_v21  ;;  %v6530_v34 = vcombine.high %v6514_v60, %v6514_v60  ;;  %v6534_v4 = vmul.f32 %v5840_v2, %v6514_v60  ;;  %v6537_v15 = vrot.slane %v1408_v25, %v5651_v7 }
 0x143   : > { %8902 = vst [vmem:[#allocation109_spill] sm:$0xff] %v6514_v60  ;;  %8903 = vst [vmem:[#allocation110_spill] sm:$0xff] %v6518_v41  ;;  %v6544_v10 = vrot.slane %v1662_v51, %v5651_v7  ;;  %v1417_v52 = vmin.f32 %v1394_v50, 6.0  ;;  %v1351_v41 = vadd.f32 %v5396_v1, %v5864_v16  ;;  %v6550_v35 = vmul.f32 %v5852_v12, %v6514_v60 }
 0x144   : > { %8904 = vst [vmem:[#allocation111_spill] sm:$0xff] %v6522_v45  ;;  %8905 = vst [vmem:[#allocation112_spill] sm:$0xff] %v6526_v59  ;;  %v6541_v45 = vmul.f32 %v8850_v61, %v6514_v60  ;;  %v1359_v25 = vadd.f32 %v5864_v16, %v8912_v26  ;;  %v1343_v22 = vadd.f32 %v5864_v16, %v1342_v31  ;;  %v8924_v60 = vld [vmem:[#allocation40_spill] sm:$0xff] }
 0x145   : > { %8906 = vst [vmem:[#allocation113_spill] sm:$0xff] %v6530_v34  ;;  %8907 = vst [vmem:[#allocation114_spill] sm:$0xff] %v6534_v4  ;;  %v6558_v51 = vcombine.high %v6544_v10, %v6544_v10  ;;  %v2171_v1 = vmul.f32 %v8854_v36, %v6544_v10  ;;  %v6563_v50 = vadd.f32 %v5397_v8, %v5864_v16  ;;  %v1390_v3 = vmax.f32 %v1351_v41, 0.0  ;;  %v8919_v41 = vld [vmem:[#allocation36_spill] sm:$0xff] }
 0x146   : > { %8908 = vst [vmem:[#allocation115_spill] sm:$0xff] %v6537_v15  ;;  %8909 = vst [vmem:[#allocation116_spill] sm:$0xff] %v6541_v45  ;;  %v1990_v34 = vmul.f32 %v5800_v33, %v6544_v10  ;;  %v6569_v26 = vmul.f32 %v8860_v56, %v6544_v10  ;;  %v1821_v31 = vrot.slane %v1417_v52, %v5651_v7  ;;  %v1392_v8 = vmax.f32 %v1359_v25, 0.0 }
 0x147   : > { %8910 = vst [vmem:[#allocation117_spill] sm:$0xff] %v6544_v10  ;;  %8911 = vst [vmem:[#allocation118_spill] sm:$0xff] %v6550_v35  ;;  %v6574_v35 = vmul.f32 %v8855_v55, %v6558_v51  ;;  %v5321_v4 = vrot.slane %v2171_v1, 9  ;;  %v6578_v45 = vmul.f32 %v8857_v44, %v6544_v10  ;;  %v1388_v17 = vmax.f32 %v1343_v22, 0.0  ;;  %v8921_v1 = vld [vmem:[#allocation39_spill] sm:$0xff] }
 0x148   : > { %8913 = vst [vmem:[#allocation60_spill] sm:$0xff] %v6558_v51  ;;  %8914 = vst [vmem:[#allocation119_spill] sm:$0xff] %v6569_v26  ;;  %v1822_v53 = vcombine.high %v1821_v31, %v1821_v31  ;;  %v6582_v59 = vmul.f32 %v8917_v54, %v1821_v31  ;;  %v6586_v21 = vmul.f32 %v8919_v41, %v1821_v31  ;;  %v1413_v51 = vmin.f32 %v1390_v3, 6.0 }
 0x149   : > { %8915 = vst [vmem:[#allocation120_spill] sm:$0xff] %v6574_v35  ;;  %8916 = vst [vmem:[#allocation121_spill] sm:$0xff] %v6578_v45  ;;  %v8584_v52 = vrot.slane %v6574_v35, 7  ;;  %v1415_v63 = vmin.f32 %v1392_v8, 6.0  ;;  %v8922_v45 = vld [vmem:[#allocation32_spill] sm:$0xff] }
 0x14a   : > { %8918 = vst [vmem:[#allocation122_spill] sm:$0xff] %v6582_v59  ;;  %8920 = vst [vmem:[#allocation123_spill] sm:$0xff] %v6586_v21  ;;  %v3828_v39 = vmul.f32 %v8921_v1, %v1822_v53  ;;  %v8585_v10 = vrot.slane %v6582_v59, 7  ;;  %v6591_v25 = vmul.f32 %v8922_v45, %v1821_v31  ;;  %v6594_v26 = vmul.f32 %v8924_v60, %v1822_v53 }
 0x14b   : > { %v2414_v22 = vsel %vm5804_vm8, %v5321_v4, %v8584_v52  ;;  %v1747_v9 = vcombine.high %v1413_v51, %v1413_v51  ;;  %v1754_v21 = vrot.slane %v1413_v51, %v5651_v7  ;;  %v1781_v3 = vcombine.high %v1415_v63, %v1415_v63 }
 0x14c   : > { %8923 = vst [vmem:[#allocation32_spill] sm:$0xff] %v6591_v25  ;;  %8925 = vst [vmem:[#allocation40_spill] sm:$0xff] %v6594_v26  ;;  %v4098_v8 = vrot.slane %v8585_v10, 2  ;;  %v4099_v2 = vrot.slane %v3828_v39, 7  ;;  %v1788_v36 = vrot.slane %v1415_v63, %v5651_v7  ;;  %v1411_v31 = vmin.f32 %v1388_v17, 6.0  ;;  %v8931_v39 = vld [vmem:[#allocation27_spill] sm:$0xff] }
 0x14d   : > { %v6604_v25 = vadd.f32 %v2414_v22, %v1990_v34  ;;  %v6607_v53 = vrot.slane %v1747_v9, %v5651_v7  ;;  %v6609_v26 = vcombine.high %v1754_v21, %v1754_v21  ;;  %v3000_v4 = vmul.f32 %v8860_v56, %v1754_v21  ;;  %v8933_v9 = vld [vmem:[#allocation21_spill] sm:$0xff]  ;;  %v8934_v22 = vld [vmem:[#allocation35_spill] sm:$0xff] }
 0x14e   : > { %v6614_v51 = vsel %vm5804_vm8, %v4098_v8, %v4099_v2  ;;  %v6617_v52 = vmul.f32 %v8857_v44, %v1754_v21  ;;  %v3811_v10 = vmul.f32 %v8931_v39, %v1754_v21  ;;  %v1795_v63 = vrot.slane %v1781_v3, %v5651_v7  ;;  %v8936_v2 = vld [vmem:[#allocation42_spill] sm:$0xff] }
 0x14f   : > { %8926 = vst [vmem:[#allocation124_spill] sm:$0xff] %v6604_v25  ;;  %8927 = vst [vmem:[#allocation125_spill] sm:$0xff] %v6607_v53  ;;  %v6623_v17 = vcombine.high %v6607_v53, %v6607_v53  ;;  %v3001_v34 = vmul.f32 %v8933_v9, %v6609_v26  ;;  %v6628_v59 = vmul.f32 %v8934_v22, %v1754_v21 }
 0x150   : > { %8928 = vst [vmem:[#allocation126_spill] sm:$0xff] %v6609_v26  ;;  %8929 = vst [vmem:[#allocation127_spill] sm:$0xff] %v6614_v51  ;;  %v6632_v8 = vmul.f32 %v8936_v2, %v6609_v26  ;;  %v5330_v51 = vrot.slane %v3000_v4, 9  ;;  %v1797_v25 = vcombine.high %v1795_v63, %v1795_v63  ;;  %v6635_v35 = vmul.f32 %v8850_v61, %v1788_v36  ;;  %v8941_v26 = vld [vmem:[#allocation43_spill] sm:$0xff] }
 0x151   : > { %8930 = vst [vmem:[#allocation128_spill] sm:$0xff] %v6617_v52  ;;  %8932 = vst [vmem:[#allocation129_spill] sm:$0xff] %v6623_v17  ;;  %v1796_v52 = vcombine.high %v1788_v36, %v1788_v36  ;;  %v3258_v3 = vrot.slane %v3001_v34, 7  ;;  %v5337_v15 = vrot.slane %v3811_v10, 9  ;;  %v6639_v56 = vmul.f32 %v5925_v47, %v1788_v36 }
 0x152   : > { %8935 = vst [vmem:[#allocation130_spill] sm:$0xff] %v6628_v59  ;;  %8937 = vst [vmem:[#allocation131_spill] sm:$0xff] %v6632_v8  ;;  %v6646_v55 = vmul.f32 %v8941_v26, %v1795_v63  ;;  %v6649_v4 = vmul.f32 %v8921_v1, %v1788_v36  ;;  %v6658_v9 = vmul.f32 %v8946_v28, %v1797_v25  ;;  %v8951_v1 = vld [vmem:[#allocation31_spill] sm:$0xff] }
 0x153   : > { %8938 = vst [vmem:[#allocation132_spill] sm:$0xff] %v6635_v35  ;;  %8939 = vst [vmem:[#allocation133_spill] sm:$0xff] %v6639_v56  ;;  %v6643_v59 = vmul.f32 %v8934_v22, %v1796_v52  ;;  %v6653_v34 = vsel %vm5804_vm8, %v5330_v51, %v3258_v3  ;;  %v6655_v10 = vrot.slane %v3258_v3, 2  ;;  %v3820_v21 = vmul.f32 %v8931_v39, %v1796_v52  ;;  %v8949_v35 = vld [vmem:[#allocation37_spill] sm:$0xff] }
 0x154   : > { %8942 = vst [vmem:[#allocation135_spill] sm:$0xff] %v6646_v55  ;;  %8943 = vst [vmem:[#allocation136_spill] sm:$0xff] %v6649_v4  ;;  %v8947_v56 = vrot.slane %v6632_v8, 7  ;;  %v3821_v55 = vmul.f32 %v8936_v2, %v1795_v63  ;;  %v3822_v33 = vmul.f32 %v8949_v35, %v1797_v25  ;;  %v6674_v57 = vmul.f32 %v8951_v1, %v1795_v63 }
 0x155   : > { %8940 = vst [vmem:[#allocation134_spill] sm:$0xff] %v6643_v59  ;;  %8944 = vst [vmem:[#allocation137_spill] sm:$0xff] %v6653_v34  ;;  %v1361_v34 = vpop.f32.mrf.mxu1  ;;  %v5338_v3 = vrot.slane %v3820_v21, 9  ;;  %v1713_v52 = vcombine.high %v1411_v31, %v1411_v31  ;;  %v2827_v63 = vmul.f32 %v8858_v18, %v6607_v53 }
 0x156   : > { %8945 = vst [vmem:[#allocation138_spill] sm:$0xff] %v6655_v10  ;;  %v6665_v59 = vsel %vm5804_vm8, %v5337_v15, %v8947_v56  ;;  %v6671_v10 = vmul.f32 %v8924_v60, %v1788_v36  ;;  %8952 = vst [vmem:[#allocation31_spill] sm:$0xff] %v6674_v57  ;;  %v4078_v8 = vrot.slane %v3821_v55, 7  ;;  %v4081_v39 = vrot.slane %v3822_v33, 7 }
 0x157   : > { %8948 = vst [vmem:[#allocation139_spill] sm:$0xff] %v6665_v59  ;;  %v6677_v56 = vrot.slane %v1411_v31, %v5651_v7  ;;  %v1391_v15 = vmax.f32 %v6563_v50, 0.0  ;;  %v8954_v59 = vld [vmem:[#allocation41_spill] sm:$0xff]  ;;  %v6684_v51 = vrot.slane %v1713_v52, %v5651_v7  ;;  %v1362_v36 = vadd.f32 %v5864_v16, %v1361_v34  ;;  %v8961_v52 = vld [vmem:[#allocation10_spill] sm:$0xff] }
 0x158   : > { %8950 = vst [vmem:[#allocation140_spill] sm:$0xff] %v6671_v10  ;;  %v6681_v32 = vmul.f32 %v8954_v59, %v1797_v25  ;;  %v6691_v55 = vsel %vm5804_vm8, %v5338_v3, %v4078_v8  ;;  %v4080_v33 = vrot.slane %v4078_v8, 2  ;;  %v2828_v50 = vmul.f32 %v5901_v5, %v6623_v17 }
 0x159   : > { %8953 = vst [vmem:[#allocation141_spill] sm:$0xff] %v6677_v56  ;;  %8956 = vst [vmem:[#allocation142_spill] sm:$0xff] %v6684_v51  ;;  %v6695_v31 = vcombine.high %v6677_v56, %v6677_v56  ;;  %v6699_v25 = vrot.slane %v4081_v39, 2  ;;  %v6703_v16 = vcombine.high %v6684_v51, %v6684_v51  ;;  %v1414_v21 = vmin.f32 %v1391_v15, 6.0 }
 0x15a   : > { %8955 = vst [vmem:[#allocation41_spill] sm:$0xff] %v6681_v32  ;;  %8957 = vst [vmem:[#allocation143_spill] sm:$0xff] %v6691_v55  ;;  %v1393_v34 = vmax.f32 %v1362_v36, 0.0  ;;  %v6707_v3 = vsel %vm5804_vm8, %v4080_v33, %v4081_v39  ;;  %v2001_v8 = vmul.f32 %v5879_v23, %v6684_v51  ;;  %v2183_v57 = vmul.f32 %v5837_v62, %v6684_v51  ;;  %v8964_v36 = vld [vmem:[#allocation28_spill] sm:$0xff] }
 0x15b   : > { %8958 = vst [vmem:[#allocation144_spill] sm:$0xff] %v6695_v31  ;;  %8959 = vst [vmem:[#allocation145_spill] sm:$0xff] %v6703_v16  ;;  %v6713_v32 = vmul.f32 %v8961_v52, %v6695_v31  ;;  %v1764_v55 = vcombine.high %v1414_v21, %v1414_v21  ;;  %v6718_v10 = vrot.slane %v1414_v21, %v5651_v7 }
 0x15c   : > { %8960 = vst [vmem:[#allocation146_spill] sm:$0xff] %v6707_v3  ;;  %v1416_v15 = vmin.f32 %v1393_v34, 6.0  ;;  %v2184_v4 = vmul.f32 %v8964_v36, %v6703_v16  ;;  %v2000_v39 = vmul.f32 %v5810_v42, %v6695_v31  ;;  %v2444_v3 = vrot.slane %v2183_v57, 7 }
 0x15d   : > { %8962 = vst [vmem:[#allocation147_spill] sm:$0xff] %v6713_v32  ;;  %8963 = vst [vmem:[#allocation148_spill] sm:$0xff] %v6718_v10  ;;  %v8620_v33 = vrot.slane %v6713_v32, 7  ;;  %v2673_v56 = vmul.f32 %v5830_v58, %v6684_v51  ;;  %v6728_v52 = vrot.slane %v1764_v55, %v5651_v7  ;;  %v6732_v21 = vcombine.high %v6718_v10, %v6718_v10 }
 0x15e   : > { %v1798_v34 = vcombine.high %v1416_v15, %v1416_v15  ;;  %v2674_v62 = vmul.f32 %v5852_v12, %v6703_v16  ;;  %v1805_v23 = vrot.slane %v1416_v15, %v5651_v7  ;;  %v2446_v57 = vrot.slane %v2444_v3, 2 }
 0x15f   : > { %8965 = vst [vmem:[#allocation149_spill] sm:$0xff] %v6728_v52  ;;  %8966 = vst [vmem:[#allocation150_spill] sm:$0xff] %v6732_v21  ;;  %v2443_v31 = vrot.slane %v8620_v33, 2  ;;  %v2447_v42 = vrot.slane %v2184_v4, 7  ;;  %v6741_v51 = vcombine.high %v6728_v52, %v6728_v52  ;;  %v6745_v55 = vmul.f32 %v8857_v44, %v6718_v10  ;;  %v8969_v21 = vld [vmem:[#allocation25_spill] sm:$0xff] }
 0x160   : > { %v6749_v58 = vmul.f32 %v8969_v21, %v6728_v52  ;;  %v1812_v16 = vrot.slane %v1798_v34, %v5651_v7  ;;  %v6754_v15 = vmul.f32 %v8858_v18, %v6728_v52  ;;  %v1813_v33 = vcombine.high %v1805_v23, %v1805_v23  ;;  %v8974_v52 = vld [vmem:[#allocation33_spill] sm:$0xff] }
 0x161   : > { %8967 = vst [vmem:[#allocation151_spill] sm:$0xff] %v6741_v51  ;;  %8968 = vst [vmem:[#allocation152_spill] sm:$0xff] %v6745_v55  ;;  %v2445_v4 = vsel %vm5804_vm8, %v2443_v31, %v2444_v3  ;;  %v2448_v32 = vsel %vm5804_vm8, %v2446_v57, %v2447_v42  ;;  %v6761_v55 = vrot.slane %v2447_v42, 2  ;;  %v6765_v34 = vmul.f32 %v8969_v21, %v6607_v53  ;;  %v8975_v57 = vld [vmem:[#allocation20_spill] sm:$0xff] }
 0x162   : > { %8970 = vst [vmem:[#allocation153_spill] sm:$0xff] %v6749_v58  ;;  %8971 = vst [vmem:[#allocation154_spill] sm:$0xff] %v6754_v15  ;;  %v2583_v44 = vadd.f32 %v2445_v4, %v2000_v39  ;;  %v2584_v5 = vadd.f32 %v2448_v32, %v2001_v8  ;;  %v1814_v12 = vcombine.high %v1812_v16, %v1812_v16 }
 0x163   : > { %8972 = vst [vmem:[#allocation155_spill] sm:$0xff] %v6761_v55  ;;  %8973 = vst [vmem:[#allocation156_spill] sm:$0xff] %v6765_v34  ;;  %v3003_v15 = vmul.f32 %v8859_v30, %v6623_v17  ;;  %v3004_v31 = vmul.f32 %v8974_v52, %v6718_v10  ;;  %v3493_v51 = vmul.f32 %v8975_v57, %v6623_v17  ;;  %v8637_v32 = vrot.slane %v6765_v34, 7 }
 0x164   : > { %v2737_v3 = vadd.f32 %v2673_v56, %v2583_v44  ;;  %v2738_v18 = vadd.f32 %v2674_v62, %v2584_v5  ;;  %v3494_v42 = vmul.f32 %v5925_v47, %v6718_v10  ;;  %v3648_v4 = vmul.f32 %v8919_v41, %v1805_v23  ;;  %v8980_v10 = vld [vmem:[#allocation44_spill] sm:$0xff] }
 0x165   : > { %v3264_v8 = vrot.slane %v3003_v15, 7  ;;  %v3267_v39 = vrot.slane %v3004_v31, 7  ;;  %v6778_v53 = vmul.f32 %v8934_v22, %v1813_v33  ;;  %v6781_v44 = vmul.f32 %v8941_v26, %v1812_v16 }
 0x166   : > { %v2891_v58 = vadd.f32 %v2827_v63, %v2737_v3  ;;  %v2892_v55 = vadd.f32 %v2828_v50, %v2738_v18  ;;  %v3263_v62 = vrot.slane %v8637_v32, 2  ;;  %v6786_v56 = vmul.f32 %v8946_v28, %v1814_v12 }
 0x167   : > { %8976 = vst [vmem:[#allocation157_spill] sm:$0xff] %v6778_v53  ;;  %8977 = vst [vmem:[#allocation158_spill] sm:$0xff] %v6781_v44  ;;  %v3266_v5 = vrot.slane %v3264_v8, 2  ;;  %v3823_v15 = vmul.f32 %v8917_v54, %v1805_v23  ;;  %v6789_v31 = vrot.slane %v3267_v39, 2  ;;  %v3824_v63 = vmul.f32 %v8980_v10, %v1813_v33 }
 0x168   : > { %8978 = vst [vmem:[#allocation159_spill] sm:$0xff] %v6786_v56  ;;  %v3825_v18 = vmul.f32 %v8936_v2, %v1812_v16  ;;  %v3826_v50 = vmul.f32 %v8949_v35, %v1814_v12  ;;  %v3265_v3 = vsel %vm5804_vm8, %v3263_v62, %v3264_v8  ;;  %v4313_v53 = vmul.f32 %v8922_v45, %v1805_v23 }
 0x169   : > { %8979 = vst [vmem:[#allocation160_spill] sm:$0xff] %v6789_v31  ;;  %v3268_v32 = vsel %vm5804_vm8, %v3266_v5, %v3267_v39  ;;  %v4084_v44 = vrot.slane %v3823_v15, 7  ;;  %v3403_v56 = vadd.f32 %v3265_v3, %v2891_v58  ;;  %v4087_v17 = vrot.slane %v3824_v63, 7  ;;  %v1345_v31 = vpop.f32.mrf.mxu0  ;;  %v5489_v58 = vld [vmem:[%s8448_s5 + $0x8] ss:$0 sps:$4 sm:$0xff]   ;;  %v8988_v63 = vld [vmem:[#allocation49_spill] sm:$0xff] }
 0x16a   : > { %v3404_v34 = vadd.f32 %v3268_v32, %v2892_v55  ;;  %v4090_v52 = vrot.slane %v3825_v18, 7  ;;  %v4093_v36 = vrot.slane %v3826_v50, 7  ;;  %v4314_v10 = vmul.f32 %v8924_v60, %v1813_v33  ;;  %5426 = vmatprep.subr.msk.bf16.mxu1 %vm5006_vm9, %v5489_v58  ;;  %v8990_v3 = vld [vmem:[#allocation48_spill] sm:$0xff] }
 0x16b   : > { %v4085_v30 = vsel %vm5804_vm8, %v6699_v25, %v4084_v44  ;;  %v4086_v21 = vrot.slane %v4084_v44, 2  ;;  %v3557_v8 = vadd.f32 %v3493_v51, %v3403_v56  ;;  %v4089_v54 = vrot.slane %v4087_v17, 2  ;;  %v5491_v25 = vld [vmem:[%s8445_s2] ss:$0 sm:$0xff] }
 0x16c   : > { %v3558_v62 = vadd.f32 %v3494_v42, %v3404_v34  ;;  %v6804_v39 = vmul.f32 %v8951_v1, %v1812_v16  ;;  %v4092_v55 = vrot.slane %v4090_v52, 2  ;;  %v6811_v32 = vrot.slane %v4093_v36, 2 }
 0x16d   : > { %v4088_v23 = vsel %vm5804_vm8, %v4086_v21, %v4087_v17  ;;  %v1346_v51 = vadd.f32 %v5491_v25, %v1345_v31  ;;  %v3711_v33 = vadd.f32 %v6658_v9, %v3557_v8  ;;  %v6819_v16 = vsel %vm5804_vm8, %v4089_v54, %v4090_v52  ;;  %v5490_v17 = vld [vmem:[%s8448_s5] sm:$0xff]  }
 0x16e   : > { %8981 = vst [vmem:[#allocation161_spill] sm:$0xff] %v6804_v39  ;;  %8982 = vst [vmem:[#allocation162_spill] sm:$0xff] %v6811_v32  ;;  %v3712_v34 = vadd.f32 %v3648_v4, %v3558_v62  ;;  %v6822_v42 = vmul.f32 %v8954_v59, %v1814_v12  ;;  %v2840_v44 = vadd.f32 %v6289_v13, %v6198_v37  ;;  %v5008_v54 = vsel %vm5006_vm9, %v5489_v58, 0  ;;  %v8986_v12 = vld [vmem:[#allocation50_spill] sm:$0xff]  ;;  %v9014_v32 = vld [vmem:[#allocation17_spill] sm:$0xff] }
 0x16f   : > { %8983 = vst [vmem:[#allocation163_spill] sm:$0xff] %v6819_v16  ;;  %v1389_v21 = vmax.f32 %v1346_v51, 0.0  ;;  %v2945_v9 = vmul.f32 %v8850_v61, %v6261_v46  ;;  %v4223_v4 = vadd.f32 %v4085_v30, %v3711_v33  ;;  %v8985_v52 = vrot.slane %v6148_v6, 7  ;;  %5403 = vmatpush3.bf16.msra.mxu1 %v5008_v54 }
 0x170   : > { %8984 = vst [vmem:[#allocation164_spill] sm:$0xff] %v6822_v42  ;;  %v4224_v5 = vadd.f32 %v4088_v23, %v3712_v34  ;;  %v8987_v31 = vrot.slane %v6326_v11, 7  ;;  %v6844_v18 = vsel %vm5804_vm8, %v4092_v55, %v4093_v36  ;;  %5404 = vmatprep.subr.bf16.mxu1 %v5490_v17  ;;  %v3437_v8 = vmul.f32 %v8975_v57, %v8990_v3  ;;  %v8993_v55 = vld [vmem:[#allocation45_spill] sm:$0xff]  ;;  %v9002_v3 = vld [vmem:[#allocation27_spill] sm:$0xff] }
 0x171   : > { %v3090_v56 = vsel %vm5804_vm8, %v8986_v12, %v8985_v52  ;;  %v1412_v15 = vmin.f32 %v1389_v21, 6.0  ;;  %v3104_v13 = vrot.slane %v2945_v9, 7  ;;  %8989 = vst [vmem:[#allocation50_spill] sm:$0xff] %v6844_v18  ;;  %v4377_v6 = vadd.f32 %v4313_v53, %v4223_v4  ;;  %v8996_v9 = vld [vmem:[#allocation66_spill] sm:$0xff]  ;;  %v8998_v52 = vld [vmem:[#allocation56_spill] sm:$0xff] }
 0x172   : > { %v3102_v37 = vsel %vm5804_vm8, %v6215_v49, %v8987_v31  ;;  %v3347_v30 = vadd.f32 %v3090_v56, %v8988_v63  ;;  %v6849_v62 = vadd.f32 %v4314_v10, %v4224_v5  ;;  %v3441_v58 = vmul.f32 %v8975_v57, %v6246_v48  ;;  %v8997_v5 = vld [vmem:[#allocation54_spill] sm:$0xff]  ;;  %v9001_v63 = vld [vmem:[#allocation64_spill] sm:$0xff] }
 0x173   : > { %v3351_v50 = vadd.f32 %v3102_v37, %v6207_v43  ;;  %v1730_v11 = vcombine.high %v1412_v15, %v1412_v15  ;;  %v3105_v49 = vsel %vm5804_vm8, %v6361_v24, %v3104_v13  ;;  %v6857_v36 = vrot.slane %v1412_v15, %v5651_v7  ;;  %5405 = vmatpush3.bf16.msra.mxu1 %v5490_v17  ;;  %v8999_v15 = vld [vmem:[#allocation62_spill] sm:$0xff]  ;;  %v9000_v37 = vld [vmem:[#allocation63_spill] sm:$0xff] }
 0x174   : > { %8991 = vst [vmem:[#allocation49_spill] sm:$0xff] %v6849_v62  ;;  %v3352_v53 = vadd.f32 %v3105_v49, %v2840_v44  ;;  %v3442_v43 = vmul.f32 %v5925_v47, %v6261_v46  ;;  %v3501_v23 = vadd.f32 %v3437_v8, %v3347_v30  ;;  %v6862_v25 = vadd.f32 %v8993_v55, %v4377_v6 }
 0x175   : > { %8992 = vst [vmem:[#allocation48_spill] sm:$0xff] %v6857_v36  ;;  %v6865_v10 = vrot.slane %v1730_v11, %v5651_v7  ;;  %v3505_v51 = vadd.f32 %v3441_v58, %v3351_v50  ;;  %v3589_v24 = vmul.f32 %v8934_v22, %v6257_v14  ;;  %v3590_v33 = vmul.f32 %v8941_v26, %v6301_v27  ;;  %v9003_v58 = vld [vmem:[#allocation38_spill] sm:$0xff] }
 0x176   : > { %8994 = vst [vmem:[#allocation165_spill] sm:$0xff] %v6862_v25  ;;  %v3506_v48 = vadd.f32 %v3442_v43, %v3352_v53  ;;  %v3591_v34 = vmul.f32 %v8946_v28, %v6364_v0  ;;  %v3592_v46 = vmul.f32 %v8919_v41, %v6388_v20  ;;  %v3593_v21 = vmul.f32 %v8934_v22, %v6373_v29  ;;  %v9004_v43 = vld [vmem:[#allocation44_spill] sm:$0xff] }
 0x177   : > { %8995 = vst [vmem:[#allocation166_spill] sm:$0xff] %v6865_v10  ;;  %v3594_v17 = vmul.f32 %v8941_v26, %v6396_v40  ;;  %v3595_v44 = vmul.f32 %v8946_v28, %v6243_v19  ;;  %v3596_v4 = vmul.f32 %v8919_v41, %v8996_v9  ;;  %v3653_v54 = vadd.f32 %v3589_v24, %v8997_v5  ;;  %v9025_v10 = vld [vmem:[#allocation55_spill] sm:$0xff] }
 0x178   : > { %v3654_v12 = vadd.f32 %v3590_v33, %v8998_v52  ;;  %v3655_v56 = vadd.f32 %v3591_v34, %v3501_v23  ;;  %v3656_v31 = vadd.f32 %v3592_v46, %v8999_v15  ;;  %v3657_v13 = vadd.f32 %v3593_v21, %v9000_v37  ;;  %v9006_v33 = vld [vmem:[#allocation39_spill] sm:$0xff] }
 0x179   : > { %v3658_v30 = vadd.f32 %v3594_v17, %v9001_v63  ;;  %v3659_v6 = vadd.f32 %v3595_v44, %v3505_v51  ;;  %v3660_v50 = vadd.f32 %v3596_v4, %v3506_v48  ;;  %v3757_v8 = vmul.f32 %v9002_v3, %v6257_v14  ;;  %v9005_v48 = vld [vmem:[#allocation65_spill] sm:$0xff] }
 0x17a   : > { %v3758_v11 = vmul.f32 %v8936_v2, %v6301_v27  ;;  %v3759_v49 = vmul.f32 %v8949_v35, %v6364_v0  ;;  %v3760_v53 = vmul.f32 %v9003_v58, %v6388_v20  ;;  %v3761_v23 = vmul.f32 %v9004_v43, %v6373_v29 }
 0x17b   : > { %v3762_v24 = vmul.f32 %v8936_v2, %v6396_v40  ;;  %v3763_v51 = vmul.f32 %v8949_v35, %v6243_v19  ;;  %v3764_v14 = vmul.f32 %v9003_v58, %v8996_v9  ;;  %v3765_v34 = vmul.f32 %v9006_v33, %v9005_v48 }
 0x17c   : > { %v5331_v46 = vrot.slane %v3757_v8, 9  ;;  %v3903_v21 = vrot.slane %v3758_v11, 7  ;;  %v3906_v17 = vrot.slane %v3759_v49, 7  ;;  %v3909_v44 = vrot.slane %v3760_v53, 7 }
 0x17d   : > { %v3912_v4 = vrot.slane %v3761_v23, 7  ;;  %v3915_v5 = vrot.slane %v3762_v24, 7  ;;  %v3918_v52 = vrot.slane %v3763_v51, 7  ;;  %v3921_v42 = vrot.slane %v3764_v14, 7 }
 0x17e   : > { %v3904_v15 = vsel %vm5804_vm8, %v5331_v46, %v3903_v21  ;;  %v3905_v37 = vrot.slane %v3903_v21, 2  ;;  %v3908_v63 = vrot.slane %v3906_v17, 2  ;;  %v3911_v39 = vrot.slane %v3909_v44, 2 }
 0x17f   : > { %v3914_v18 = vrot.slane %v3912_v4, 2  ;;  %v3917_v16 = vrot.slane %v3915_v5, 2  ;;  %v3920_v25 = vrot.slane %v3918_v52, 2  ;;  %v3923_v11 = vrot.slane %v3921_v42, 2 }
 0x180   : > { %v3907_v62 = vsel %vm5804_vm8, %v3905_v37, %v3906_v17  ;;  %v3910_v8 = vsel %vm5804_vm8, %v3908_v63, %v3909_v44  ;;  %v3924_v49 = vrot.slane %v3765_v34, 7  ;;  %v3913_v53 = vsel %vm5804_vm8, %v3911_v39, %v3912_v4 }
 0x181   : > { %v3916_v23 = vsel %vm5804_vm8, %v3914_v18, %v3915_v5  ;;  %v3919_v24 = vsel %vm5804_vm8, %v3917_v16, %v3918_v52  ;;  %v3922_v51 = vsel %vm5804_vm8, %v3920_v25, %v3921_v42  ;;  %v4165_v46 = vadd.f32 %v3904_v15, %v3653_v54  ;;  %v5492_v15 = vld [vmem:[%s8447_s4] ss:$0 sm:$0xff] }
 0x182   : > { %v3925_v14 = vsel %vm5804_vm8, %v3923_v11, %v3924_v49  ;;  %v4166_v21 = vadd.f32 %v3907_v62, %v3654_v12  ;;  %v4167_v17 = vadd.f32 %v3910_v8, %v3655_v56  ;;  %v4168_v44 = vadd.f32 %v3913_v53, %v3656_v31 }
 0x183   : > { %v4169_v34 = vadd.f32 %v3916_v23, %v3657_v13  ;;  %v4170_v37 = vadd.f32 %v3919_v24, %v3658_v30  ;;  %v4171_v63 = vadd.f32 %v3922_v51, %v3659_v6  ;;  %v4172_v39 = vadd.f32 %v3925_v14, %v3660_v50  ;;  %v9009_v23 = vld [vmem:[#allocation85_spill] sm:$0xff]  ;;  %v9010_v51 = vld [vmem:[#allocation51_spill] sm:$0xff]  ;;  %v9011_v14 = vld [vmem:[#allocation4_spill] sm:$0xff] }
 0x184   : > { %v4255_v18 = vmul.f32 %v8951_v1, %v6301_v27  ;;  %v4256_v16 = vmul.f32 %v8954_v59, %v6364_v0  ;;  %v4257_v42 = vmul.f32 %v8922_v45, %v6388_v20  ;;  %v4258_v25 = vmul.f32 %v8924_v60, %v6373_v29 }
 0x185   : > { %v4259_v62 = vmul.f32 %v8951_v1, %v6396_v40  ;;  %v4260_v54 = vmul.f32 %v8954_v59, %v6243_v19  ;;  %v4261_v12 = vmul.f32 %v8922_v45, %v8996_v9  ;;  %v4262_v56 = vmul.f32 %v8924_v60, %v9005_v48 }
 0x186   : > { %v4319_v31 = vadd.f32 %v4255_v18, %v4165_v46  ;;  %v4320_v13 = vadd.f32 %v4256_v16, %v4166_v21  ;;  %v4321_v30 = vadd.f32 %v4257_v42, %v4167_v17  ;;  %v4322_v6 = vadd.f32 %v4258_v25, %v4168_v44  ;;  %v9013_v18 = vld [vmem:[#allocation28_spill] sm:$0xff] }
 0x187   : > { %v4323_v50 = vadd.f32 %v4259_v62, %v4169_v34  ;;  %v4324_v4 = vadd.f32 %v4260_v54, %v4170_v37  ;;  %v4325_v5 = vadd.f32 %v4261_v12, %v4171_v63  ;;  %v4326_v52 = vadd.f32 %v4262_v56, %v4172_v39 }
 0x188   : > { %v6942_v8 = vrot.slane %v5492_v15, %v5651_v7  ;;  %v6946_v11 = vcombine.high %v8993_v55, %v8993_v55  ;;  %v4412_v48 = vadd.f32 %v8993_v55, %v4321_v30  ;;  %v6951_v49 = vcombine.high %v6857_v36, %v6857_v36 }
 0x189   : > { %v4416_v53 = vadd.f32 %v8993_v55, %v4325_v5  ;;  %v6956_v24 = vcombine.high %v9009_v23, %v9009_v23  ;;  %v1954_v46 = vmul.f32 %v9011_v14, %v9010_v51  ;;  %v2130_v16 = vmul.f32 %v9013_v18, %v9010_v51 }
 0x18a   : > { %9007 = vst [vmem:[#allocation66_spill] sm:$0xff] %v6946_v11  ;;  %9008 = vst [vmem:[#allocation54_spill] sm:$0xff] %v6951_v49  ;;  %v6962_v21 = vcombine.high %v6942_v8, %v6942_v8  ;;  %v4410_v17 = vadd.f32 %v6942_v8, %v4319_v31  ;;  %v4413_v44 = vadd.f32 %v6946_v11, %v4322_v6  ;;  %v4476_v63 = vmax.f32 %v4412_v48, 0.0 }
 0x18b   : > { %v4414_v34 = vadd.f32 %v6942_v8, %v4323_v50  ;;  %v4417_v37 = vadd.f32 %v6946_v11, %v4326_v52  ;;  %v4480_v39 = vmax.f32 %v4416_v53, 0.0  ;;  %v2297_v53 = vrot.slane %v2130_v16, 7 }
 0x18c   : > { %9012 = vst [vmem:[#allocation56_spill] sm:$0xff] %v6962_v21  ;;  %v4411_v42 = vadd.f32 %v6962_v21, %v4320_v13  ;;  %v4415_v25 = vadd.f32 %v6962_v21, %v4324_v4  ;;  %v4474_v62 = vmax.f32 %v4410_v17, 0.0  ;;  %v4477_v54 = vmax.f32 %v4413_v44, 0.0  ;;  %v9015_v17 = vld [vmem:[#allocation19_spill] sm:$0xff] }
 0x18d   : > { %v4478_v12 = vmax.f32 %v4414_v34, 0.0  ;;  %v4481_v56 = vmax.f32 %v4417_v37, 0.0  ;;  %v4540_v31 = vmin.f32 %v4476_v63, 6.0  ;;  %v4544_v30 = vmin.f32 %v4480_v39, 6.0  ;;  %v9016_v37 = vld [vmem:[#allocation57_spill] sm:$0xff] }
 0x18e   : > { %v4475_v6 = vmax.f32 %v4411_v42, 0.0  ;;  %v4479_v5 = vmax.f32 %v4415_v25, 0.0  ;;  %v4538_v50 = vmin.f32 %v4474_v62, 6.0  ;;  %v4541_v15 = vmin.f32 %v4477_v54, 6.0  ;;  %v9017_v42 = vld [vmem:[#allocation18_spill] sm:$0xff] }
 0x18f   : > { %v4542_v52 = vmin.f32 %v4478_v12, 6.0  ;;  %v4545_v48 = vmin.f32 %v4481_v56, 6.0  ;;  %v2626_v49 = vmul.f32 %v9014_v32, %v9010_v51  ;;  %v2778_v44 = vmul.f32 %v9015_v17, %v6301_v27  ;;  %v9018_v51 = vld [vmem:[#allocation52_spill] sm:$0xff] }
 0x190   : > { %v4539_v13 = vmin.f32 %v4475_v6, 6.0  ;;  %v4543_v36 = vmin.f32 %v4479_v5, 6.0  ;;  %v4667_v4 = vcombine.low %v4540_v31, %v4541_v15  ;;  %v2298_v63 = vsel %vm5804_vm8, %v9016_v37, %v2297_v53  ;;  %v9019_v31 = vld [vmem:[#allocation53_spill] sm:$0xff]  ;;  %v9023_v37 = vld [vmem:[#allocation47_spill] sm:$0xff] }
 0x191   : > { %v4684_v34 = vcombine.low %v4544_v30, %v4545_v48  ;;  %v2299_v39 = vrot.slane %v2297_v53, 2  ;;  %v2779_v25 = vmul.f32 %v9017_v42, %v6364_v0  ;;  %v2536_v12 = vadd.f32 %v2298_v63, %v9018_v51  ;;  %v9021_v5 = vld [vmem:[#allocation29_spill] sm:$0xff]  ;;  %v9022_v48 = vld [vmem:[#allocation12_spill] sm:$0xff] }
 0x192   : > { %v4666_v62 = vcombine.low %v4538_v50, %v4539_v13  ;;  %v4681_v16 = vrot.slane %v4667_v4, %v5651_v7  ;;  %v4683_v54 = vcombine.low %v4542_v52, %v4543_v36  ;;  %v9020_v6 = vrot.slane %v9019_v31, 7 }
 0x193   : > { %v4698_v56 = vrot.slane %v4684_v34, %v5651_v7  ;;  %v2780_v15 = vmul.f32 %v9021_v5, %v6388_v20  ;;  %v2781_v53 = vmul.f32 %v9022_v48, %v6373_v29  ;;  %v2690_v52 = vadd.f32 %v2626_v49, %v2536_v12  ;;  %v9028_v49 = vld [vmem:[#allocation21_spill] sm:$0xff] }
 0x194   : > { %v2301_v30 = vsel %vm5804_vm8, %v2299_v39, %v9020_v6  ;;  %v4674_v50 = vrot.slane %v4666_v62, %v5651_v7  ;;  %v4691_v13 = vrot.slane %v4683_v54, %v5651_v7  ;;  %v2782_v4 = vmul.f32 %v9015_v17, %v6396_v40  ;;  %v9024_v39 = vld [vmem:[#allocation58_spill] sm:$0xff]  ;;  %v9026_v62 = vld [vmem:[#allocation61_spill] sm:$0xff] }
 0x195   : > { %v2537_v36 = vadd.f32 %v2301_v30, %v1954_v46  ;;  %v2784_v34 = vmul.f32 %v9021_v5, %v8996_v9  ;;  %v2842_v63 = vadd.f32 %v2778_v44, %v9023_v37  ;;  %v2843_v51 = vadd.f32 %v2779_v25, %v9024_v39  ;;  %v9027_v54 = vld [vmem:[#allocation77_spill] sm:$0xff]  ;;  %v9030_v44 = vld [vmem:[#allocation30_spill] sm:$0xff] }
 0x196   : > { %v4682_v31 = vcombine.low %v4674_v50, %v4681_v16  ;;  %v4699_v6 = vcombine.low %v4691_v13, %v4698_v56  ;;  %v2844_v42 = vadd.f32 %v2780_v15, %v2690_v52  ;;  %v2846_v48 = vadd.f32 %v2782_v4, %v9026_v62  ;;  %v9029_v30 = vld [vmem:[#allocation25_spill] sm:$0xff]  ;;  %v9032_v52 = vld [vmem:[#allocation15_spill] sm:$0xff] }
 0x197   : > { %v2691_v61 = vadd.f32 %v9025_v10, %v2537_v36  ;;  %v2848_v46 = vadd.f32 %v2784_v34, %v9027_v54  ;;  %v2947_v12 = vmul.f32 %v9028_v49, %v6301_v27  ;;  %v2948_v17 = vmul.f32 %v9029_v30, %v6364_v0  ;;  %v9031_v16 = vld [vmem:[#allocation33_spill] sm:$0xff] }
 0x198   : > { %v4954_v5 = vpack.c.bf16 %v4699_v6, %v4682_v31  ;;  %v2949_v25 = vmul.f32 %v9030_v44, %v6388_v20  ;;  %v2950_v56 = vmul.f32 %v9031_v16, %v6373_v29  ;;  %v2951_v10 = vmul.f32 %v9028_v49, %v6396_v40  ;;  %v9033_v34 = vld [vmem:[#allocation73_spill] sm:$0xff] }
 0x199   : > { %v2845_v32 = vadd.f32 %v2781_v53, %v2691_v61  ;;  %v2952_v15 = vmul.f32 %v9029_v30, %v6243_v19  ;;  %v2953_v50 = vmul.f32 %v9030_v44, %v8996_v9  ;;  %v3108_v13 = vrot.slane %v2947_v12, 7  ;;  %v9036_v49 = vld [vmem:[#allocation69_spill] sm:$0xff] }
 0x19a   : > { %5406 = vmatprep.mubr.msk.bf16.mxu1 %vm4981_vm10, %v4954_v5  ;;  %v3111_v36 = vrot.slane %v2948_v17, 7  ;;  %v3114_v61 = vrot.slane %v2949_v25, 7  ;;  %v3117_v53 = vrot.slane %v2950_v56, 7  ;;  %v3443_v4 = vmul.f32 %v9032_v52, %v6301_v27  ;;  %v9035_v56 = vld [vmem:[#allocation46_spill] sm:$0xff] }
 0x19b   : > { %v9034_v37 = vrot.slane %v9033_v34, 9  ;;  %v3110_v31 = vrot.slane %v3108_v13, 2  ;;  %v3120_v6 = vrot.slane %v2951_v10, 7  ;;  %v3123_v62 = vrot.slane %v2952_v15, 7 }
 0x19c   : > { %v3113_v54 = vrot.slane %v3111_v36, 2  ;;  %v3116_v16 = vrot.slane %v3114_v61, 2  ;;  %v3119_v44 = vrot.slane %v3117_v53, 2  ;;  %v3126_v12 = vrot.slane %v2953_v50, 7 }
 0x19d   : > { %v3109_v39 = vsel %vm5804_vm8, %v9034_v37, %v3108_v13  ;;  %v3112_v17 = vsel %vm5804_vm8, %v3110_v31, %v3111_v36  ;;  %v3122_v5 = vrot.slane %v3120_v6, 2  ;;  %v3125_v25 = vrot.slane %v3123_v62, 2 }
 0x19e   : > { %v3353_v30 = vadd.f32 %v3109_v39, %v9035_v56  ;;  %v3115_v34 = vsel %vm5804_vm8, %v3113_v54, %v3114_v61  ;;  %v3118_v37 = vsel %vm5804_vm8, %v3116_v16, %v3117_v53  ;;  %v3121_v10 = vsel %vm5804_vm8, %v3119_v44, %v3120_v6  ;;  %v9038_v53 = vld [vmem:[#allocation78_spill] sm:$0xff] }
 0x19f   : > { %v3128_v15 = vrot.slane %v3126_v12, 2  ;;  %v3124_v50 = vsel %vm5804_vm8, %v3122_v5, %v3123_v62  ;;  %v3127_v13 = vsel %vm5804_vm8, %v3125_v25, %v3126_v12  ;;  %v3354_v36 = vadd.f32 %v3112_v17, %v2842_v63  ;;  %v9039_v6 = vld [vmem:[#allocation22_spill] sm:$0xff]  ;;  %v9040_v12 = vld [vmem:[#allocation71_spill] sm:$0xff] }
 0x1a0   : > { %v3355_v31 = vadd.f32 %v3115_v34, %v2843_v51  ;;  %v9037_v39 = vrot.slane %v9036_v49, 7  ;;  %v3356_v54 = vadd.f32 %v3118_v37, %v2844_v42  ;;  %v3357_v56 = vadd.f32 %v3121_v10, %v2845_v32  ;;  %v9041_v10 = vld [vmem:[#allocation67_spill] sm:$0xff] }
 0x1a1   : > { %v3358_v16 = vadd.f32 %v3124_v50, %v2846_v48  ;;  %v3359_v18 = vadd.f32 %v3127_v13, %v9038_v53  ;;  %v3444_v7 = vmul.f32 %v9039_v6, %v6364_v0  ;;  %v3445_v62 = vmul.f32 %v8975_v57, %v6388_v20  ;;  %v9042_v50 = vld [vmem:[#allocation74_spill] sm:$0xff]  ;;  %v9044_v53 = vld [vmem:[#allocation76_spill] sm:$0xff] }
 0x1a2   : > { %v3130_v61 = vsel %vm5804_vm8, %v3128_v15, %v9037_v39  ;;  %v3446_v63 = vmul.f32 %v5925_v47, %v6373_v29  ;;  %v3447_v51 = vmul.f32 %v9032_v52, %v6396_v40  ;;  %v3448_v42 = vmul.f32 %v9039_v6, %v6243_v19  ;;  %v9043_v39 = vld [vmem:[#allocation79_spill] sm:$0xff] }
 0x1a3   : > { %v3360_v44 = vadd.f32 %v3130_v61, %v2848_v46  ;;  %v3449_v32 = vmul.f32 %v8975_v57, %v8996_v9  ;;  %v3507_v48 = vadd.f32 %v3443_v4, %v3353_v30  ;;  %v3508_v46 = vadd.f32 %v3444_v7, %v3354_v36  ;;  %v9045_v7 = vld [vmem:[#allocation82_spill] sm:$0xff]  ;;  %v9046_v36 = vld [vmem:[#allocation81_spill] sm:$0xff] }
 0x1a4   : > { %v3509_v49 = vadd.f32 %v3445_v62, %v3355_v31  ;;  %v3510_v5 = vadd.f32 %v3446_v63, %v3356_v54  ;;  %v3511_v25 = vadd.f32 %v3447_v51, %v3357_v56  ;;  %v3512_v34 = vadd.f32 %v3448_v42, %v3358_v16  ;;  %v9047_v54 = vld [vmem:[#allocation87_spill] sm:$0xff] }
 0x1a5   : > { %v3514_v17 = vadd.f32 %v9040_v12, %v3360_v44  ;;  %v3513_v37 = vadd.f32 %v3449_v32, %v3359_v18  ;;  %v3597_v15 = vmul.f32 %v8934_v22, %v9041_v10  ;;  %v3598_v13 = vmul.f32 %v8941_v26, %v9042_v50 }
 0x1a6   : > { %v3599_v61 = vmul.f32 %v8946_v28, %v9043_v39  ;;  %v3600_v30 = vmul.f32 %v8919_v41, %v9044_v53  ;;  %v3601_v4 = vmul.f32 %v8934_v22, %v9045_v7  ;;  %v3602_v31 = vmul.f32 %v8941_v26, %v9046_v36 }
 0x1a7   : > { %v3603_v18 = vmul.f32 %v8946_v28, %v9047_v54  ;;  %v3604_v56 = vmul.f32 %v8919_v41, %v9009_v23  ;;  %v3661_v16 = vadd.f32 %v3597_v15, %v3507_v48  ;;  %v3662_v44 = vadd.f32 %v3598_v13, %v3508_v46 }
 0x1a8   : > { %v3663_v62 = vadd.f32 %v3599_v61, %v3509_v49  ;;  %v3664_v63 = vadd.f32 %v3600_v30, %v3510_v5  ;;  %v3665_v51 = vadd.f32 %v3601_v4, %v3511_v25  ;;  %v3666_v42 = vadd.f32 %v3602_v31, %v3512_v34 }
 0x1a9   : > { %v3667_v32 = vadd.f32 %v3603_v18, %v3513_v37  ;;  %v3668_v12 = vadd.f32 %v3604_v56, %v3514_v17  ;;  %v3766_v22 = vmul.f32 %v9002_v3, %v9041_v10  ;;  %v3767_v26 = vmul.f32 %v8936_v2, %v9042_v50 }
 0x1aa   : > { %v3768_v28 = vmul.f32 %v8949_v35, %v9043_v39  ;;  %v3769_v41 = vmul.f32 %v9003_v58, %v9044_v53  ;;  %v3770_v48 = vmul.f32 %v9004_v43, %v9045_v7  ;;  %v3771_v46 = vmul.f32 %v8936_v2, %v9046_v36 }
 0x1ab   : > { %v3772_v49 = vmul.f32 %v8949_v35, %v9047_v54  ;;  %v3773_v17 = vmul.f32 %v9003_v58, %v9009_v23  ;;  %v3774_v5 = vmul.f32 %v9006_v33, %v6956_v24  ;;  %v5332_v25 = vrot.slane %v3766_v22, 9 }
 0x1ac   : > { %v3928_v34 = vrot.slane %v3767_v26, 7  ;;  %v3931_v37 = vrot.slane %v3768_v28, 7  ;;  %v3934_v15 = vrot.slane %v3769_v41, 7  ;;  %v3937_v13 = vrot.slane %v3770_v48, 7 }
 0x1ad   : > { %v3940_v61 = vrot.slane %v3771_v46, 7  ;;  %v3943_v30 = vrot.slane %v3772_v49, 7  ;;  %v3946_v56 = vrot.slane %v3773_v17, 7  ;;  %v3949_v41 = vrot.slane %v3774_v5, 7 }
 0x1ae   : > { %v3929_v4 = vsel %vm5804_vm8, %v5332_v25, %v3928_v34  ;;  %v3930_v31 = vrot.slane %v3928_v34, 2  ;;  %v3933_v18 = vrot.slane %v3931_v37, 2  ;;  %v3936_v43 = vrot.slane %v3934_v15, 2 }
 0x1af   : > { %v3939_v35 = vrot.slane %v3937_v13, 2  ;;  %v3942_v2 = vrot.slane %v3940_v61, 2  ;;  %v3945_v58 = vrot.slane %v3943_v30, 2  ;;  %v3948_v26 = vrot.slane %v3946_v56, 2 }
 0x1b0   : > { %v3932_v33 = vsel %vm5804_vm8, %v3930_v31, %v3931_v37  ;;  %v3935_v28 = vsel %vm5804_vm8, %v3933_v18, %v3934_v15  ;;  %v3938_v22 = vsel %vm5804_vm8, %v3936_v43, %v3937_v13  ;;  %v4173_v25 = vadd.f32 %v3929_v4, %v3661_v16 }
 0x1b1   : > { %v3941_v48 = vsel %vm5804_vm8, %v3939_v35, %v3940_v61  ;;  %v3944_v46 = vsel %vm5804_vm8, %v3942_v2, %v3943_v30  ;;  %v3947_v49 = vsel %vm5804_vm8, %v3945_v58, %v3946_v56  ;;  %v3950_v17 = vsel %vm5804_vm8, %v3948_v26, %v3949_v41 }
 0x1b2   : > { %v4174_v34 = vadd.f32 %v3932_v33, %v3662_v44  ;;  %v4175_v37 = vadd.f32 %v3935_v28, %v3663_v62  ;;  %v4176_v15 = vadd.f32 %v3938_v22, %v3664_v63  ;;  %v4177_v5 = vadd.f32 %v3941_v48, %v3665_v51 }
 0x1b3   : > { %v4178_v31 = vadd.f32 %v3944_v46, %v3666_v42  ;;  %v4179_v18 = vadd.f32 %v3947_v49, %v3667_v32  ;;  %v4180_v43 = vadd.f32 %v3950_v17, %v3668_v12  ;;  %v4263_v35 = vmul.f32 %v8951_v1, %v9042_v50 }
 0x1b4   : > { %v4264_v2 = vmul.f32 %v8954_v59, %v9043_v39  ;;  %v4265_v58 = vmul.f32 %v8922_v45, %v9044_v53  ;;  %v4266_v13 = vmul.f32 %v8924_v60, %v9045_v7  ;;  %v4267_v33 = vmul.f32 %v8951_v1, %v9046_v36 }
 0x1b5   : > { %v4268_v16 = vmul.f32 %v8954_v59, %v9047_v54  ;;  %v4269_v44 = vmul.f32 %v8922_v45, %v9009_v23  ;;  %v4270_v62 = vmul.f32 %v8924_v60, %v6956_v24  ;;  %v4327_v63 = vadd.f32 %v4263_v35, %v4173_v25 }
 0x1b6   : > { %v4328_v51 = vadd.f32 %v4264_v2, %v4174_v34  ;;  %v4329_v42 = vadd.f32 %v4265_v58, %v4175_v37  ;;  %v4330_v32 = vadd.f32 %v4266_v13, %v4176_v15  ;;  %v4331_v12 = vadd.f32 %v4267_v33, %v4177_v5 }
 0x1b7   : > { %v4332_v61 = vadd.f32 %v4268_v16, %v4178_v31  ;;  %v4333_v30 = vadd.f32 %v4269_v44, %v4179_v18  ;;  %v4334_v4 = vadd.f32 %v4270_v62, %v4180_v43  ;;  %v4418_v56 = vadd.f32 %v6942_v8, %v4327_v63  ;;  %v9048_v63 = vld [vmem:[#allocation6_spill] sm:$0xff] }
 0x1b8   : > { %v4419_v28 = vadd.f32 %v6962_v21, %v4328_v51  ;;  %v4420_v26 = vadd.f32 %v8993_v55, %v4329_v42  ;;  %v4421_v41 = vadd.f32 %v6946_v11, %v4330_v32  ;;  %v4422_v22 = vadd.f32 %v6942_v8, %v4331_v12  ;;  %v9049_v42 = vld [vmem:[#allocation5_spill] sm:$0xff] }
 0x1b9   : > { %v4423_v48 = vadd.f32 %v6962_v21, %v4332_v61  ;;  %v4424_v46 = vadd.f32 %v8993_v55, %v4333_v30  ;;  %v4425_v49 = vadd.f32 %v6946_v11, %v4334_v4  ;;  %v4482_v17 = vmax.f32 %v4418_v56, 0.0  ;;  %v9050_v30 = vld [vmem:[#allocation23_spill] sm:$0xff] }
 0x1ba   : > { %v4483_v25 = vmax.f32 %v4419_v28, 0.0  ;;  %v4484_v34 = vmax.f32 %v4420_v26, 0.0  ;;  %v4485_v37 = vmax.f32 %v4421_v41, 0.0  ;;  %v4486_v15 = vmax.f32 %v4422_v22, 0.0  ;;  %v9051_v28 = vld [vmem:[#allocation2_spill] sm:$0xff] }
 0x1bb   : > { %v4487_v5 = vmax.f32 %v4423_v48, 0.0  ;;  %v4488_v31 = vmax.f32 %v4424_v46, 0.0  ;;  %v4489_v18 = vmax.f32 %v4425_v49, 0.0  ;;  %v4546_v43 = vmin.f32 %v4482_v17, 6.0 }
 0x1bc   : > { %v4547_v35 = vmin.f32 %v4483_v25, 6.0  ;;  %v4548_v2 = vmin.f32 %v4484_v34, 6.0  ;;  %v4549_v58 = vmin.f32 %v4485_v37, 6.0  ;;  %v4550_v13 = vmin.f32 %v4486_v15, 6.0  ;;  %v9052_v25 = vld [vmem:[#allocation10_spill] sm:$0xff]  ;;  %v9053_v15 = vld [vmem:[#allocation13_spill] sm:$0xff] }
 0x1bd   : > { %v4551_v33 = vmin.f32 %v4487_v5, 6.0  ;;  %v4552_v16 = vmin.f32 %v4488_v31, 6.0  ;;  %v4553_v44 = vmin.f32 %v4489_v18, 6.0  ;;  %v1959_v51 = vmul.f32 %v9048_v63, %v6301_v27  ;;  %v9054_v31 = vld [vmem:[#allocation28_spill] sm:$0xff] }
 0x1be   : > { %v4700_v62 = vcombine.low %v4546_v43, %v4547_v35  ;;  %v1960_v32 = vmul.f32 %v9049_v42, %v6364_v0  ;;  %v4701_v12 = vcombine.low %v4548_v2, %v4549_v58  ;;  %v1961_v4 = vmul.f32 %v9050_v30, %v6388_v20  ;;  %v9055_v43 = vld [vmem:[#allocation7_spill] sm:$0xff] }
 0x1bf   : > { %v4717_v61 = vcombine.low %v4550_v13, %v4551_v33  ;;  %v1962_v56 = vmul.f32 %v9011_v14, %v6373_v29  ;;  %v4718_v41 = vcombine.low %v4552_v16, %v4553_v44  ;;  %v1963_v22 = vmul.f32 %v9048_v63, %v6396_v40  ;;  %v9056_v33 = vld [vmem:[#allocation72_spill] sm:$0xff] }
 0x1c0   : > { %v4708_v26 = vrot.slane %v4700_v62, %v9051_v28  ;;  %v1964_v48 = vmul.f32 %v9049_v42, %v6243_v19  ;;  %v4715_v46 = vrot.slane %v4701_v12, %v9051_v28  ;;  %v1965_v17 = vmul.f32 %v9050_v30, %v8996_v9  ;;  %v9058_v42 = vld [vmem:[#allocation8_spill] sm:$0xff] }
 0x1c1   : > { %v4725_v49 = vrot.slane %v4717_v61, %v9051_v28  ;;  %v2137_v34 = vmul.f32 %v9052_v25, %v6364_v0  ;;  %v4732_v37 = vrot.slane %v4718_v41, %v9051_v28  ;;  %v2138_v5 = vmul.f32 %v9053_v15, %v6388_v20 }
 0x1c2   : > { %v2139_v18 = vmul.f32 %v9054_v31, %v6373_v29  ;;  %v2140_v35 = vmul.f32 %v9055_v43, %v6396_v40  ;;  %v4716_v2 = vcombine.low %v4708_v26, %v4715_v46  ;;  %v2141_v58 = vmul.f32 %v9052_v25, %v6243_v19 }
 0x1c3   : > { %v2142_v13 = vmul.f32 %v9053_v15, %v8996_v9  ;;  %v9057_v16 = vrot.slane %v9056_v33, 7  ;;  %v4733_v62 = vcombine.low %v4725_v49, %v4732_v37  ;;  %v2316_v12 = vrot.slane %v2137_v34, 7 }
 0x1c4   : > { %v2319_v61 = vrot.slane %v2138_v5, 7  ;;  %v2322_v41 = vrot.slane %v2139_v18, 7  ;;  %v2325_v30 = vrot.slane %v2140_v35, 7  ;;  %v2328_v28 = vrot.slane %v2141_v58, 7  ;;  %v9060_v58 = vld [vmem:[#allocation68_spill] sm:$0xff] }
 0x1c5   : > { %v2315_v44 = vrot.slane %v9057_v16, 2  ;;  %v2331_v31 = vrot.slane %v2142_v13, 7  ;;  %v2631_v43 = vmul.f32 %v9058_v42, %v6301_v27  ;;  %v4955_v26 = vpack.c.bf16 %v4733_v62, %v4716_v2  ;;  %v9059_v27 = vld [vmem:[#allocation16_spill] sm:$0xff] }
 0x1c6   : > { %v2318_v25 = vrot.slane %v2316_v12, 2  ;;  %v2321_v63 = vrot.slane %v2319_v61, 2  ;;  %v2324_v15 = vrot.slane %v2322_v41, 2  ;;  %v2327_v14 = vrot.slane %v2325_v30, 2 }
 0x1c7   : > { %v2317_v46 = vsel %vm5804_vm8, %v2315_v44, %v2316_v12  ;;  %v2330_v33 = vrot.slane %v2328_v28, 2  ;;  %v2333_v16 = vrot.slane %v2331_v31, 2  ;;  %5407 = vmatmul.mubr.msk.bf16.vlgmr.msra.gmra.mxu1 %vm4981_vm10, %v4955_v26  ;;  %v2632_v5 = vmul.f32 %v9059_v27, %v6364_v0 }
 0x1c8   : > { %v2320_v49 = vsel %vm5804_vm8, %v2318_v25, %v2319_v61  ;;  %v2323_v34 = vsel %vm5804_vm8, %v2321_v63, %v2322_v41  ;;  %v2542_v37 = vadd.f32 %v2317_v46, %v1959_v51  ;;  %v2326_v18 = vsel %vm5804_vm8, %v2324_v15, %v2325_v30  ;;  %v9062_v61 = vld [vmem:[#allocation11_spill] sm:$0xff]  ;;  %v9063_v15 = vld [vmem:[#allocation17_spill] sm:$0xff]  ;;  %v9065_v41 = vld [vmem:[#allocation70_spill] sm:$0xff] }
 0x1c9   : > { %v2329_v35 = vsel %vm5804_vm8, %v2327_v14, %v2328_v28  ;;  %v2332_v2 = vsel %vm5804_vm8, %v2330_v33, %v2331_v31  ;;  %v9061_v13 = vrot.slane %v9060_v58, 7  ;;  %v2543_v44 = vadd.f32 %v2320_v49, %v1960_v32 }
 0x1ca   : > { %v2544_v63 = vadd.f32 %v2323_v34, %v1961_v4  ;;  %v2545_v51 = vadd.f32 %v2326_v18, %v1962_v56  ;;  %v2546_v62 = vadd.f32 %v2329_v35, %v1963_v22  ;;  %v2547_v12 = vadd.f32 %v2332_v2, %v1964_v48  ;;  %v9064_v4 = vld [vmem:[#allocation75_spill] sm:$0xff] }
 0x1cb   : > { %v2335_v25 = vsel %vm5804_vm8, %v2333_v16, %v9061_v13  ;;  %v2633_v30 = vmul.f32 %v9062_v61, %v6388_v20  ;;  %v2634_v14 = vmul.f32 %v9063_v15, %v6373_v29  ;;  %v2635_v28 = vmul.f32 %v9058_v42, %v6396_v40  ;;  %v9066_v29 = vld [vmem:[#allocation12_spill] sm:$0xff]  ;;  %v9067_v40 = vld [vmem:[#allocation19_spill] sm:$0xff] }
 0x1cc   : > { %v2548_v0 = vadd.f32 %v2335_v25, %v1965_v17  ;;  %v2636_v31 = vmul.f32 %v9059_v27, %v6243_v19  ;;  %v2637_v32 = vmul.f32 %v9062_v61, %v8996_v9  ;;  %v2695_v56 = vadd.f32 %v2631_v43, %v9064_v4  ;;  %v9068_v19 = vld [vmem:[#allocation18_spill] sm:$0xff]  ;;  %v9069_v9 = vld [vmem:[#allocation29_spill] sm:$0xff] }
 0x1cd   : > { %v2696_v22 = vadd.f32 %v2632_v5, %v2542_v37  ;;  %v2697_v48 = vadd.f32 %v2633_v30, %v2543_v44  ;;  %v2698_v17 = vadd.f32 %v2634_v14, %v2544_v63  ;;  %v2699_v20 = vadd.f32 %v2635_v28, %v2545_v51  ;;  %v9071_v30 = vld [vmem:[#allocation21_spill] sm:$0xff] }
 0x1ce   : > { %v2702_v26 = vadd.f32 %v9065_v41, %v2548_v0  ;;  %v2700_v46 = vadd.f32 %v2636_v31, %v2546_v62  ;;  %v2701_v33 = vadd.f32 %v2637_v32, %v2547_v12  ;;  %v2785_v16 = vmul.f32 %v9066_v29, %v9041_v10  ;;  %v9070_v12 = vld [vmem:[#allocation9_spill] sm:$0xff]  ;;  %v9073_v32 = vld [vmem:[#allocation30_spill] sm:$0xff] }
 0x1cf   : > { %v2786_v49 = vmul.f32 %v9067_v40, %v9042_v50  ;;  %v2787_v34 = vmul.f32 %v9068_v19, %v9043_v39  ;;  %v2788_v43 = vmul.f32 %v9069_v9, %v9044_v53  ;;  %v2789_v37 = vmul.f32 %v9066_v29, %v9045_v7  ;;  %v9072_v28 = vld [vmem:[#allocation25_spill] sm:$0xff] }
 0x1d0   : > { %v2790_v5 = vmul.f32 %v9067_v40, %v9046_v36  ;;  %v2791_v18 = vmul.f32 %v9068_v19, %v9047_v54  ;;  %v2792_v35 = vmul.f32 %v9069_v9, %v9009_v23  ;;  %v2849_v2 = vadd.f32 %v2785_v16, %v2695_v56  ;;  %v9074_v56 = vld [vmem:[#allocation33_spill] sm:$0xff]  ;;  %v9090_v9 = vld [vmem:[#allocation38_spill] sm:$0xff] }
 0x1d1   : > { %v2850_v58 = vadd.f32 %v2786_v49, %v2696_v22  ;;  %v2851_v13 = vadd.f32 %v2787_v34, %v2697_v48  ;;  %v2852_v25 = vadd.f32 %v2788_v43, %v2698_v17  ;;  %v2853_v44 = vadd.f32 %v2789_v37, %v2699_v20 }
 0x1d2   : > { %v2854_v63 = vadd.f32 %v2790_v5, %v2700_v46  ;;  %v2855_v51 = vadd.f32 %v2791_v18, %v2701_v33  ;;  %v2856_v62 = vadd.f32 %v2792_v35, %v2702_v26  ;;  %v2955_v0 = vmul.f32 %v9070_v12, %v9041_v10  ;;  %v9075_v26 = vld [vmem:[#allocation24_spill] sm:$0xff] }
 0x1d3   : > { %v2956_v14 = vmul.f32 %v9071_v30, %v9042_v50  ;;  %v2957_v31 = vmul.f32 %v9072_v28, %v9043_v39  ;;  %v2958_v4 = vmul.f32 %v9073_v32, %v9044_v53  ;;  %v2959_v22 = vmul.f32 %v9074_v56, %v9045_v7 }
 0x1d4   : > { %v2960_v48 = vmul.f32 %v9071_v30, %v9046_v36  ;;  %v2961_v17 = vmul.f32 %v9072_v28, %v9047_v54  ;;  %v2962_v41 = vmul.f32 %v9073_v32, %v9009_v23  ;;  %v2963_v20 = vmul.f32 %v9075_v26, %v6956_v24  ;;  %v9082_v26 = vld [vmem:[#allocation97_spill] sm:$0xff] }
 0x1d5   : > { %v5325_v46 = vrot.slane %v2955_v0, 9  ;;  %v3133_v33 = vrot.slane %v2956_v14, 7  ;;  %v3136_v16 = vrot.slane %v2957_v31, 7  ;;  %v3139_v49 = vrot.slane %v2958_v4, 7 }
 0x1d6   : > { %v3142_v34 = vrot.slane %v2959_v22, 7  ;;  %v3145_v43 = vrot.slane %v2960_v48, 7  ;;  %v3148_v37 = vrot.slane %v2961_v17, 7  ;;  %v3151_v5 = vrot.slane %v2962_v41, 7 }
 0x1d7   : > { %v3134_v18 = vsel %vm5804_vm8, %v5325_v46, %v3133_v33  ;;  %v3135_v35 = vrot.slane %v3133_v33, 2  ;;  %v3138_v12 = vrot.slane %v3136_v16, 2  ;;  %v3141_v56 = vrot.slane %v3139_v49, 2 }
 0x1d8   : > { %v3144_v28 = vrot.slane %v3142_v34, 2  ;;  %v3147_v30 = vrot.slane %v3145_v43, 2  ;;  %v3150_v32 = vrot.slane %v3148_v37, 2  ;;  %v3153_v29 = vrot.slane %v3151_v5, 2 }
 0x1d9   : > { %v3137_v0 = vsel %vm5804_vm8, %v3135_v35, %v3136_v16  ;;  %v3140_v14 = vsel %vm5804_vm8, %v3138_v12, %v3139_v49  ;;  %v3143_v31 = vsel %vm5804_vm8, %v3141_v56, %v3142_v34  ;;  %v3154_v4 = vrot.slane %v2963_v20, 7 }
 0x1da   : > { %v3146_v22 = vsel %vm5804_vm8, %v3144_v28, %v3145_v43  ;;  %v3149_v48 = vsel %vm5804_vm8, %v3147_v30, %v3148_v37  ;;  %v3152_v17 = vsel %vm5804_vm8, %v3150_v32, %v3151_v5  ;;  %v3361_v41 = vadd.f32 %v3134_v18, %v2849_v2  ;;  %v9076_v18 = vld [vmem:[#allocation90_spill] sm:$0xff] }
 0x1db   : > { %v3155_v46 = vsel %vm5804_vm8, %v3153_v29, %v3154_v4  ;;  %v3362_v33 = vadd.f32 %v3137_v0, %v2850_v58  ;;  %v3363_v16 = vadd.f32 %v3140_v14, %v2851_v13  ;;  %v3364_v12 = vadd.f32 %v3143_v31, %v2852_v25  ;;  %v9077_v0 = vld [vmem:[#allocation35_spill] sm:$0xff] }
 0x1dc   : > { %v3365_v49 = vadd.f32 %v3146_v22, %v2853_v44  ;;  %v3366_v35 = vadd.f32 %v3149_v48, %v2854_v63  ;;  %v3367_v56 = vadd.f32 %v3152_v17, %v2855_v51  ;;  %v3368_v20 = vadd.f32 %v3155_v46, %v2856_v62  ;;  %v9078_v31 = vld [vmem:[#allocation95_spill] sm:$0xff]  ;;  %v9080_v48 = vld [vmem:[#allocation94_spill] sm:$0xff] }
 0x1dd   : > { %v3451_v28 = vmul.f32 %v9032_v52, %v9042_v50  ;;  %v3452_v30 = vmul.f32 %v9039_v6, %v9043_v39  ;;  %v3453_v32 = vmul.f32 %v8975_v57, %v9044_v53  ;;  %v3454_v2 = vmul.f32 %v5925_v47, %v9045_v7  ;;  %v9079_v4 = vld [vmem:[#allocation43_spill] sm:$0xff]  ;;  %v9081_v17 = vld [vmem:[#allocation26_spill] sm:$0xff] }
 0x1de   : > { %v3455_v29 = vmul.f32 %v9032_v52, %v9046_v36  ;;  %v3456_v58 = vmul.f32 %v9039_v6, %v9047_v54  ;;  %v3457_v13 = vmul.f32 %v8975_v57, %v9009_v23  ;;  %v3458_v25 = vmul.f32 %v5925_v47, %v6956_v24  ;;  %v9083_v57 = vld [vmem:[#allocation36_spill] sm:$0xff]  ;;  %v9088_v6 = vld [vmem:[#allocation42_spill] sm:$0xff]  ;;  %v9089_v52 = vld [vmem:[#allocation37_spill] sm:$0xff] }
 0x1df   : > { %v3515_v44 = vadd.f32 %v3451_v28, %v3361_v41  ;;  %v3516_v63 = vadd.f32 %v3452_v30, %v3362_v33  ;;  %v3517_v51 = vadd.f32 %v3453_v32, %v3363_v16  ;;  %v3518_v62 = vadd.f32 %v3454_v2, %v3364_v12  ;;  %v9084_v41 = vld [vmem:[#allocation80_spill] sm:$0xff] }
 0x1e0   : > { %v3519_v34 = vadd.f32 %v3455_v29, %v3365_v49  ;;  %v3520_v43 = vadd.f32 %v3456_v58, %v3366_v35  ;;  %v3521_v37 = vadd.f32 %v3457_v13, %v3367_v56  ;;  %v3522_v5 = vadd.f32 %v3458_v25, %v3368_v20  ;;  %v9085_v16 = vld [vmem:[#allocation84_spill] sm:$0xff]  ;;  %v9086_v49 = vld [vmem:[#allocation83_spill] sm:$0xff]  ;;  %v9087_v56 = vld [vmem:[#allocation86_spill] sm:$0xff] }
 0x1e1   : > { %v3605_v14 = vmul.f32 %v9077_v0, %v9076_v18  ;;  %v3606_v22 = vmul.f32 %v9079_v4, %v9078_v31  ;;  %v3607_v46 = vmul.f32 %v9081_v17, %v9080_v48  ;;  %v3608_v47 = vmul.f32 %v9083_v57, %v9082_v26 }
 0x1e2   : > { %v3609_v33 = vmul.f32 %v9077_v0, %v9084_v41  ;;  %v3610_v12 = vmul.f32 %v9079_v4, %v9085_v16  ;;  %v3611_v35 = vmul.f32 %v9081_v17, %v9086_v49  ;;  %v3612_v20 = vmul.f32 %v9083_v57, %v9087_v56 }
 0x1e3   : > { %v3669_v28 = vadd.f32 %v3605_v14, %v3515_v44  ;;  %v3670_v30 = vadd.f32 %v3606_v22, %v3516_v63  ;;  %v3671_v32 = vadd.f32 %v3607_v46, %v3517_v51  ;;  %v3672_v2 = vadd.f32 %v3608_v47, %v3518_v62  ;;  %v9091_v44 = vld [vmem:[#allocation44_spill] sm:$0xff] }
 0x1e4   : > { %v3673_v29 = vadd.f32 %v3609_v33, %v3519_v34  ;;  %v3674_v58 = vadd.f32 %v3610_v12, %v3520_v43  ;;  %v3675_v13 = vadd.f32 %v3611_v35, %v3521_v37  ;;  %v3676_v25 = vadd.f32 %v3612_v20, %v3522_v5  ;;  %v9092_v34 = vld [vmem:[#allocation88_spill] sm:$0xff]  ;;  %v9093_v43 = vld [vmem:[#allocation39_spill] sm:$0xff] }
 0x1e5   : > { %v3775_v0 = vmul.f32 %v9002_v3, %v9076_v18  ;;  %v3776_v4 = vmul.f32 %v9088_v6, %v9078_v31  ;;  %v3777_v17 = vmul.f32 %v9089_v52, %v9080_v48  ;;  %v3778_v57 = vmul.f32 %v9090_v9, %v9082_v26 }
 0x1e6   : > { %v3779_v63 = vmul.f32 %v9091_v44, %v9084_v41  ;;  %v3780_v47 = vmul.f32 %v9088_v6, %v9085_v16  ;;  %v3781_v51 = vmul.f32 %v9089_v52, %v9086_v49  ;;  %v3782_v62 = vmul.f32 %v9090_v9, %v9087_v56 }
 0x1e7   : > { %v3783_v37 = vmul.f32 %v9093_v43, %v9092_v34  ;;  %v5333_v5 = vrot.slane %v3775_v0, 9  ;;  %v3953_v18 = vrot.slane %v3776_v4, 7  ;;  %v3956_v14 = vrot.slane %v3777_v17, 7 }
 0x1e8   : > { %v3959_v22 = vrot.slane %v3778_v57, 7  ;;  %v3962_v46 = vrot.slane %v3779_v63, 7  ;;  %v3965_v33 = vrot.slane %v3780_v47, 7  ;;  %v3968_v12 = vrot.slane %v3781_v51, 7 }
 0x1e9   : > { %v3954_v35 = vsel %vm5804_vm8, %v5333_v5, %v3953_v18  ;;  %v3955_v20 = vrot.slane %v3953_v18, 2  ;;  %v3958_v44 = vrot.slane %v3956_v14, 2  ;;  %v3971_v6 = vrot.slane %v3782_v62, 7 }
 0x1ea   : > { %v3961_v52 = vrot.slane %v3959_v22, 2  ;;  %v3964_v3 = vrot.slane %v3962_v46, 2  ;;  %v3967_v19 = vrot.slane %v3965_v33, 2  ;;  %v3970_v9 = vrot.slane %v3968_v12, 2 }
 0x1eb   : > { %v3957_v43 = vsel %vm5804_vm8, %v3955_v20, %v3956_v14  ;;  %v3960_v0 = vsel %vm5804_vm8, %v3958_v44, %v3959_v22  ;;  %v3973_v57 = vrot.slane %v3971_v6, 2  ;;  %v3974_v4 = vrot.slane %v3783_v37, 7 }
 0x1ec   : > { %v3963_v17 = vsel %vm5804_vm8, %v3961_v52, %v3962_v46  ;;  %v3966_v63 = vsel %vm5804_vm8, %v3964_v3, %v3965_v33  ;;  %v3969_v47 = vsel %vm5804_vm8, %v3967_v19, %v3968_v12  ;;  %v3972_v51 = vsel %vm5804_vm8, %v3970_v9, %v3971_v6 }
 0x1ed   : > { %v3975_v62 = vsel %vm5804_vm8, %v3973_v57, %v3974_v4  ;;  %v4181_v5 = vadd.f32 %v3954_v35, %v3669_v28  ;;  %v4182_v18 = vadd.f32 %v3957_v43, %v3670_v30  ;;  %v4183_v44 = vadd.f32 %v3960_v0, %v3671_v32 }
 0x1ee   : > { %v4184_v14 = vadd.f32 %v3963_v17, %v3672_v2  ;;  %v4185_v37 = vadd.f32 %v3966_v63, %v3673_v29  ;;  %v4186_v22 = vadd.f32 %v3969_v47, %v3674_v58  ;;  %v4187_v20 = vadd.f32 %v3972_v51, %v3675_v13 }
 0x1ef   : > { %v4188_v52 = vadd.f32 %v3975_v62, %v3676_v25  ;;  %v4271_v3 = vmul.f32 %v8951_v1, %v9078_v31  ;;  %v4272_v19 = vmul.f32 %v8954_v59, %v9080_v48  ;;  %v4273_v6 = vmul.f32 %v8922_v45, %v9082_v26 }
 0x1f0   : > { %v4274_v9 = vmul.f32 %v8924_v60, %v9084_v41  ;;  %v4275_v28 = vmul.f32 %v8951_v1, %v9085_v16  ;;  %v4276_v30 = vmul.f32 %v8954_v59, %v9086_v49  ;;  %v4277_v32 = vmul.f32 %v8922_v45, %v9087_v56 }
 0x1f1   : > { %v4278_v2 = vmul.f32 %v8924_v60, %v9092_v34  ;;  %v4335_v29 = vadd.f32 %v4271_v3, %v4181_v5  ;;  %v4336_v58 = vadd.f32 %v4272_v19, %v4182_v18  ;;  %v4337_v13 = vadd.f32 %v4273_v6, %v4183_v44 }
 0x1f2   : > { %v4338_v25 = vadd.f32 %v4274_v9, %v4184_v14  ;;  %v4339_v43 = vadd.f32 %v4275_v28, %v4185_v37  ;;  %v4340_v46 = vadd.f32 %v4276_v30, %v4186_v22  ;;  %v4341_v33 = vadd.f32 %v4277_v32, %v4187_v20 }
 0x1f3   : > { %v4342_v12 = vadd.f32 %v4278_v2, %v4188_v52  ;;  %v4426_v35 = vadd.f32 %v6942_v8, %v4335_v29  ;;  %v4427_v0 = vadd.f32 %v6962_v21, %v4336_v58  ;;  %v4428_v57 = vadd.f32 %v8993_v55, %v4337_v13  ;;  %v9094_v29 = vld [vmem:[#allocation115_spill] sm:$0xff]  ;;  %v9095_v13 = vld [vmem:[#allocation4_spill] sm:$0xff] }
 0x1f4   : > { %v4429_v4 = vadd.f32 %v6946_v11, %v4338_v25  ;;  %v4430_v17 = vadd.f32 %v6942_v8, %v4339_v43  ;;  %v4431_v63 = vadd.f32 %v6962_v21, %v4340_v46  ;;  %v4432_v47 = vadd.f32 %v8993_v55, %v4341_v33  ;;  %v9096_v33 = vld [vmem:[#allocation6_spill] sm:$0xff] }
 0x1f5   : > { %v4433_v51 = vadd.f32 %v6946_v11, %v4342_v12  ;;  %v4490_v62 = vmax.f32 %v4426_v35, 0.0  ;;  %v4491_v5 = vmax.f32 %v4427_v0, 0.0  ;;  %v4492_v18 = vmax.f32 %v4428_v57, 0.0  ;;  %v9097_v35 = vld [vmem:[#allocation5_spill] sm:$0xff]  ;;  %v9098_v57 = vld [vmem:[#allocation2_spill] sm:$0xff] }
 0x1f6   : > { %v4493_v44 = vmax.f32 %v4429_v4, 0.0  ;;  %v4494_v14 = vmax.f32 %v4430_v17, 0.0  ;;  %v4495_v37 = vmax.f32 %v4431_v63, 0.0  ;;  %v4496_v22 = vmax.f32 %v4432_v47, 0.0  ;;  %v9099_v63 = vld [vmem:[#allocation23_spill] sm:$0xff] }
 0x1f7   : > { %v4497_v20 = vmax.f32 %v4433_v51, 0.0  ;;  %v4554_v52 = vmin.f32 %v4490_v62, 6.0  ;;  %v4555_v3 = vmin.f32 %v4491_v5, 6.0  ;;  %v4556_v19 = vmin.f32 %v4492_v18, 6.0 }
 0x1f8   : > { %v4557_v6 = vmin.f32 %v4493_v44, 6.0  ;;  %v4558_v9 = vmin.f32 %v4494_v14, 6.0  ;;  %v4559_v28 = vmin.f32 %v4495_v37, 6.0  ;;  %v4560_v30 = vmin.f32 %v4496_v22, 6.0  ;;  %v9100_v22 = vld [vmem:[#allocation3_spill] sm:$0xff] }
 0x1f9   : > { %v4561_v32 = vmin.f32 %v4497_v20, 6.0  ;;  %v4734_v2 = vcombine.low %v4554_v52, %v4555_v3  ;;  %v7336_v58 = vcombine.high %v9094_v29, %v9094_v29  ;;  %v1966_v25 = vmul.f32 %v9095_v13, %v9041_v10  ;;  %v9101_v52 = vld [vmem:[#allocation7_spill] sm:$0xff] }
 0x1fa   : > { %v4735_v43 = vcombine.low %v4556_v19, %v4557_v6  ;;  %v4751_v46 = vcombine.low %v4558_v9, %v4559_v28  ;;  %v1967_v12 = vmul.f32 %v9096_v33, %v9042_v50  ;;  %v1968_v0 = vmul.f32 %v9097_v35, %v9043_v39  ;;  %v9102_v6 = vld [vmem:[#allocation10_spill] sm:$0xff]  ;;  %v9103_v28 = vld [vmem:[#allocation13_spill] sm:$0xff] }
 0x1fb   : > { %v4742_v4 = vrot.slane %v4734_v2, %v9098_v57  ;;  %v4752_v17 = vcombine.low %v4560_v30, %v4561_v32  ;;  %v1969_v47 = vmul.f32 %v9099_v63, %v9044_v53  ;;  %v1970_v51 = vmul.f32 %v9095_v13, %v9045_v7  ;;  %v9104_v32 = vld [vmem:[#allocation28_spill] sm:$0xff] }
 0x1fc   : > { %v4749_v62 = vrot.slane %v4735_v43, %v9098_v57  ;;  %v4759_v5 = vrot.slane %v4751_v46, %v9098_v57  ;;  %v1971_v18 = vmul.f32 %v9096_v33, %v9046_v36  ;;  %v1972_v44 = vmul.f32 %v9097_v35, %v9047_v54 }
 0x1fd   : > { %v4766_v14 = vrot.slane %v4752_v17, %v9098_v57  ;;  %v1973_v37 = vmul.f32 %v9099_v63, %v9009_v23  ;;  %v2144_v20 = vmul.f32 %v9100_v22, %v9041_v10  ;;  %v2145_v3 = vmul.f32 %v9101_v52, %v9042_v50 }
 0x1fe   : > { %v4750_v19 = vcombine.low %v4742_v4, %v4749_v62  ;;  %v2146_v9 = vmul.f32 %v9102_v6, %v9043_v39  ;;  %v2147_v30 = vmul.f32 %v9103_v28, %v9044_v53  ;;  %v2148_v2 = vmul.f32 %v9104_v32, %v9045_v7  ;;  %v9105_v4 = vld [vmem:[#allocation14_spill] sm:$0xff] }
 0x1ff   : > { %v4767_v43 = vcombine.low %v4759_v5, %v4766_v14  ;;  %v2149_v46 = vmul.f32 %v9101_v52, %v9046_v36  ;;  %v2150_v10 = vmul.f32 %v9102_v6, %v9047_v54  ;;  %v2151_v17 = vmul.f32 %v9103_v28, %v9009_v23 }
 0x200   : > { %v2152_v62 = vmul.f32 %v9105_v4, %v6956_v24  ;;  %v5318_v22 = vrot.slane %v2144_v20, 9  ;;  %v2338_v57 = vrot.slane %v2145_v3, 7  ;;  %v2341_v13 = vrot.slane %v2146_v9, 7  ;;  %v9127_v4 = vld [vmem:[#allocation26_spill] sm:$0xff] }
 0x201   : > { %v4956_v63 = vpack.c.bf16 %v4767_v43, %v4750_v19  ;;  %v2344_v35 = vrot.slane %v2147_v30, 7  ;;  %v2347_v33 = vrot.slane %v2148_v2, 7  ;;  %v2350_v32 = vrot.slane %v2149_v46, 7 }
 0x202   : > { %v2339_v5 = vsel %vm5804_vm8, %v5318_v22, %v2338_v57  ;;  %v2340_v14 = vrot.slane %v2338_v57, 2  ;;  %v2343_v52 = vrot.slane %v2341_v13, 2  ;;  %v2353_v11 = vrot.slane %v2150_v10, 7 }
 0x203   : > { %5410 = vmatprep.mubr.msk.bf16.mxu1 %vm4981_vm10, %v4956_v63  ;;  %v2346_v6 = vrot.slane %v2344_v35, 2  ;;  %v2349_v28 = vrot.slane %v2347_v33, 2  ;;  %v2352_v55 = vrot.slane %v2350_v32, 2  ;;  %v2356_v21 = vrot.slane %v2151_v17, 7 }
 0x204   : > { %v2342_v20 = vsel %vm5804_vm8, %v2340_v14, %v2341_v13  ;;  %v2345_v3 = vsel %vm5804_vm8, %v2343_v52, %v2344_v35  ;;  %v2355_v19 = vrot.slane %v2353_v11, 2  ;;  %v2359_v9 = vrot.slane %v2152_v62, 7  ;;  %v9107_v62 = vld [vmem:[#allocation29_spill] sm:$0xff] }
 0x205   : > { %v2348_v22 = vsel %vm5804_vm8, %v2346_v6, %v2347_v33  ;;  %v2351_v57 = vsel %vm5804_vm8, %v2349_v28, %v2350_v32  ;;  %v2354_v63 = vsel %vm5804_vm8, %v2352_v55, %v2353_v11  ;;  %v2358_v30 = vrot.slane %v2356_v21, 2  ;;  %v9106_v32 = vld [vmem:[#allocation18_spill] sm:$0xff] }
 0x206   : > { %v2357_v2 = vsel %vm5804_vm8, %v2355_v19, %v2356_v21  ;;  %v2549_v43 = vadd.f32 %v2339_v5, %v1966_v25  ;;  %v2550_v13 = vadd.f32 %v2342_v20, %v1967_v12  ;;  %v2551_v46 = vadd.f32 %v2345_v3, %v1968_v0  ;;  %v9108_v5 = vld [vmem:[#allocation12_spill] sm:$0xff]  ;;  %v9109_v19 = vld [vmem:[#allocation99_spill] sm:$0xff] }
 0x207   : > { %v2360_v35 = vsel %vm5804_vm8, %v2358_v30, %v2359_v9  ;;  %v2552_v52 = vadd.f32 %v2348_v22, %v1969_v47  ;;  %v2553_v10 = vadd.f32 %v2351_v57, %v1970_v51  ;;  %v2554_v17 = vadd.f32 %v2354_v63, %v1971_v18 }
 0x208   : > { %v2555_v33 = vadd.f32 %v2357_v2, %v1972_v44  ;;  %v2556_v6 = vadd.f32 %v2360_v35, %v1973_v37  ;;  %v2639_v28 = vmul.f32 %v9058_v42, %v9042_v50  ;;  %v2640_v55 = vmul.f32 %v9059_v27, %v9043_v39 }
 0x209   : > { %v2641_v11 = vmul.f32 %v9062_v61, %v9044_v53  ;;  %v2642_v21 = vmul.f32 %v9063_v15, %v9045_v7  ;;  %v2643_v25 = vmul.f32 %v9058_v42, %v9046_v36  ;;  %v2644_v12 = vmul.f32 %v9059_v27, %v9047_v54 }
 0x20a   : > { %v2645_v0 = vmul.f32 %v9062_v61, %v9009_v23  ;;  %v2646_v50 = vmul.f32 %v9063_v15, %v6956_v24  ;;  %v2703_v47 = vadd.f32 %v2639_v28, %v2549_v43  ;;  %v2704_v39 = vadd.f32 %v2640_v55, %v2550_v13 }
 0x20b   : > { %v2705_v51 = vadd.f32 %v2641_v11, %v2551_v46  ;;  %v2706_v18 = vadd.f32 %v2642_v21, %v2552_v52  ;;  %v2707_v53 = vadd.f32 %v2643_v25, %v2553_v10  ;;  %v2708_v44 = vadd.f32 %v2644_v12, %v2554_v17  ;;  %v9110_v46 = vld [vmem:[#allocation21_spill] sm:$0xff]  ;;  %v9112_v17 = vld [vmem:[#allocation30_spill] sm:$0xff] }
 0x20c   : > { %v2709_v37 = vadd.f32 %v2645_v0, %v2555_v33  ;;  %v2710_v7 = vadd.f32 %v2646_v50, %v2556_v6  ;;  %v2794_v36 = vmul.f32 %v9067_v40, %v9078_v31  ;;  %v2795_v54 = vmul.f32 %v9106_v32, %v9080_v48  ;;  %v9111_v52 = vld [vmem:[#allocation25_spill] sm:$0xff]  ;;  %v9114_v50 = vld [vmem:[#allocation15_spill] sm:$0xff] }
 0x20d   : > { %v2796_v23 = vmul.f32 %v9107_v62, %v9082_v26  ;;  %v2797_v24 = vmul.f32 %v9108_v5, %v9084_v41  ;;  %v2798_v14 = vmul.f32 %v9067_v40, %v9085_v16  ;;  %v2799_v20 = vmul.f32 %v9106_v32, %v9086_v49  ;;  %v9113_v6 = vld [vmem:[#allocation33_spill] sm:$0xff] }
 0x20e   : > { %v2800_v3 = vmul.f32 %v9107_v62, %v9087_v56  ;;  %v2857_v9 = vadd.f32 %v9109_v19, %v2703_v47  ;;  %v2858_v22 = vadd.f32 %v2794_v36, %v2704_v39  ;;  %v2859_v57 = vadd.f32 %v2795_v54, %v2705_v51 }
 0x20f   : > { %v2860_v63 = vadd.f32 %v2796_v23, %v2706_v18  ;;  %v2861_v30 = vadd.f32 %v2797_v24, %v2707_v53  ;;  %v2862_v2 = vadd.f32 %v2798_v14, %v2708_v44  ;;  %v2863_v43 = vadd.f32 %v2799_v20, %v2709_v37  ;;  %v9115_v44 = vld [vmem:[#allocation98_spill] sm:$0xff] }
 0x210   : > { %v2864_v13 = vadd.f32 %v2800_v3, %v2710_v7  ;;  %v2965_v35 = vmul.f32 %v9110_v46, %v9078_v31  ;;  %v2966_v10 = vmul.f32 %v9111_v52, %v9080_v48  ;;  %v2967_v33 = vmul.f32 %v9112_v17, %v9082_v26 }
 0x211   : > { %v2968_v28 = vmul.f32 %v9113_v6, %v9084_v41  ;;  %v2969_v55 = vmul.f32 %v9110_v46, %v9085_v16  ;;  %v2970_v11 = vmul.f32 %v9111_v52, %v9086_v49  ;;  %v2971_v21 = vmul.f32 %v9112_v17, %v9087_v56  ;;  %v9135_v6 = vld [vmem:[#allocation37_spill] sm:$0xff]  ;;  %v9136_v17 = vld [vmem:[#allocation38_spill] sm:$0xff] }
 0x212   : > { %v3158_v25 = vrot.slane %v2965_v35, 7  ;;  %v3161_v12 = vrot.slane %v2966_v10, 7  ;;  %v3164_v0 = vrot.slane %v2967_v33, 7  ;;  %v3459_v47 = vmul.f32 %v9114_v50, %v9078_v31 }
 0x213   : > { %v3167_v39 = vrot.slane %v2968_v28, 7  ;;  %v3170_v51 = vrot.slane %v2969_v55, 7  ;;  %v3173_v18 = vrot.slane %v2970_v11, 7  ;;  %v3176_v53 = vrot.slane %v2971_v21, 7  ;;  %v9117_v21 = vld [vmem:[#allocation93_spill] sm:$0xff] }
 0x214   : > { %v9116_v37 = vrot.slane %v9115_v44, 9  ;;  %v3160_v36 = vrot.slane %v3158_v25, 2  ;;  %v3163_v54 = vrot.slane %v3161_v12, 2  ;;  %v3166_v23 = vrot.slane %v3164_v0, 2 }
 0x215   : > { %v3169_v24 = vrot.slane %v3167_v39, 2  ;;  %v3172_v14 = vrot.slane %v3170_v51, 2  ;;  %v3175_v20 = vrot.slane %v3173_v18, 2  ;;  %v3178_v3 = vrot.slane %v3176_v53, 2 }
 0x216   : > { %v3159_v7 = vsel %vm5804_vm8, %v9116_v37, %v3158_v25  ;;  %v3162_v19 = vsel %vm5804_vm8, %v3160_v36, %v3161_v12  ;;  %v3165_v35 = vsel %vm5804_vm8, %v3163_v54, %v3164_v0  ;;  %v3168_v10 = vsel %vm5804_vm8, %v3166_v23, %v3167_v39 }
 0x217   : > { %v3369_v33 = vadd.f32 %v3159_v7, %v2857_v9  ;;  %v3171_v28 = vsel %vm5804_vm8, %v3169_v24, %v3170_v51  ;;  %v3174_v55 = vsel %vm5804_vm8, %v3172_v14, %v3173_v18  ;;  %v3177_v11 = vsel %vm5804_vm8, %v3175_v20, %v3176_v53  ;;  %v9119_v51 = vld [vmem:[#allocation22_spill] sm:$0xff]  ;;  %v9120_v18 = vld [vmem:[#allocation20_spill] sm:$0xff] }
 0x218   : > { %v9118_v25 = vrot.slane %v9117_v21, 7  ;;  %v3370_v44 = vadd.f32 %v3162_v19, %v2858_v22  ;;  %v3371_v0 = vadd.f32 %v3165_v35, %v2859_v57  ;;  %v3372_v37 = vadd.f32 %v3168_v10, %v2860_v63  ;;  %v9121_v53 = vld [vmem:[#allocation34_spill] sm:$0xff]  ;;  %v9122_v10 = vld [vmem:[#allocation92_spill] sm:$0xff]  ;;  %v9125_v21 = vld [vmem:[#allocation43_spill] sm:$0xff] }
 0x219   : > { %v3373_v36 = vadd.f32 %v3171_v28, %v2861_v30  ;;  %v3374_v39 = vadd.f32 %v3174_v55, %v2862_v2  ;;  %v3375_v9 = vadd.f32 %v3177_v11, %v2863_v43  ;;  %v3460_v54 = vmul.f32 %v9119_v51, %v9080_v48  ;;  %v9123_v28 = vld [vmem:[#allocation35_spill] sm:$0xff] }
 0x21a   : > { %v3180_v12 = vsel %vm5804_vm8, %v3178_v3, %v9118_v25  ;;  %v3461_v23 = vmul.f32 %v9120_v18, %v9082_v26  ;;  %v3462_v24 = vmul.f32 %v9121_v53, %v9084_v41  ;;  %v3463_v14 = vmul.f32 %v9114_v50, %v9085_v16  ;;  %v9124_v11 = vld [vmem:[#allocation91_spill] sm:$0xff]  ;;  %v9129_v50 = vld [vmem:[#allocation36_spill] sm:$0xff] }
 0x21b   : > { %v3376_v7 = vadd.f32 %v3180_v12, %v2864_v13  ;;  %v3464_v22 = vmul.f32 %v9119_v51, %v9086_v49  ;;  %v3465_v57 = vmul.f32 %v9120_v18, %v9087_v56  ;;  %v3466_v63 = vmul.f32 %v9121_v53, %v9092_v34  ;;  %v9126_v12 = vld [vmem:[#allocation96_spill] sm:$0xff]  ;;  %v9128_v51 = vld [vmem:[#allocation103_spill] sm:$0xff]  ;;  %v9134_v53 = vld [vmem:[#allocation42_spill] sm:$0xff] }
 0x21c   : > { %v3523_v30 = vadd.f32 %v3459_v47, %v3369_v33  ;;  %v3524_v2 = vadd.f32 %v3460_v54, %v3370_v44  ;;  %v3525_v43 = vadd.f32 %v3461_v23, %v3371_v0  ;;  %v3526_v13 = vadd.f32 %v3462_v24, %v3372_v37  ;;  %v9130_v47 = vld [vmem:[#allocation108_spill] sm:$0xff]  ;;  %v9131_v44 = vld [vmem:[#allocation107_spill] sm:$0xff] }
 0x21d   : > { %v3527_v20 = vadd.f32 %v3463_v14, %v3373_v36  ;;  %v3528_v3 = vadd.f32 %v3464_v22, %v3374_v39  ;;  %v3529_v19 = vadd.f32 %v3465_v57, %v3375_v9  ;;  %v3530_v35 = vadd.f32 %v3466_v63, %v3376_v7  ;;  %v9132_v37 = vld [vmem:[#allocation112_spill] sm:$0xff]  ;;  %v9133_v63 = vld [vmem:[#allocation27_spill] sm:$0xff] }
 0x21e   : > { %v3613_v55 = vmul.f32 %v9123_v28, %v9122_v10  ;;  %v3614_v25 = vmul.f32 %v9125_v21, %v9124_v11  ;;  %v3615_v18 = vmul.f32 %v9127_v4, %v9126_v12  ;;  %v3616_v34 = vmul.f32 %v9129_v50, %v9128_v51 }
 0x21f   : > { %v3617_v33 = vmul.f32 %v9123_v28, %v9130_v47  ;;  %v3618_v0 = vmul.f32 %v9125_v21, %v9131_v44  ;;  %v3619_v36 = vmul.f32 %v9127_v4, %v9132_v37  ;;  %v3620_v39 = vmul.f32 %v9129_v50, %v9094_v29 }
 0x220   : > { %v3677_v9 = vadd.f32 %v3613_v55, %v3523_v30  ;;  %v3678_v7 = vadd.f32 %v3614_v25, %v3524_v2  ;;  %v3679_v54 = vadd.f32 %v3615_v18, %v3525_v43  ;;  %v3680_v23 = vadd.f32 %v3616_v34, %v3526_v13  ;;  %v9137_v30 = vld [vmem:[#allocation44_spill] sm:$0xff] }
 0x221   : > { %v3681_v24 = vadd.f32 %v3617_v33, %v3527_v20  ;;  %v3682_v14 = vadd.f32 %v3618_v0, %v3528_v3  ;;  %v3683_v22 = vadd.f32 %v3619_v36, %v3529_v19  ;;  %v3684_v57 = vadd.f32 %v3620_v39, %v3530_v35  ;;  %v9138_v20 = vld [vmem:[#allocation39_spill] sm:$0xff] }
 0x222   : > { %v3784_v28 = vmul.f32 %v9133_v63, %v9122_v10  ;;  %v3785_v21 = vmul.f32 %v9134_v53, %v9124_v11  ;;  %v3786_v4 = vmul.f32 %v9135_v6, %v9126_v12  ;;  %v3787_v50 = vmul.f32 %v9136_v17, %v9128_v51 }
 0x223   : > { %v3788_v18 = vmul.f32 %v9137_v30, %v9130_v47  ;;  %v3789_v2 = vmul.f32 %v9134_v53, %v9131_v44  ;;  %v3790_v43 = vmul.f32 %v9135_v6, %v9132_v37  ;;  %v3791_v13 = vmul.f32 %v9136_v17, %v9094_v29 }
 0x224   : > { %v3792_v3 = vmul.f32 %v9138_v20, %v7336_v58  ;;  %v5334_v19 = vrot.slane %v3784_v28, 9  ;;  %v3978_v35 = vrot.slane %v3785_v21, 7  ;;  %v3981_v55 = vrot.slane %v3786_v4, 7 }
 0x225   : > { %v3984_v25 = vrot.slane %v3787_v50, 7  ;;  %v3987_v34 = vrot.slane %v3788_v18, 7  ;;  %v3990_v33 = vrot.slane %v3789_v2, 7  ;;  %v3993_v0 = vrot.slane %v3790_v43, 7 }
 0x226   : > { %v3996_v36 = vrot.slane %v3791_v13, 7  ;;  %v3999_v39 = vrot.slane %v3792_v3, 7  ;;  %v3979_v30 = vsel %vm5804_vm8, %v5334_v19, %v3978_v35  ;;  %v3980_v53 = vrot.slane %v3978_v35, 2 }
 0x227   : > { %v3983_v6 = vrot.slane %v3981_v55, 2  ;;  %v3986_v63 = vrot.slane %v3984_v25, 2  ;;  %v3989_v52 = vrot.slane %v3987_v34, 2  ;;  %v3992_v17 = vrot.slane %v3990_v33, 2 }
 0x228   : > { %v3995_v46 = vrot.slane %v3993_v0, 2  ;;  %v3998_v62 = vrot.slane %v3996_v36, 2  ;;  %v3982_v28 = vsel %vm5804_vm8, %v3980_v53, %v3981_v55  ;;  %v4189_v21 = vadd.f32 %v3979_v30, %v3677_v9 }
 0x229   : > { %v3985_v4 = vsel %vm5804_vm8, %v3983_v6, %v3984_v25  ;;  %v3988_v50 = vsel %vm5804_vm8, %v3986_v63, %v3987_v34  ;;  %v3991_v18 = vsel %vm5804_vm8, %v3989_v52, %v3990_v33  ;;  %v3994_v2 = vsel %vm5804_vm8, %v3992_v17, %v3993_v0 }
 0x22a   : > { %v3997_v43 = vsel %vm5804_vm8, %v3995_v46, %v3996_v36  ;;  %v4000_v13 = vsel %vm5804_vm8, %v3998_v62, %v3999_v39  ;;  %v4190_v53 = vadd.f32 %v3982_v28, %v3678_v7  ;;  %v4191_v3 = vadd.f32 %v3985_v4, %v3679_v54  ;;  %v9139_v36 = vld [vmem:[#allocation56_spill] sm:$0xff]  ;;  %v9140_v28 = vld [vmem:[#allocation45_spill] sm:$0xff] }
 0x22b   : > { %v4192_v19 = vadd.f32 %v3988_v50, %v3680_v23  ;;  %v4193_v6 = vadd.f32 %v3991_v18, %v3681_v24  ;;  %v4194_v35 = vadd.f32 %v3994_v2, %v3682_v14  ;;  %v4195_v55 = vadd.f32 %v3997_v43, %v3683_v22  ;;  %v9141_v50 = vld [vmem:[#allocation66_spill] sm:$0xff] }
 0x22c   : > { %v4196_v63 = vadd.f32 %v4000_v13, %v3684_v57  ;;  %v4279_v9 = vmul.f32 %v8951_v1, %v9124_v11  ;;  %v4280_v52 = vmul.f32 %v8954_v59, %v9126_v12  ;;  %v4281_v17 = vmul.f32 %v8922_v45, %v9128_v51 }
 0x22d   : > { %v4282_v46 = vmul.f32 %v8924_v60, %v9130_v47  ;;  %v4283_v62 = vmul.f32 %v8951_v1, %v9131_v44  ;;  %v4284_v7 = vmul.f32 %v8954_v59, %v9132_v37  ;;  %v4285_v54 = vmul.f32 %v8922_v45, %v9094_v29 }
 0x22e   : > { %v4286_v23 = vmul.f32 %v8924_v60, %v7336_v58  ;;  %v4343_v24 = vadd.f32 %v4279_v9, %v4189_v21  ;;  %v4344_v14 = vadd.f32 %v4280_v52, %v4190_v53  ;;  %v4345_v22 = vadd.f32 %v4281_v17, %v4191_v3 }
 0x22f   : > { %v4346_v57 = vadd.f32 %v4282_v46, %v4192_v19  ;;  %v4347_v30 = vadd.f32 %v4283_v62, %v4193_v6  ;;  %v4348_v25 = vadd.f32 %v4284_v7, %v4194_v35  ;;  %v4349_v34 = vadd.f32 %v4285_v54, %v4195_v55 }
 0x230   : > { %v4350_v33 = vadd.f32 %v4286_v23, %v4196_v63  ;;  %v4434_v0 = vadd.f32 %v6942_v8, %v4343_v24  ;;  %v4435_v39 = vadd.f32 %v9139_v36, %v4344_v14  ;;  %v4436_v4 = vadd.f32 %v9140_v28, %v4345_v22  ;;  %v9142_v14 = vld [vmem:[#allocation6_spill] sm:$0xff] }
 0x231   : > { %v4437_v18 = vadd.f32 %v9141_v50, %v4346_v57  ;;  %v4438_v2 = vadd.f32 %v6942_v8, %v4347_v30  ;;  %v4439_v43 = vadd.f32 %v9139_v36, %v4348_v25  ;;  %v4440_v21 = vadd.f32 %v9140_v28, %v4349_v34  ;;  %v9143_v25 = vld [vmem:[#allocation5_spill] sm:$0xff] }
 0x232   : > { %v4441_v13 = vadd.f32 %v9141_v50, %v4350_v33  ;;  %v4498_v53 = vmax.f32 %v4434_v0, 0.0  ;;  %v4499_v3 = vmax.f32 %v4435_v39, 0.0  ;;  %v4500_v19 = vmax.f32 %v4436_v4, 0.0  ;;  %v9144_v33 = vld [vmem:[#allocation23_spill] sm:$0xff] }
 0x233   : > { %v4501_v6 = vmax.f32 %v4437_v18, 0.0  ;;  %v4502_v35 = vmax.f32 %v4438_v2, 0.0  ;;  %v4503_v55 = vmax.f32 %v4439_v43, 0.0  ;;  %v4504_v63 = vmax.f32 %v4440_v21, 0.0  ;;  %v9145_v18 = vld [vmem:[#allocation4_spill] sm:$0xff]  ;;  %v9146_v21 = vld [vmem:[#allocation2_spill] sm:$0xff] }
 0x234   : > { %v4505_v9 = vmax.f32 %v4441_v13, 0.0  ;;  %v4562_v52 = vmin.f32 %v4498_v53, 6.0  ;;  %v4563_v17 = vmin.f32 %v4499_v3, 6.0  ;;  %v4564_v46 = vmin.f32 %v4500_v19, 6.0  ;;  %v9147_v19 = vld [vmem:[#allocation10_spill] sm:$0xff] }
 0x235   : > { %v4565_v62 = vmin.f32 %v4501_v6, 6.0  ;;  %v4566_v7 = vmin.f32 %v4502_v35, 6.0  ;;  %v4567_v54 = vmin.f32 %v4503_v55, 6.0  ;;  %v4568_v23 = vmin.f32 %v4504_v63, 6.0  ;;  %v9148_v63 = vld [vmem:[#allocation13_spill] sm:$0xff] }
 0x236   : > { %v4569_v24 = vmin.f32 %v4505_v9, 6.0  ;;  %v1975_v22 = vmul.f32 %v9142_v14, %v9078_v31  ;;  %v4768_v57 = vcombine.low %v4562_v52, %v4563_v17  ;;  %v1976_v34 = vmul.f32 %v9143_v25, %v9080_v48  ;;  %v9149_v52 = vld [vmem:[#allocation28_spill] sm:$0xff] }
 0x237   : > { %v4769_v30 = vcombine.low %v4564_v46, %v4565_v62  ;;  %v1977_v0 = vmul.f32 %v9144_v33, %v9082_v26  ;;  %v4785_v39 = vcombine.low %v4566_v7, %v4567_v54  ;;  %v1978_v2 = vmul.f32 %v9145_v18, %v9084_v41  ;;  %v9150_v62 = vld [vmem:[#allocation7_spill] sm:$0xff] }
 0x238   : > { %v4786_v4 = vcombine.low %v4568_v23, %v4569_v24  ;;  %v1979_v43 = vmul.f32 %v9142_v14, %v9085_v16  ;;  %v4776_v13 = vrot.slane %v4768_v57, %v9146_v21  ;;  %v1980_v3 = vmul.f32 %v9143_v25, %v9086_v49 }
 0x239   : > { %v4783_v53 = vrot.slane %v4769_v30, %v9146_v21  ;;  %v2155_v6 = vmul.f32 %v9147_v19, %v9080_v48  ;;  %v4793_v35 = vrot.slane %v4785_v39, %v9146_v21  ;;  %v2156_v9 = vmul.f32 %v9148_v63, %v9082_v26 }
 0x23a   : > { %v4800_v55 = vrot.slane %v4786_v4, %v9146_v21  ;;  %v2157_v17 = vmul.f32 %v9149_v52, %v9084_v41  ;;  %v2158_v7 = vmul.f32 %v9150_v62, %v9085_v16  ;;  %v2159_v54 = vmul.f32 %v9147_v19, %v9086_v49  ;;  %v9151_v4 = vld [vmem:[#allocation101_spill] sm:$0xff] }
 0x23b   : > { %v4784_v46 = vcombine.low %v4776_v13, %v4783_v53  ;;  %v2366_v23 = vrot.slane %v2155_v6, 7  ;;  %v2369_v57 = vrot.slane %v2156_v9, 7  ;;  %v2647_v39 = vmul.f32 %v9058_v42, %v9078_v31 }
 0x23c   : > { %v4801_v24 = vcombine.low %v4793_v35, %v4800_v55  ;;  %v2372_v30 = vrot.slane %v2157_v17, 7  ;;  %v2375_v52 = vrot.slane %v2158_v7, 7  ;;  %v2378_v13 = vrot.slane %v2159_v54, 7 }
 0x23d   : > { %v2367_v63 = vsel %vm5804_vm8, %v9151_v4, %v2366_v23  ;;  %v2368_v21 = vrot.slane %v2366_v23, 2  ;;  %v2371_v33 = vrot.slane %v2369_v57, 2  ;;  %v2648_v9 = vmul.f32 %v9059_v27, %v9080_v48 }
 0x23e   : > { %v4957_v53 = vpack.c.bf16 %v4801_v24, %v4784_v46  ;;  %v2374_v62 = vrot.slane %v2372_v30, 2  ;;  %v2558_v25 = vadd.f32 %v2367_v63, %v1975_v22  ;;  %v2377_v35 = vrot.slane %v2375_v52, 2  ;;  %v9152_v63 = vld [vmem:[#allocation89_spill] sm:$0xff] }
 0x23f   : > { %v2370_v6 = vsel %vm5804_vm8, %v2368_v21, %v2369_v57  ;;  %v2380_v55 = vrot.slane %v2378_v13, 2  ;;  %v2373_v31 = vsel %vm5804_vm8, %v2371_v33, %v2372_v30  ;;  %v2649_v22 = vmul.f32 %v9062_v61, %v9082_v26 }
 0x240   : > { %5411 = vmatmul.mubr.msk.bf16.gmra.mxu1 %vm4981_vm10, %v4957_v53  ;;  %v2376_v17 = vsel %vm5804_vm8, %v2374_v62, %v2375_v52  ;;  %v2559_v46 = vadd.f32 %v2370_v6, %v1976_v34  ;;  %v2379_v21 = vsel %vm5804_vm8, %v2377_v35, %v2378_v13  ;;  %v9153_v7 = vrot.slane %v9152_v63, 7  ;;  %v9154_v62 = vld [vmem:[#allocation105_spill] sm:$0xff]  ;;  %v9156_v63 = vld [vmem:[#allocation100_spill] sm:$0xff] }
 0x241   : > { %v2560_v54 = vadd.f32 %v2373_v31, %v1977_v0  ;;  %v2561_v23 = vadd.f32 %v2376_v17, %v1978_v2  ;;  %v2562_v24 = vadd.f32 %v2379_v21, %v1979_v43  ;;  %v2650_v33 = vmul.f32 %v9063_v15, %v9084_v41  ;;  %v9155_v53 = vld [vmem:[#allocation29_spill] sm:$0xff] }
 0x242   : > { %v2382_v48 = vsel %vm5804_vm8, %v2380_v55, %v9153_v7  ;;  %v2651_v34 = vmul.f32 %v9058_v42, %v9085_v16  ;;  %v2652_v26 = vmul.f32 %v9059_v27, %v9086_v49  ;;  %v2653_v52 = vmul.f32 %v9062_v61, %v9087_v56  ;;  %v9181_v15 = vld [vmem:[#allocation37_spill] sm:$0xff]  ;;  %v9182_v61 = vld [vmem:[#allocation38_spill] sm:$0xff] }
 0x243   : > { %v2563_v57 = vadd.f32 %v2382_v48, %v1980_v3  ;;  %v2711_v30 = vadd.f32 %v2647_v39, %v9154_v62  ;;  %v2712_v4 = vadd.f32 %v2648_v9, %v2558_v25  ;;  %v2713_v13 = vadd.f32 %v2649_v22, %v2559_v46  ;;  %v9157_v48 = vld [vmem:[#allocation9_spill] sm:$0xff] }
 0x244   : > { %v2714_v0 = vadd.f32 %v2650_v33, %v2560_v54  ;;  %v2715_v2 = vadd.f32 %v2651_v34, %v2561_v23  ;;  %v2801_v43 = vmul.f32 %v9108_v5, %v9122_v10  ;;  %v2716_v3 = vadd.f32 %v2652_v26, %v2562_v24  ;;  %v9158_v23 = vld [vmem:[#allocation21_spill] sm:$0xff]  ;;  %v9160_v34 = vld [vmem:[#allocation30_spill] sm:$0xff] }
 0x245   : > { %v2717_v41 = vadd.f32 %v2653_v52, %v2563_v57  ;;  %v2802_v16 = vmul.f32 %v9067_v40, %v9124_v11  ;;  %v2803_v49 = vmul.f32 %v9106_v32, %v9126_v12  ;;  %v2804_v56 = vmul.f32 %v9155_v53, %v9128_v51  ;;  %v9159_v57 = vld [vmem:[#allocation25_spill] sm:$0xff] }
 0x246   : > { %v2805_v25 = vmul.f32 %v9108_v5, %v9130_v47  ;;  %v2806_v39 = vmul.f32 %v9067_v40, %v9131_v44  ;;  %v2807_v6 = vmul.f32 %v9106_v32, %v9132_v37  ;;  %v2808_v35 = vmul.f32 %v9155_v53, %v9094_v29  ;;  %v9161_v52 = vld [vmem:[#allocation33_spill] sm:$0xff]  ;;  %v9173_v5 = vld [vmem:[#allocation59_spill] sm:$0xff]  ;;  %v9174_v53 = vld [vmem:[#allocation36_spill] sm:$0xff] }
 0x247   : > { %v2865_v55 = vadd.f32 %v2801_v43, %v2711_v30  ;;  %v2866_v9 = vadd.f32 %v2802_v16, %v2712_v4  ;;  %v2867_v31 = vadd.f32 %v2803_v49, %v2713_v13  ;;  %v2868_v17 = vadd.f32 %v2804_v56, %v2714_v0  ;;  %v9162_v0 = vld [vmem:[#allocation24_spill] sm:$0xff]  ;;  %v9179_v32 = vld [vmem:[#allocation27_spill] sm:$0xff]  ;;  %v9180_v40 = vld [vmem:[#allocation42_spill] sm:$0xff] }
 0x248   : > { %v2869_v46 = vadd.f32 %v2805_v25, %v2715_v2  ;;  %v2870_v22 = vadd.f32 %v2806_v39, %v2716_v3  ;;  %v2871_v21 = vadd.f32 %v2807_v6, %v2717_v41  ;;  %v2872_v7 = vadd.f32 %v2808_v35, %v9156_v63 }
 0x249   : > { %v2973_v54 = vmul.f32 %v9157_v48, %v9122_v10  ;;  %v2974_v24 = vmul.f32 %v9158_v23, %v9124_v11  ;;  %v2975_v33 = vmul.f32 %v9159_v57, %v9126_v12  ;;  %v2976_v26 = vmul.f32 %v9160_v34, %v9128_v51 }
 0x24a   : > { %v2977_v62 = vmul.f32 %v9161_v52, %v9130_v47  ;;  %v2978_v30 = vmul.f32 %v9158_v23, %v9131_v44  ;;  %v2979_v4 = vmul.f32 %v9159_v57, %v9132_v37  ;;  %v2980_v13 = vmul.f32 %v9160_v34, %v9094_v29  ;;  %v9172_v23 = vld [vmem:[#allocation26_spill] sm:$0xff] }
 0x24b   : > { %v2981_v2 = vmul.f32 %v9162_v0, %v7336_v58  ;;  %v5327_v43 = vrot.slane %v2973_v54, 9  ;;  %v3183_v3 = vrot.slane %v2974_v24, 7  ;;  %v3186_v41 = vrot.slane %v2975_v33, 7 }
 0x24c   : > { %v3189_v16 = vrot.slane %v2976_v26, 7  ;;  %v3192_v49 = vrot.slane %v2977_v62, 7  ;;  %v3195_v56 = vrot.slane %v2978_v30, 7  ;;  %v3198_v6 = vrot.slane %v2979_v4, 7 }
 0x24d   : > { %v3184_v25 = vsel %vm5804_vm8, %v5327_v43, %v3183_v3  ;;  %v3185_v39 = vrot.slane %v3183_v3, 2  ;;  %v3201_v35 = vrot.slane %v2980_v13, 7  ;;  %v3188_v63 = vrot.slane %v3186_v41, 2 }
 0x24e   : > { %v3191_v48 = vrot.slane %v3189_v16, 2  ;;  %v3194_v52 = vrot.slane %v3192_v49, 2  ;;  %v3197_v57 = vrot.slane %v3195_v56, 2  ;;  %v3200_v0 = vrot.slane %v3198_v6, 2 }
 0x24f   : > { %v3187_v34 = vsel %vm5804_vm8, %v3185_v39, %v3186_v41  ;;  %v3203_v54 = vrot.slane %v3201_v35, 2  ;;  %v3204_v24 = vrot.slane %v2981_v2, 7  ;;  %v3190_v33 = vsel %vm5804_vm8, %v3188_v63, %v3189_v16 }
 0x250   : > { %v3193_v26 = vsel %vm5804_vm8, %v3191_v48, %v3192_v49  ;;  %v3196_v62 = vsel %vm5804_vm8, %v3194_v52, %v3195_v56  ;;  %v3199_v30 = vsel %vm5804_vm8, %v3197_v57, %v3198_v6  ;;  %v3202_v4 = vsel %vm5804_vm8, %v3200_v0, %v3201_v35  ;;  %v9163_v49 = vld [vmem:[#allocation15_spill] sm:$0xff]  ;;  %v9164_v56 = vld [vmem:[#allocation22_spill] sm:$0xff]  ;;  %v9165_v6 = vld [vmem:[#allocation20_spill] sm:$0xff] }
 0x251   : > { %v3205_v13 = vsel %vm5804_vm8, %v3203_v54, %v3204_v24  ;;  %v3377_v43 = vadd.f32 %v3184_v25, %v2865_v55  ;;  %v3378_v2 = vadd.f32 %v3187_v34, %v2866_v9  ;;  %v3379_v3 = vadd.f32 %v3190_v33, %v2867_v31  ;;  %v9166_v35 = vld [vmem:[#allocation34_spill] sm:$0xff] }
 0x252   : > { %v3380_v41 = vadd.f32 %v3193_v26, %v2868_v17  ;;  %v3381_v16 = vadd.f32 %v3196_v62, %v2869_v46  ;;  %v3382_v39 = vadd.f32 %v3199_v30, %v2870_v22  ;;  %v3383_v63 = vadd.f32 %v3202_v4, %v2871_v21  ;;  %v9167_v26 = vld [vmem:[#allocation117_spill] sm:$0xff]  ;;  %v9168_v62 = vld [vmem:[#allocation35_spill] sm:$0xff]  ;;  %v9169_v4 = vld [vmem:[#allocation60_spill] sm:$0xff] }
 0x253   : > { %v3384_v48 = vadd.f32 %v3205_v13, %v2872_v7  ;;  %v3467_v52 = vmul.f32 %v9163_v49, %v9124_v11  ;;  %v3468_v57 = vmul.f32 %v9164_v56, %v9126_v12  ;;  %v3469_v0 = vmul.f32 %v9165_v6, %v9128_v51  ;;  %v9170_v13 = vld [vmem:[#allocation43_spill] sm:$0xff] }
 0x254   : > { %v3470_v54 = vmul.f32 %v9166_v35, %v9130_v47  ;;  %v3471_v55 = vmul.f32 %v9163_v49, %v9131_v44  ;;  %v3472_v9 = vmul.f32 %v9164_v56, %v9132_v37  ;;  %v3473_v31 = vmul.f32 %v9165_v6, %v9094_v29  ;;  %v9171_v49 = vld [vmem:[#allocation102_spill] sm:$0xff] }
 0x255   : > { %v3474_v17 = vmul.f32 %v9166_v35, %v7336_v58  ;;  %v3531_v46 = vadd.f32 %v3467_v52, %v3377_v43  ;;  %v3532_v22 = vadd.f32 %v3468_v57, %v3378_v2  ;;  %v3533_v21 = vadd.f32 %v3469_v0, %v3379_v3  ;;  %v9175_v43 = vld [vmem:[#allocation106_spill] sm:$0xff] }
 0x256   : > { %v3534_v7 = vadd.f32 %v3470_v54, %v3380_v41  ;;  %v3535_v34 = vadd.f32 %v3471_v55, %v3381_v16  ;;  %v3536_v25 = vadd.f32 %v3472_v9, %v3382_v39  ;;  %v3537_v24 = vadd.f32 %v3473_v31, %v3383_v63  ;;  %v9176_v3 = vld [vmem:[#allocation110_spill] sm:$0xff]  ;;  %v9177_v16 = vld [vmem:[#allocation104_spill] sm:$0xff]  ;;  %v9178_v63 = vld [vmem:[#allocation111_spill] sm:$0xff] }
 0x257   : > { %v3538_v33 = vadd.f32 %v3474_v17, %v3384_v48  ;;  %v3621_v30 = vmul.f32 %v9168_v62, %v9167_v26  ;;  %v3622_v56 = vmul.f32 %v9170_v13, %v9169_v4  ;;  %v3623_v6 = vmul.f32 %v9172_v23, %v9171_v49 }
 0x258   : > { %v3624_v35 = vmul.f32 %v9174_v53, %v9173_v5  ;;  %v3625_v2 = vmul.f32 %v9168_v62, %v9175_v43  ;;  %v3626_v41 = vmul.f32 %v9170_v13, %v9176_v3  ;;  %v3627_v39 = vmul.f32 %v9172_v23, %v9177_v16 }
 0x259   : > { %v3628_v48 = vmul.f32 %v9174_v53, %v9178_v63  ;;  %v3685_v52 = vadd.f32 %v3621_v30, %v3531_v46  ;;  %v3686_v57 = vadd.f32 %v3622_v56, %v3532_v22  ;;  %v3687_v0 = vadd.f32 %v3623_v6, %v3533_v21  ;;  %v9183_v56 = vld [vmem:[#allocation44_spill] sm:$0xff]  ;;  %v9184_v21 = vld [vmem:[#allocation109_spill] sm:$0xff] }
 0x25a   : > { %v3688_v54 = vadd.f32 %v3624_v35, %v3534_v7  ;;  %v3689_v55 = vadd.f32 %v3625_v2, %v3535_v34  ;;  %v3690_v9 = vadd.f32 %v3626_v41, %v3536_v25  ;;  %v3691_v31 = vadd.f32 %v3627_v39, %v3537_v24 }
 0x25b   : > { %v3692_v17 = vadd.f32 %v3628_v48, %v3538_v33  ;;  %v3793_v62 = vmul.f32 %v9179_v32, %v9167_v26  ;;  %v3794_v13 = vmul.f32 %v9180_v40, %v9169_v4  ;;  %v3795_v23 = vmul.f32 %v9181_v15, %v9171_v49 }
 0x25c   : > { %v3796_v53 = vmul.f32 %v9182_v61, %v9173_v5  ;;  %v3797_v6 = vmul.f32 %v9183_v56, %v9175_v43  ;;  %v3798_v35 = vmul.f32 %v9180_v40, %v9176_v3  ;;  %v3799_v46 = vmul.f32 %v9181_v15, %v9177_v16 }
 0x25d   : > { %v3800_v22 = vmul.f32 %v9182_v61, %v9178_v63  ;;  %v3801_v7 = vmul.f32 %v9138_v20, %v9184_v21  ;;  %v5335_v34 = vrot.slane %v3793_v62, 9  ;;  %v4003_v25 = vrot.slane %v3794_v13, 7 }
 0x25e   : > { %v4006_v24 = vrot.slane %v3795_v23, 7  ;;  %v4009_v33 = vrot.slane %v3796_v53, 7  ;;  %v4012_v26 = vrot.slane %v3797_v6, 7  ;;  %v4015_v30 = vrot.slane %v3798_v35, 7 }
 0x25f   : > { %v4018_v2 = vrot.slane %v3799_v46, 7  ;;  %v4021_v41 = vrot.slane %v3800_v22, 7  ;;  %v4024_v39 = vrot.slane %v3801_v7, 7  ;;  %v4004_v48 = vsel %vm5804_vm8, %v5335_v34, %v4003_v25 }
 0x260   : > { %v4005_v56 = vrot.slane %v4003_v25, 2  ;;  %v4008_v15 = vrot.slane %v4006_v24, 2  ;;  %v4011_v40 = vrot.slane %v4009_v33, 2  ;;  %v4014_v32 = vrot.slane %v4012_v26, 2 }
 0x261   : > { %v4017_v61 = vrot.slane %v4015_v30, 2  ;;  %v4020_v27 = vrot.slane %v4018_v2, 2  ;;  %v4023_v42 = vrot.slane %v4021_v41, 2  ;;  %v4197_v13 = vadd.f32 %v4004_v48, %v3685_v52 }
 0x262   : > { %v4007_v62 = vsel %vm5804_vm8, %v4005_v56, %v4006_v24  ;;  %v4010_v53 = vsel %vm5804_vm8, %v4008_v15, %v4009_v33  ;;  %v4013_v23 = vsel %vm5804_vm8, %v4011_v40, %v4012_v26  ;;  %v4016_v6 = vsel %vm5804_vm8, %v4014_v32, %v4015_v30 }
 0x263   : > { %v4019_v35 = vsel %vm5804_vm8, %v4017_v61, %v4018_v2  ;;  %v4022_v46 = vsel %vm5804_vm8, %v4020_v27, %v4021_v41  ;;  %v4025_v22 = vsel %vm5804_vm8, %v4023_v42, %v4024_v39  ;;  %v4198_v56 = vadd.f32 %v4007_v62, %v3686_v57 }
 0x264   : > { %v4199_v7 = vadd.f32 %v4010_v53, %v3687_v0  ;;  %v4200_v34 = vadd.f32 %v4013_v23, %v3688_v54  ;;  %v4201_v15 = vadd.f32 %v4016_v6, %v3689_v55  ;;  %v4202_v25 = vadd.f32 %v4019_v35, %v3690_v9 }
 0x265   : > { %v4203_v24 = vadd.f32 %v4022_v46, %v3691_v31  ;;  %v4204_v40 = vadd.f32 %v4025_v22, %v3692_v17  ;;  %v4287_v52 = vmul.f32 %v8951_v1, %v9169_v4  ;;  %v4288_v32 = vmul.f32 %v8954_v59, %v9171_v49 }
 0x266   : > { %v4289_v61 = vmul.f32 %v8922_v45, %v9173_v5  ;;  %v4290_v27 = vmul.f32 %v8924_v60, %v9175_v43  ;;  %v4291_v42 = vmul.f32 %v8951_v1, %v9176_v3  ;;  %v4292_v57 = vmul.f32 %v8954_v59, %v9177_v16 }
 0x267   : > { %v4293_v0 = vmul.f32 %v8922_v45, %v9178_v63  ;;  %v4294_v54 = vmul.f32 %v8924_v60, %v9184_v21  ;;  %v4351_v55 = vadd.f32 %v4287_v52, %v4197_v13  ;;  %v4352_v9 = vadd.f32 %v4288_v32, %v4198_v56 }
 0x268   : > { %v4353_v31 = vadd.f32 %v4289_v61, %v4199_v7  ;;  %v4354_v17 = vadd.f32 %v4290_v27, %v4200_v34  ;;  %v4355_v33 = vadd.f32 %v4291_v42, %v4201_v15  ;;  %v4356_v26 = vadd.f32 %v4292_v57, %v4202_v25 }
 0x269   : > { %v4357_v30 = vadd.f32 %v4293_v0, %v4203_v24  ;;  %v4358_v2 = vadd.f32 %v4294_v54, %v4204_v40  ;;  %v4442_v41 = vadd.f32 %v6942_v8, %v4351_v55  ;;  %v4443_v39 = vadd.f32 %v9139_v36, %v4352_v9  ;;  %v9185_v0 = vld [vmem:[#allocation166_spill] sm:$0xff] }
 0x26a   : > { %v4444_v48 = vadd.f32 %v9140_v28, %v4353_v31  ;;  %v4445_v62 = vadd.f32 %v9141_v50, %v4354_v17  ;;  %v4446_v53 = vadd.f32 %v6942_v8, %v4355_v33  ;;  %v4447_v23 = vadd.f32 %v9139_v36, %v4356_v26 }
 0x26b   : > { %v4448_v13 = vadd.f32 %v9140_v28, %v4357_v30  ;;  %v4449_v6 = vadd.f32 %v9141_v50, %v4358_v2  ;;  %v4506_v35 = vmax.f32 %v4442_v41, 0.0  ;;  %v4507_v46 = vmax.f32 %v4443_v39, 0.0  ;;  %v9186_v30 = vld [vmem:[#allocation5_spill] sm:$0xff]  ;;  %v9187_v41 = vld [vmem:[#allocation23_spill] sm:$0xff] }
 0x26c   : > { %v4508_v22 = vmax.f32 %v4444_v48, 0.0  ;;  %v4509_v56 = vmax.f32 %v4445_v62, 0.0  ;;  %v4510_v7 = vmax.f32 %v4446_v53, 0.0  ;;  %v4511_v34 = vmax.f32 %v4447_v23, 0.0  ;;  %v9188_v48 = vld [vmem:[#allocation2_spill] sm:$0xff] }
 0x26d   : > { %v4512_v15 = vmax.f32 %v4448_v13, 0.0  ;;  %v4513_v25 = vmax.f32 %v4449_v6, 0.0  ;;  %v4570_v24 = vmin.f32 %v4506_v35, 6.0  ;;  %v4571_v40 = vmin.f32 %v4507_v46, 6.0 }
 0x26e   : > { %v4572_v52 = vmin.f32 %v4508_v22, 6.0  ;;  %v4573_v32 = vmin.f32 %v4509_v56, 6.0  ;;  %v4574_v61 = vmin.f32 %v4510_v7, 6.0  ;;  %v4575_v27 = vmin.f32 %v4511_v34, 6.0  ;;  %v9189_v7 = vld [vmem:[#allocation3_spill] sm:$0xff] }
 0x26f   : > { %v4576_v42 = vmin.f32 %v4512_v15, 6.0  ;;  %v4577_v57 = vmin.f32 %v4513_v25, 6.0  ;;  %v7748_v54 = vcombine.high %v9185_v0, %v9185_v0  ;;  %v4802_v55 = vcombine.low %v4570_v24, %v4571_v40  ;;  %v9190_v15 = vld [vmem:[#allocation7_spill] sm:$0xff] }
 0x270   : > { %v4803_v9 = vcombine.low %v4572_v52, %v4573_v32  ;;  %v1982_v31 = vmul.f32 %v9145_v18, %v9122_v10  ;;  %v1983_v17 = vmul.f32 %v9142_v14, %v9124_v11  ;;  %v4819_v33 = vcombine.low %v4574_v61, %v4575_v27  ;;  %v9191_v52 = vld [vmem:[#allocation13_spill] sm:$0xff]  ;;  %v9192_v61 = vld [vmem:[#allocation28_spill] sm:$0xff] }
 0x271   : > { %v4820_v26 = vcombine.low %v4576_v42, %v4577_v57  ;;  %v1984_v2 = vmul.f32 %v9186_v30, %v9126_v12  ;;  %v1985_v39 = vmul.f32 %v9187_v41, %v9128_v51  ;;  %v4810_v62 = vrot.slane %v4802_v55, %v9188_v48  ;;  %v9193_v55 = vld [vmem:[#allocation14_spill] sm:$0xff] }
 0x272   : > { %v4817_v53 = vrot.slane %v4803_v9, %v9188_v48  ;;  %v1986_v23 = vmul.f32 %v9145_v18, %v9130_v47  ;;  %v1987_v13 = vmul.f32 %v9142_v14, %v9131_v44  ;;  %v4827_v6 = vrot.slane %v4819_v33, %v9188_v48 }
 0x273   : > { %v4834_v35 = vrot.slane %v4820_v26, %v9188_v48  ;;  %v1988_v46 = vmul.f32 %v9186_v30, %v9132_v37  ;;  %v1989_v22 = vmul.f32 %v9187_v41, %v9094_v29  ;;  %v2162_v34 = vmul.f32 %v9189_v7, %v9122_v10 }
 0x274   : > { %v4818_v56 = vcombine.low %v4810_v62, %v4817_v53  ;;  %v2163_v25 = vmul.f32 %v9190_v15, %v9124_v11  ;;  %v2164_v24 = vmul.f32 %v9147_v19, %v9126_v12  ;;  %v2165_v32 = vmul.f32 %v9191_v52, %v9128_v51 }
 0x275   : > { %v4835_v40 = vcombine.low %v4827_v6, %v4834_v35  ;;  %v2166_v27 = vmul.f32 %v9192_v61, %v9130_v47  ;;  %v2167_v42 = vmul.f32 %v9190_v15, %v9131_v44  ;;  %v2168_v57 = vmul.f32 %v9147_v19, %v9132_v37 }
 0x276   : > { %v2169_v10 = vmul.f32 %v9191_v52, %v9094_v29  ;;  %v2170_v9 = vmul.f32 %v9193_v55, %v7336_v58  ;;  %v5320_v33 = vrot.slane %v2162_v34, 9  ;;  %v2388_v62 = vrot.slane %v2163_v25, 7 }
 0x277   : > { %v4958_v26 = vpack.c.bf16 %v4835_v40, %v4818_v56  ;;  %v2391_v53 = vrot.slane %v2164_v24, 7  ;;  %v2394_v6 = vrot.slane %v2165_v32, 7  ;;  %v2397_v35 = vrot.slane %v2166_v27, 7 }
 0x278   : > { %v2400_v7 = vrot.slane %v2167_v42, 7  ;;  %v2403_v61 = vrot.slane %v2168_v57, 7  ;;  %v2406_v48 = vrot.slane %v2169_v10, 7  ;;  %v2389_v15 = vsel %vm5804_vm8, %v5320_v33, %v2388_v62 }
 0x279   : > { %5414 = vmatprep.mubr.msk.bf16.mxu1 %vm4981_vm10, %v4958_v26  ;;  %v2390_v19 = vrot.slane %v2388_v62, 2  ;;  %v2393_v18 = vrot.slane %v2391_v53, 2  ;;  %v2396_v52 = vrot.slane %v2394_v6, 2  ;;  %v2399_v41 = vrot.slane %v2397_v35, 2 }
 0x27a   : > { %v2402_v30 = vrot.slane %v2400_v7, 2  ;;  %v2405_v55 = vrot.slane %v2403_v61, 2  ;;  %v2408_v34 = vrot.slane %v2406_v48, 2  ;;  %v2409_v40 = vrot.slane %v2170_v9, 7 }
 0x27b   : > { %v2392_v56 = vsel %vm5804_vm8, %v2390_v19, %v2391_v53  ;;  %v2395_v25 = vsel %vm5804_vm8, %v2393_v18, %v2394_v6  ;;  %v2398_v24 = vsel %vm5804_vm8, %v2396_v52, %v2397_v35  ;;  %v2401_v32 = vsel %vm5804_vm8, %v2399_v41, %v2400_v7  ;;  %v9194_v53 = vld [vmem:[#allocation8_spill] sm:$0xff]  ;;  %v9198_v6 = vld [vmem:[#allocation19_spill] sm:$0xff]  ;;  %v9199_v35 = vld [vmem:[#allocation18_spill] sm:$0xff] }
 0x27c   : > { %v2404_v27 = vsel %vm5804_vm8, %v2402_v30, %v2403_v61  ;;  %v2407_v42 = vsel %vm5804_vm8, %v2405_v55, %v2406_v48  ;;  %v2565_v57 = vadd.f32 %v2389_v15, %v1982_v31  ;;  %v2410_v19 = vsel %vm5804_vm8, %v2408_v34, %v2409_v40  ;;  %v9195_v7 = vld [vmem:[#allocation16_spill] sm:$0xff]  ;;  %v9196_v61 = vld [vmem:[#allocation11_spill] sm:$0xff]  ;;  %v9197_v31 = vld [vmem:[#allocation17_spill] sm:$0xff] }
 0x27d   : > { %v2566_v10 = vadd.f32 %v2392_v56, %v1983_v17  ;;  %v2567_v33 = vadd.f32 %v2395_v25, %v1984_v2  ;;  %v2568_v18 = vadd.f32 %v2398_v24, %v1985_v39  ;;  %v2569_v26 = vadd.f32 %v2401_v32, %v1986_v23  ;;  %v9200_v34 = vld [vmem:[#allocation29_spill] sm:$0xff]  ;;  %v9201_v56 = vld [vmem:[#allocation12_spill] sm:$0xff] }
 0x27e   : > { %v2570_v62 = vadd.f32 %v2404_v27, %v1987_v13  ;;  %v2571_v52 = vadd.f32 %v2407_v42, %v1988_v46  ;;  %v2572_v9 = vadd.f32 %v2410_v19, %v1989_v22  ;;  %v2655_v41 = vmul.f32 %v9194_v53, %v9124_v11  ;;  %v9202_v32 = vld [vmem:[#allocation121_spill] sm:$0xff] }
 0x27f   : > { %v2656_v30 = vmul.f32 %v9195_v7, %v9126_v12  ;;  %v2657_v48 = vmul.f32 %v9196_v61, %v9128_v51  ;;  %v2658_v15 = vmul.f32 %v9197_v31, %v9130_v47  ;;  %v2659_v17 = vmul.f32 %v9194_v53, %v9131_v44 }
 0x280   : > { %v2660_v2 = vmul.f32 %v9195_v7, %v9132_v37  ;;  %v2661_v39 = vmul.f32 %v9196_v61, %v9094_v29  ;;  %v2662_v11 = vmul.f32 %v9197_v31, %v7336_v58  ;;  %v2719_v23 = vadd.f32 %v2655_v41, %v2565_v57 }
 0x281   : > { %v2720_v12 = vadd.f32 %v2656_v30, %v2566_v10  ;;  %v2721_v13 = vadd.f32 %v2657_v48, %v2567_v33  ;;  %v2722_v46 = vadd.f32 %v2658_v15, %v2568_v18  ;;  %v2723_v51 = vadd.f32 %v2659_v17, %v2569_v26  ;;  %v9205_v30 = vld [vmem:[#allocation30_spill] sm:$0xff]  ;;  %v9206_v15 = vld [vmem:[#allocation33_spill] sm:$0xff] }
 0x282   : > { %v2724_v22 = vadd.f32 %v2660_v2, %v2570_v62  ;;  %v2725_v55 = vadd.f32 %v2661_v39, %v2571_v52  ;;  %v2726_v47 = vadd.f32 %v2662_v11, %v2572_v9  ;;  %v2810_v44 = vmul.f32 %v9198_v6, %v9169_v4  ;;  %v9203_v62 = vld [vmem:[#allocation21_spill] sm:$0xff] }
 0x283   : > { %v2811_v37 = vmul.f32 %v9199_v35, %v9171_v49  ;;  %v2812_v29 = vmul.f32 %v9200_v34, %v9173_v5  ;;  %v2813_v58 = vmul.f32 %v9201_v56, %v9175_v43  ;;  %v2814_v25 = vmul.f32 %v9198_v6, %v9176_v3  ;;  %v9204_v9 = vld [vmem:[#allocation25_spill] sm:$0xff]  ;;  %v9229_v6 = vld [vmem:[#allocation38_spill] sm:$0xff] }
 0x284   : > { %v2815_v24 = vmul.f32 %v9199_v35, %v9177_v16  ;;  %v2816_v40 = vmul.f32 %v9200_v34, %v9178_v63  ;;  %v2873_v27 = vadd.f32 %v9202_v32, %v2719_v23  ;;  %v2874_v42 = vadd.f32 %v2810_v44, %v2720_v12  ;;  %v9207_v12 = vld [vmem:[#allocation15_spill] sm:$0xff]  ;;  %v9222_v34 = vld [vmem:[#allocation36_spill] sm:$0xff]  ;;  %v9228_v35 = vld [vmem:[#allocation37_spill] sm:$0xff] }
 0x285   : > { %v2875_v57 = vadd.f32 %v2811_v37, %v2721_v13  ;;  %v2876_v19 = vadd.f32 %v2812_v29, %v2722_v46  ;;  %v2877_v10 = vadd.f32 %v2813_v58, %v2723_v51  ;;  %v2878_v33 = vadd.f32 %v2814_v25, %v2724_v22 }
 0x286   : > { %v2879_v18 = vadd.f32 %v2815_v24, %v2725_v55  ;;  %v2880_v26 = vadd.f32 %v2816_v40, %v2726_v47  ;;  %v2983_v52 = vmul.f32 %v9203_v62, %v9169_v4  ;;  %v2984_v41 = vmul.f32 %v9204_v9, %v9171_v49  ;;  %v9208_v47 = vld [vmem:[#allocation119_spill] sm:$0xff] }
 0x287   : > { %v2985_v48 = vmul.f32 %v9205_v30, %v9173_v5  ;;  %v2986_v17 = vmul.f32 %v9206_v15, %v9175_v43  ;;  %v2987_v2 = vmul.f32 %v9203_v62, %v9176_v3  ;;  %v2988_v39 = vmul.f32 %v9204_v9, %v9177_v16  ;;  %v9220_v9 = vld [vmem:[#allocation26_spill] sm:$0xff] }
 0x288   : > { %v2989_v11 = vmul.f32 %v9205_v30, %v9178_v63  ;;  %v3208_v23 = vrot.slane %v2983_v52, 7  ;;  %v3475_v13 = vmul.f32 %v9207_v12, %v9169_v4  ;;  %v3211_v46 = vrot.slane %v2984_v41, 7  ;;  %v9221_v62 = vld [vmem:[#allocation142_spill] sm:$0xff] }
 0x289   : > { %v3214_v51 = vrot.slane %v2985_v48, 7  ;;  %v3217_v22 = vrot.slane %v2986_v17, 7  ;;  %v3220_v55 = vrot.slane %v2987_v2, 7  ;;  %v9209_v44 = vrot.slane %v9208_v47, 9  ;;  %v9210_v47 = vld [vmem:[#allocation116_spill] sm:$0xff] }
 0x28a   : > { %v3210_v29 = vrot.slane %v3208_v23, 2  ;;  %v3223_v58 = vrot.slane %v2988_v39, 7  ;;  %v3226_v25 = vrot.slane %v2989_v11, 7  ;;  %v3213_v24 = vrot.slane %v3211_v46, 2 }
 0x28b   : > { %v3209_v37 = vsel %vm5804_vm8, %v9209_v44, %v3208_v23  ;;  %v3216_v40 = vrot.slane %v3214_v51, 2  ;;  %v3219_v32 = vrot.slane %v3217_v22, 2  ;;  %v3222_v15 = vrot.slane %v3220_v55, 2 }
 0x28c   : > { %v3212_v52 = vsel %vm5804_vm8, %v3210_v29, %v3211_v46  ;;  %v3225_v30 = vrot.slane %v3223_v58, 2  ;;  %v3228_v41 = vrot.slane %v3226_v25, 2  ;;  %v3385_v48 = vadd.f32 %v3209_v37, %v2873_v27 }
 0x28d   : > { %v3215_v17 = vsel %vm5804_vm8, %v3213_v24, %v3214_v51  ;;  %v3218_v2 = vsel %vm5804_vm8, %v3216_v40, %v3217_v22  ;;  %v3221_v39 = vsel %vm5804_vm8, %v3219_v32, %v3220_v55  ;;  %v3224_v11 = vsel %vm5804_vm8, %v3222_v15, %v3223_v58  ;;  %v9212_v55 = vld [vmem:[#allocation22_spill] sm:$0xff]  ;;  %v9213_v15 = vld [vmem:[#allocation20_spill] sm:$0xff] }
 0x28e   : > { %v3227_v23 = vsel %vm5804_vm8, %v3225_v30, %v3226_v25  ;;  %v9211_v46 = vrot.slane %v9210_v47, 7  ;;  %v3386_v44 = vadd.f32 %v3212_v52, %v2874_v42  ;;  %v3387_v37 = vadd.f32 %v3215_v17, %v2875_v57  ;;  %v9214_v30 = vld [vmem:[#allocation34_spill] sm:$0xff] }
 0x28f   : > { %v3388_v51 = vadd.f32 %v3218_v2, %v2876_v19  ;;  %v3389_v29 = vadd.f32 %v3221_v39, %v2877_v10  ;;  %v3390_v24 = vadd.f32 %v3224_v11, %v2878_v33  ;;  %v3391_v22 = vadd.f32 %v3227_v23, %v2879_v18  ;;  %v9215_v39 = vld [vmem:[#allocation113_spill] sm:$0xff]  ;;  %v9216_v11 = vld [vmem:[#allocation35_spill] sm:$0xff] }
 0x290   : > { %v3230_v27 = vsel %vm5804_vm8, %v3228_v41, %v9211_v46  ;;  %v3476_v32 = vmul.f32 %v9212_v55, %v9171_v49  ;;  %v3477_v58 = vmul.f32 %v9213_v15, %v9173_v5  ;;  %v3478_v25 = vmul.f32 %v9214_v30, %v9175_v43  ;;  %v9217_v46 = vld [vmem:[#allocation141_spill] sm:$0xff] }
 0x291   : > { %v3392_v40 = vadd.f32 %v3230_v27, %v2880_v26  ;;  %v3479_v47 = vmul.f32 %v9207_v12, %v9176_v3  ;;  %v3480_v42 = vmul.f32 %v9212_v55, %v9177_v16  ;;  %v3481_v57 = vmul.f32 %v9213_v15, %v9178_v63  ;;  %v9218_v27 = vld [vmem:[#allocation43_spill] sm:$0xff]  ;;  %v9219_v12 = vld [vmem:[#allocation144_spill] sm:$0xff] }
 0x292   : > { %v3482_v19 = vmul.f32 %v9214_v30, %v9184_v21  ;;  %v3539_v10 = vadd.f32 %v3475_v13, %v3385_v48  ;;  %v3540_v33 = vadd.f32 %v3476_v32, %v3386_v44  ;;  %v3541_v18 = vadd.f32 %v3477_v58, %v3387_v37  ;;  %v9223_v13 = vld [vmem:[#allocation145_spill] sm:$0xff]  ;;  %v9224_v44 = vld [vmem:[#allocation48_spill] sm:$0xff]  ;;  %v9227_v30 = vld [vmem:[#allocation42_spill] sm:$0xff] }
 0x293   : > { %v3542_v26 = vadd.f32 %v3478_v25, %v3388_v51  ;;  %v3543_v52 = vadd.f32 %v3479_v47, %v3389_v29  ;;  %v3544_v41 = vadd.f32 %v3480_v42, %v3390_v24  ;;  %v3545_v17 = vadd.f32 %v3481_v57, %v3391_v22  ;;  %v9225_v51 = vld [vmem:[#allocation54_spill] sm:$0xff] }
 0x294   : > { %v3546_v2 = vadd.f32 %v3482_v19, %v3392_v40  ;;  %v3629_v23 = vmul.f32 %v9216_v11, %v9215_v39  ;;  %v3630_v55 = vmul.f32 %v9218_v27, %v9217_v46  ;;  %v3631_v15 = vmul.f32 %v9220_v9, %v9219_v12  ;;  %v9226_v19 = vld [vmem:[#allocation27_spill] sm:$0xff] }
 0x295   : > { %v3632_v21 = vmul.f32 %v9222_v34, %v9221_v62  ;;  %v3633_v48 = vmul.f32 %v9216_v11, %v9223_v13  ;;  %v3634_v37 = vmul.f32 %v9218_v27, %v9224_v44  ;;  %v3635_v29 = vmul.f32 %v9220_v9, %v9225_v51 }
 0x296   : > { %v3636_v24 = vmul.f32 %v9222_v34, %v9185_v0  ;;  %v3693_v22 = vadd.f32 %v3629_v23, %v3539_v10  ;;  %v3694_v40 = vadd.f32 %v3630_v55, %v3540_v33  ;;  %v3695_v32 = vadd.f32 %v3631_v15, %v3541_v18  ;;  %v9230_v55 = vld [vmem:[#allocation44_spill] sm:$0xff] }
 0x297   : > { %v3696_v58 = vadd.f32 %v3632_v21, %v3542_v26  ;;  %v3697_v25 = vadd.f32 %v3633_v48, %v3543_v52  ;;  %v3698_v47 = vadd.f32 %v3634_v37, %v3544_v41  ;;  %v3699_v42 = vadd.f32 %v3635_v29, %v3545_v17 }
 0x298   : > { %v3700_v57 = vadd.f32 %v3636_v24, %v3546_v2  ;;  %v3802_v11 = vmul.f32 %v9226_v19, %v9215_v39  ;;  %v3803_v27 = vmul.f32 %v9227_v30, %v9217_v46  ;;  %v3804_v9 = vmul.f32 %v9228_v35, %v9219_v12 }
 0x299   : > { %v3805_v34 = vmul.f32 %v9229_v6, %v9221_v62  ;;  %v3806_v15 = vmul.f32 %v9230_v55, %v9223_v13  ;;  %v3807_v10 = vmul.f32 %v9227_v30, %v9224_v44  ;;  %v3808_v33 = vmul.f32 %v9228_v35, %v9225_v51 }
 0x29a   : > { %v3809_v18 = vmul.f32 %v9229_v6, %v9185_v0  ;;  %v3810_v26 = vmul.f32 %v9138_v20, %v7748_v54  ;;  %v5336_v52 = vrot.slane %v3802_v11, 9  ;;  %v4028_v41 = vrot.slane %v3803_v27, 7 }
 0x29b   : > { %v4031_v17 = vrot.slane %v3804_v9, 7  ;;  %v4034_v2 = vrot.slane %v3805_v34, 7  ;;  %v4037_v23 = vrot.slane %v3806_v15, 7  ;;  %v4040_v21 = vrot.slane %v3807_v10, 7 }
 0x29c   : > { %v4043_v48 = vrot.slane %v3808_v33, 7  ;;  %v4029_v37 = vsel %vm5804_vm8, %v5336_v52, %v4028_v41  ;;  %v4030_v29 = vrot.slane %v4028_v41, 2  ;;  %v4046_v19 = vrot.slane %v3809_v18, 7 }
 0x29d   : > { %v4033_v24 = vrot.slane %v4031_v17, 2  ;;  %v4036_v30 = vrot.slane %v4034_v2, 2  ;;  %v4039_v55 = vrot.slane %v4037_v23, 2  ;;  %v4042_v35 = vrot.slane %v4040_v21, 2 }
 0x29e   : > { %v4045_v6 = vrot.slane %v4043_v48, 2  ;;  %v4032_v20 = vsel %vm5804_vm8, %v4030_v29, %v4031_v17  ;;  %v4048_v34 = vrot.slane %v4046_v19, 2  ;;  %v4049_v11 = vrot.slane %v3810_v26, 7 }
 0x29f   : > { %v4035_v9 = vsel %vm5804_vm8, %v4033_v24, %v4034_v2  ;;  %v4038_v27 = vsel %vm5804_vm8, %v4036_v30, %v4037_v23  ;;  %v4041_v15 = vsel %vm5804_vm8, %v4039_v55, %v4040_v21  ;;  %v4044_v10 = vsel %vm5804_vm8, %v4042_v35, %v4043_v48 }
 0x2a0   : > { %v4047_v33 = vsel %vm5804_vm8, %v4045_v6, %v4046_v19  ;;  %v4050_v18 = vsel %vm5804_vm8, %v4048_v34, %v4049_v11  ;;  %v4205_v52 = vadd.f32 %v4029_v37, %v3693_v22  ;;  %v4206_v41 = vadd.f32 %v4032_v20, %v3694_v40 }
 0x2a1   : > { %v4207_v17 = vadd.f32 %v4035_v9, %v3695_v32  ;;  %v4208_v2 = vadd.f32 %v4038_v27, %v3696_v58  ;;  %v4209_v26 = vadd.f32 %v4041_v15, %v3697_v25  ;;  %v4210_v29 = vadd.f32 %v4044_v10, %v3698_v47 }
 0x2a2   : > { %v4211_v24 = vadd.f32 %v4047_v33, %v3699_v42  ;;  %v4212_v30 = vadd.f32 %v4050_v18, %v3700_v57  ;;  %v4295_v55 = vmul.f32 %v8951_v1, %v9217_v46  ;;  %v4296_v35 = vmul.f32 %v8954_v59, %v9219_v12 }
 0x2a3   : > { %v4297_v6 = vmul.f32 %v8922_v45, %v9221_v62  ;;  %v4298_v23 = vmul.f32 %v8924_v60, %v9223_v13  ;;  %v4299_v22 = vmul.f32 %v8951_v1, %v9224_v44  ;;  %v4300_v40 = vmul.f32 %v8954_v59, %v9225_v51 }
 0x2a4   : > { %v4301_v32 = vmul.f32 %v8922_v45, %v9185_v0  ;;  %v4302_v58 = vmul.f32 %v8924_v60, %v7748_v54  ;;  %v4359_v25 = vadd.f32 %v4295_v55, %v4205_v52  ;;  %v4360_v47 = vadd.f32 %v4296_v35, %v4206_v41 }
 0x2a5   : > { %v4361_v42 = vadd.f32 %v4297_v6, %v4207_v17  ;;  %v4362_v57 = vadd.f32 %v4298_v23, %v4208_v2  ;;  %v4363_v21 = vadd.f32 %v4299_v22, %v4209_v26  ;;  %v4364_v48 = vadd.f32 %v4300_v40, %v4210_v29 }
 0x2a6   : > { %v4365_v37 = vadd.f32 %v4301_v32, %v4211_v24  ;;  %v4366_v19 = vadd.f32 %v4302_v58, %v4212_v30  ;;  %v4450_v20 = vadd.f32 %v6942_v8, %v4359_v25  ;;  %v4451_v9 = vadd.f32 %v9139_v36, %v4360_v47  ;;  %v9231_v47 = vld [vmem:[#allocation5_spill] sm:$0xff] }
 0x2a7   : > { %v4452_v34 = vadd.f32 %v9140_v28, %v4361_v42  ;;  %v4453_v11 = vadd.f32 %v9141_v50, %v4362_v57  ;;  %v4454_v27 = vadd.f32 %v6942_v8, %v4363_v21  ;;  %v4455_v15 = vadd.f32 %v9139_v36, %v4364_v48  ;;  %v9232_v48 = vld [vmem:[#allocation23_spill] sm:$0xff] }
 0x2a8   : > { %v4456_v10 = vadd.f32 %v9140_v28, %v4365_v37  ;;  %v4457_v33 = vadd.f32 %v9141_v50, %v4366_v19  ;;  %v4514_v18 = vmax.f32 %v4450_v20, 0.0  ;;  %v4515_v52 = vmax.f32 %v4451_v9, 0.0  ;;  %v9233_v19 = vld [vmem:[#allocation4_spill] sm:$0xff]  ;;  %v9234_v9 = vld [vmem:[#allocation2_spill] sm:$0xff] }
 0x2a9   : > { %v4516_v41 = vmax.f32 %v4452_v34, 0.0  ;;  %v4517_v17 = vmax.f32 %v4453_v11, 0.0  ;;  %v4518_v2 = vmax.f32 %v4454_v27, 0.0  ;;  %v4519_v26 = vmax.f32 %v4455_v15, 0.0 }
 0x2aa   : > { %v4520_v29 = vmax.f32 %v4456_v10, 0.0  ;;  %v4521_v24 = vmax.f32 %v4457_v33, 0.0  ;;  %v4578_v30 = vmin.f32 %v4514_v18, 6.0  ;;  %v4579_v55 = vmin.f32 %v4515_v52, 6.0  ;;  %v9235_v52 = vld [vmem:[#allocation10_spill] sm:$0xff] }
 0x2ab   : > { %v4580_v35 = vmin.f32 %v4516_v41, 6.0  ;;  %v4581_v6 = vmin.f32 %v4517_v17, 6.0  ;;  %v4582_v23 = vmin.f32 %v4518_v2, 6.0  ;;  %v4583_v22 = vmin.f32 %v4519_v26, 6.0  ;;  %v9236_v2 = vld [vmem:[#allocation13_spill] sm:$0xff] }
 0x2ac   : > { %v4584_v40 = vmin.f32 %v4520_v29, 6.0  ;;  %v4585_v32 = vmin.f32 %v4521_v24, 6.0  ;;  %v4836_v58 = vcombine.low %v4578_v30, %v4579_v55  ;;  %v1991_v25 = vmul.f32 %v9142_v14, %v9169_v4  ;;  %v9237_v29 = vld [vmem:[#allocation28_spill] sm:$0xff]  ;;  %v9238_v30 = vld [vmem:[#allocation7_spill] sm:$0xff] }
 0x2ad   : > { %v1992_v42 = vmul.f32 %v9231_v47, %v9171_v49  ;;  %v4837_v57 = vcombine.low %v4580_v35, %v4581_v6  ;;  %v4853_v21 = vcombine.low %v4582_v23, %v4583_v22  ;;  %v1993_v37 = vmul.f32 %v9232_v48, %v9173_v5  ;;  %v9239_v22 = vld [vmem:[#allocation120_spill] sm:$0xff] }
 0x2ae   : > { %v1994_v20 = vmul.f32 %v9233_v19, %v9175_v43  ;;  %v4844_v34 = vrot.slane %v4836_v58, %v9234_v9  ;;  %v4854_v11 = vcombine.low %v4584_v40, %v4585_v32  ;;  %v1995_v27 = vmul.f32 %v9142_v14, %v9176_v3 }
 0x2af   : > { %v1996_v15 = vmul.f32 %v9231_v47, %v9177_v16  ;;  %v4851_v10 = vrot.slane %v4837_v57, %v9234_v9  ;;  %v4861_v33 = vrot.slane %v4853_v21, %v9234_v9  ;;  %v1997_v18 = vmul.f32 %v9232_v48, %v9178_v63 }
 0x2b0   : > { %v2173_v41 = vmul.f32 %v9235_v52, %v9171_v49  ;;  %v4868_v17 = vrot.slane %v4854_v11, %v9234_v9  ;;  %v2174_v26 = vmul.f32 %v9236_v2, %v9173_v5  ;;  %v2175_v24 = vmul.f32 %v9237_v29, %v9175_v43 }
 0x2b1   : > { %v2176_v55 = vmul.f32 %v9238_v30, %v9176_v3  ;;  %v4852_v35 = vcombine.low %v4844_v34, %v4851_v10  ;;  %v2177_v6 = vmul.f32 %v9235_v52, %v9177_v16  ;;  %v2178_v23 = vmul.f32 %v9236_v2, %v9178_v63 }
 0x2b2   : > { %v9240_v40 = vrot.slane %v9239_v22, 7  ;;  %v4869_v58 = vcombine.low %v4861_v33, %v4868_v17  ;;  %v2416_v57 = vrot.slane %v2173_v41, 7  ;;  %v2419_v21 = vrot.slane %v2174_v26, 7 }
 0x2b3   : > { %v2422_v11 = vrot.slane %v2175_v24, 7  ;;  %v2425_v48 = vrot.slane %v2176_v55, 7  ;;  %v2428_v47 = vrot.slane %v2177_v6, 7  ;;  %v2431_v29 = vrot.slane %v2178_v23, 7 }
 0x2b4   : > { %v2415_v32 = vrot.slane %v9240_v40, 2  ;;  %v2663_v30 = vmul.f32 %v9194_v53, %v9169_v4  ;;  %v4959_v34 = vpack.c.bf16 %v4869_v58, %v4852_v35  ;;  %v2418_v52 = vrot.slane %v2416_v57, 2  ;;  %v9241_v35 = vld [vmem:[#allocation114_spill] sm:$0xff] }
 0x2b5   : > { %v2421_v9 = vrot.slane %v2419_v21, 2  ;;  %v2424_v2 = vrot.slane %v2422_v11, 2  ;;  %v2427_v14 = vrot.slane %v2425_v48, 2  ;;  %v2430_v22 = vrot.slane %v2428_v47, 2 }
 0x2b6   : > { %v2417_v10 = vsel %vm5804_vm8, %v2415_v32, %v2416_v57  ;;  %v2433_v40 = vrot.slane %v2431_v29, 2  ;;  %5415 = vmatmul.mubr.msk.bf16.gmra.mxu1 %vm4981_vm10, %v4959_v34  ;;  %v2420_v33 = vsel %vm5804_vm8, %v2418_v52, %v2419_v21  ;;  %v2664_v4 = vmul.f32 %v9195_v7, %v9171_v49  ;;  %v9244_v57 = vld [vmem:[#allocation118_spill] sm:$0xff] }
 0x2b7   : > { %v2423_v41 = vsel %vm5804_vm8, %v2421_v9, %v2422_v11  ;;  %v2574_v17 = vadd.f32 %v2417_v10, %v1991_v25  ;;  %v2426_v26 = vsel %vm5804_vm8, %v2424_v2, %v2425_v48  ;;  %v2429_v24 = vsel %vm5804_vm8, %v2427_v14, %v2428_v47 }
 0x2b8   : > { %v2432_v55 = vsel %vm5804_vm8, %v2430_v22, %v2431_v29  ;;  %v9242_v6 = vrot.slane %v9241_v35, 7  ;;  %v2575_v23 = vadd.f32 %v2420_v33, %v1992_v42  ;;  %v2576_v9 = vadd.f32 %v2423_v41, %v1993_v37  ;;  %v9243_v37 = vld [vmem:[#allocation124_spill] sm:$0xff] }
 0x2b9   : > { %v2577_v25 = vadd.f32 %v2426_v26, %v1994_v20  ;;  %v2578_v32 = vadd.f32 %v2429_v24, %v1995_v27  ;;  %v2579_v58 = vadd.f32 %v2432_v55, %v1996_v15  ;;  %v2665_v48 = vmul.f32 %v9196_v61, %v9173_v5 }
 0x2ba   : > { %v2435_v52 = vsel %vm5804_vm8, %v2433_v40, %v9242_v6  ;;  %v2666_v14 = vmul.f32 %v9197_v31, %v9175_v43  ;;  %v2667_v47 = vmul.f32 %v9194_v53, %v9176_v3  ;;  %v2668_v2 = vmul.f32 %v9195_v7, %v9177_v16  ;;  %v9245_v3 = vld [vmem:[#allocation19_spill] sm:$0xff]  ;;  %v9246_v16 = vld [vmem:[#allocation18_spill] sm:$0xff] }
 0x2bb   : > { %v2580_v49 = vadd.f32 %v2435_v52, %v1997_v18  ;;  %v2669_v42 = vmul.f32 %v9196_v61, %v9178_v63  ;;  %v2727_v20 = vadd.f32 %v2663_v30, %v9243_v37  ;;  %v2728_v27 = vadd.f32 %v2664_v4, %v2574_v17  ;;  %v9247_v63 = vld [vmem:[#allocation29_spill] sm:$0xff] }
 0x2bc   : > { %v2729_v15 = vadd.f32 %v2665_v48, %v2575_v23  ;;  %v2730_v18 = vadd.f32 %v2666_v14, %v2576_v9  ;;  %v2731_v5 = vadd.f32 %v2667_v47, %v2577_v25  ;;  %v2732_v11 = vadd.f32 %v2668_v2, %v2578_v32  ;;  %v9248_v23 = vld [vmem:[#allocation9_spill] sm:$0xff] }
 0x2bd   : > { %v2734_v21 = vadd.f32 %v9244_v57, %v2580_v49  ;;  %v2733_v29 = vadd.f32 %v2669_v42, %v2579_v58  ;;  %v2817_v43 = vmul.f32 %v9201_v56, %v9215_v39  ;;  %v2818_v34 = vmul.f32 %v9245_v3, %v9217_v46  ;;  %v9249_v9 = vld [vmem:[#allocation21_spill] sm:$0xff]  ;;  %v9251_v49 = vld [vmem:[#allocation30_spill] sm:$0xff] }
 0x2be   : > { %v2819_v10 = vmul.f32 %v9246_v16, %v9219_v12  ;;  %v2820_v30 = vmul.f32 %v9247_v63, %v9221_v62  ;;  %v2821_v22 = vmul.f32 %v9201_v56, %v9223_v13  ;;  %v2822_v40 = vmul.f32 %v9245_v3, %v9224_v44  ;;  %v9250_v32 = vld [vmem:[#allocation25_spill] sm:$0xff] }
 0x2bf   : > { %v2823_v33 = vmul.f32 %v9246_v16, %v9225_v51  ;;  %v2824_v41 = vmul.f32 %v9247_v63, %v9185_v0  ;;  %v2881_v17 = vadd.f32 %v2817_v43, %v2727_v20  ;;  %v2882_v4 = vadd.f32 %v2818_v34, %v2728_v27  ;;  %v9252_v14 = vld [vmem:[#allocation33_spill] sm:$0xff]  ;;  %v9253_v20 = vld [vmem:[#allocation24_spill] sm:$0xff] }
 0x2c0   : > { %v2883_v26 = vadd.f32 %v2819_v10, %v2729_v15  ;;  %v2884_v24 = vadd.f32 %v2820_v30, %v2730_v18  ;;  %v2885_v55 = vadd.f32 %v2821_v22, %v2731_v5  ;;  %v2886_v35 = vadd.f32 %v2822_v40, %v2732_v11 }
 0x2c1   : > { %v2887_v6 = vadd.f32 %v2823_v33, %v2733_v29  ;;  %v2888_v52 = vadd.f32 %v2824_v41, %v2734_v21  ;;  %v2991_v56 = vmul.f32 %v9248_v23, %v9215_v39  ;;  %v2992_v25 = vmul.f32 %v9249_v9, %v9217_v46 }
 0x2c2   : > { %v2993_v58 = vmul.f32 %v9250_v32, %v9219_v12  ;;  %v2994_v48 = vmul.f32 %v9251_v49, %v9221_v62  ;;  %v2995_v47 = vmul.f32 %v9252_v14, %v9223_v13  ;;  %v2996_v2 = vmul.f32 %v9249_v9, %v9224_v44 }
 0x2c3   : > { %v2997_v42 = vmul.f32 %v9250_v32, %v9225_v51  ;;  %v2998_v37 = vmul.f32 %v9251_v49, %v9185_v0  ;;  %v2999_v27 = vmul.f32 %v9253_v20, %v7748_v54  ;;  %v5329_v15 = vrot.slane %v2991_v56, 9 }
 0x2c4   : > { %v3233_v18 = vrot.slane %v2992_v25, 7  ;;  %v3236_v57 = vrot.slane %v2993_v58, 7  ;;  %v3239_v21 = vrot.slane %v2994_v48, 7  ;;  %v3242_v5 = vrot.slane %v2995_v47, 7 }
 0x2c5   : > { %v3245_v11 = vrot.slane %v2996_v2, 7  ;;  %v3248_v29 = vrot.slane %v2997_v42, 7  ;;  %v3251_v43 = vrot.slane %v2998_v37, 7  ;;  %v3254_v32 = vrot.slane %v2999_v27, 7 }
 0x2c6   : > { %v3234_v34 = vsel %vm5804_vm8, %v5329_v15, %v3233_v18  ;;  %v3235_v16 = vrot.slane %v3233_v18, 2  ;;  %v3238_v10 = vrot.slane %v3236_v57, 2  ;;  %v3241_v30 = vrot.slane %v3239_v21, 2 }
 0x2c7   : > { %v3244_v22 = vrot.slane %v3242_v5, 2  ;;  %v3247_v40 = vrot.slane %v3245_v11, 2  ;;  %v3250_v33 = vrot.slane %v3248_v29, 2  ;;  %v3253_v41 = vrot.slane %v3251_v43, 2 }
 0x2c8   : > { %v3237_v23 = vsel %vm5804_vm8, %v3235_v16, %v3236_v57  ;;  %v3240_v56 = vsel %vm5804_vm8, %v3238_v10, %v3239_v21  ;;  %v3243_v25 = vsel %vm5804_vm8, %v3241_v30, %v3242_v5  ;;  %v3393_v47 = vadd.f32 %v3234_v34, %v2881_v17  ;;  %v9254_v21 = vld [vmem:[#allocation15_spill] sm:$0xff]  ;;  %v9256_v16 = vld [vmem:[#allocation20_spill] sm:$0xff]  ;;  %v9257_v17 = vld [vmem:[#allocation34_spill] sm:$0xff] }
 0x2c9   : > { %v3246_v58 = vsel %vm5804_vm8, %v3244_v22, %v3245_v11  ;;  %v3249_v48 = vsel %vm5804_vm8, %v3247_v40, %v3248_v29  ;;  %v3252_v14 = vsel %vm5804_vm8, %v3250_v33, %v3251_v43  ;;  %v3255_v2 = vsel %vm5804_vm8, %v3253_v41, %v3254_v32  ;;  %v9255_v11 = vld [vmem:[#allocation22_spill] sm:$0xff]  ;;  %v9259_v41 = vld [vmem:[#allocation43_spill] sm:$0xff] }
 0x2ca   : > { %v3394_v42 = vadd.f32 %v3237_v23, %v2882_v4  ;;  %v3395_v37 = vadd.f32 %v3240_v56, %v2883_v26  ;;  %v3396_v20 = vadd.f32 %v3243_v25, %v2884_v24  ;;  %v3397_v15 = vadd.f32 %v3246_v58, %v2885_v55  ;;  %v9258_v33 = vld [vmem:[#allocation126_spill] sm:$0xff]  ;;  %v9260_v56 = vld [vmem:[#allocation125_spill] sm:$0xff] }
 0x2cb   : > { %v3398_v18 = vadd.f32 %v3249_v48, %v2886_v35  ;;  %v3399_v57 = vadd.f32 %v3252_v14, %v2887_v6  ;;  %v3400_v27 = vadd.f32 %v3255_v2, %v2888_v52  ;;  %v3483_v5 = vmul.f32 %v9254_v21, %v9217_v46  ;;  %v9261_v25 = vld [vmem:[#allocation26_spill] sm:$0xff]  ;;  %v9262_v58 = vld [vmem:[#allocation129_spill] sm:$0xff]  ;;  %v9263_v48 = vld [vmem:[#allocation36_spill] sm:$0xff] }
 0x2cc   : > { %v3484_v29 = vmul.f32 %v9255_v11, %v9219_v12  ;;  %v3485_v43 = vmul.f32 %v9256_v16, %v9221_v62  ;;  %v3486_v34 = vmul.f32 %v9257_v17, %v9223_v13  ;;  %v3487_v4 = vmul.f32 %v9254_v21, %v9224_v44  ;;  %v9264_v2 = vld [vmem:[#allocation148_spill] sm:$0xff] }
 0x2cd   : > { %v3488_v26 = vmul.f32 %v9255_v11, %v9225_v51  ;;  %v3489_v24 = vmul.f32 %v9256_v16, %v9185_v0  ;;  %v3490_v55 = vmul.f32 %v9257_v17, %v7748_v54  ;;  %v3547_v35 = vadd.f32 %v3483_v5, %v3393_v47  ;;  %v9265_v16 = vld [vmem:[#allocation35_spill] sm:$0xff]  ;;  %v9266_v47 = vld [vmem:[#allocation150_spill] sm:$0xff] }
 0x2ce   : > { %v3548_v6 = vadd.f32 %v3484_v29, %v3394_v42  ;;  %v3549_v52 = vadd.f32 %v3485_v43, %v3395_v37  ;;  %v3550_v10 = vadd.f32 %v3486_v34, %v3396_v20  ;;  %v3551_v62 = vadd.f32 %v3487_v4, %v3397_v15  ;;  %v9267_v37 = vld [vmem:[#allocation149_spill] sm:$0xff]  ;;  %v9268_v15 = vld [vmem:[#allocation151_spill] sm:$0xff] }
 0x2cf   : > { %v3552_v30 = vadd.f32 %v3488_v26, %v3398_v18  ;;  %v3553_v22 = vadd.f32 %v3489_v24, %v3399_v57  ;;  %v3554_v40 = vadd.f32 %v3490_v55, %v3400_v27  ;;  %v3638_v23 = vmul.f32 %v9259_v41, %v9258_v33  ;;  %v9269_v57 = vld [vmem:[#allocation130_spill] sm:$0xff] }
 0x2d0   : > { %v3639_v32 = vmul.f32 %v9261_v25, %v9260_v56  ;;  %v3640_v14 = vmul.f32 %v9263_v48, %v9262_v58  ;;  %v3641_v17 = vmul.f32 %v9265_v16, %v9264_v2  ;;  %v3642_v42 = vmul.f32 %v9259_v41, %v9266_v47  ;;  %v9270_v16 = vld [vmem:[#allocation37_spill] sm:$0xff]  ;;  %v9271_v41 = vld [vmem:[#allocation38_spill] sm:$0xff] }
 0x2d1   : > { %v3643_v20 = vmul.f32 %v9261_v25, %v9267_v37  ;;  %v3644_v18 = vmul.f32 %v9263_v48, %v9268_v15  ;;  %v3701_v27 = vadd.f32 %v9269_v57, %v3547_v35  ;;  %v3702_v5 = vadd.f32 %v3638_v23, %v3548_v6  ;;  %v9272_v25 = vld [vmem:[#allocation44_spill] sm:$0xff]  ;;  %v9273_v48 = vld [vmem:[#allocation42_spill] sm:$0xff] }
 0x2d2   : > { %v3703_v29 = vadd.f32 %v3639_v32, %v3549_v52  ;;  %v3704_v43 = vadd.f32 %v3640_v14, %v3550_v10  ;;  %v3705_v34 = vadd.f32 %v3641_v17, %v3551_v62  ;;  %v3706_v4 = vadd.f32 %v3642_v42, %v3552_v30  ;;  %v9274_v52 = vld [vmem:[#allocation131_spill] sm:$0xff] }
 0x2d3   : > { %v3707_v26 = vadd.f32 %v3643_v20, %v3553_v22  ;;  %v3708_v24 = vadd.f32 %v3644_v18, %v3554_v40  ;;  %v3813_v55 = vmul.f32 %v9270_v16, %v9260_v56  ;;  %v3814_v11 = vmul.f32 %v9271_v41, %v9262_v58  ;;  %v9276_v22 = vld [vmem:[#allocation139_spill] sm:$0xff] }
 0x2d4   : > { %v3815_v21 = vmul.f32 %v9272_v25, %v9264_v2  ;;  %v3816_v49 = vmul.f32 %v9273_v48, %v9266_v47  ;;  %v3817_v35 = vmul.f32 %v9270_v16, %v9267_v37  ;;  %v3818_v6 = vmul.f32 %v9271_v41, %v9268_v15 }
 0x2d5   : > { %v9275_v10 = vrot.slane %v9274_v52, 7  ;;  %v4056_v30 = vrot.slane %v3813_v55, 7  ;;  %v4213_v40 = vadd.f32 %v9276_v22, %v3701_v27  ;;  %v4059_v23 = vrot.slane %v3814_v11, 7 }
 0x2d6   : > { %v4062_v32 = vrot.slane %v3815_v21, 7  ;;  %v4065_v14 = vrot.slane %v3816_v49, 7  ;;  %v4068_v17 = vrot.slane %v3817_v35, 7  ;;  %v4071_v18 = vrot.slane %v3818_v6, 7 }
 0x2d7   : > { %v4055_v62 = vrot.slane %v9275_v10, 2  ;;  %v4058_v20 = vrot.slane %v4056_v30, 2  ;;  %v4303_v57 = vmul.f32 %v8951_v1, %v9258_v33  ;;  %v4061_v16 = vrot.slane %v4059_v23, 2  ;;  %v9277_v10 = vld [vmem:[#allocation136_spill] sm:$0xff] }
 0x2d8   : > { %v4064_v41 = vrot.slane %v4062_v32, 2  ;;  %v4067_v25 = vrot.slane %v4065_v14, 2  ;;  %v4070_v48 = vrot.slane %v4068_v17, 2  ;;  %v4073_v27 = vrot.slane %v4071_v18, 2 }
 0x2d9   : > { %v4057_v42 = vsel %vm5804_vm8, %v4055_v62, %v4056_v30  ;;  %v4060_v55 = vsel %vm5804_vm8, %v4058_v20, %v4059_v23  ;;  %v4304_v49 = vmul.f32 %v8954_v59, %v9260_v56  ;;  %v4063_v21 = vsel %vm5804_vm8, %v4061_v16, %v4062_v32 }
 0x2da   : > { %v4214_v11 = vadd.f32 %v4057_v42, %v3702_v5  ;;  %v4066_v35 = vsel %vm5804_vm8, %v4064_v41, %v4065_v14  ;;  %v4069_v6 = vsel %vm5804_vm8, %v4067_v25, %v4068_v17  ;;  %v4072_v52 = vsel %vm5804_vm8, %v4070_v48, %v4071_v18 }
 0x2db   : > { %v9278_v62 = vrot.slane %v9277_v10, 7  ;;  %v4215_v30 = vadd.f32 %v4060_v55, %v3703_v29  ;;  %v4216_v22 = vadd.f32 %v4063_v21, %v3704_v43  ;;  %v4217_v23 = vadd.f32 %v4066_v35, %v3705_v34 }
 0x2dc   : > { %v4218_v42 = vadd.f32 %v4069_v6, %v3706_v4  ;;  %v4219_v20 = vadd.f32 %v4072_v52, %v3707_v26  ;;  %v4305_v14 = vmul.f32 %v8922_v45, %v9262_v58  ;;  %v4306_v17 = vmul.f32 %v8924_v60, %v9264_v2  ;;  %v9279_v26 = vld [vmem:[#allocation140_spill] sm:$0xff] }
 0x2dd   : > { %v4075_v5 = vsel %vm5804_vm8, %v4073_v27, %v9278_v62  ;;  %v4307_v18 = vmul.f32 %v8951_v1, %v9266_v47  ;;  %v4308_v16 = vmul.f32 %v8954_v59, %v9267_v37  ;;  %v4309_v29 = vmul.f32 %v8922_v45, %v9268_v15 }
 0x2de   : > { %v4220_v32 = vadd.f32 %v4075_v5, %v3708_v24  ;;  %v4367_v43 = vadd.f32 %v4303_v57, %v4213_v40  ;;  %v4368_v34 = vadd.f32 %v4304_v49, %v4214_v11  ;;  %v4369_v4 = vadd.f32 %v4305_v14, %v4215_v30 }
 0x2df   : > { %v4370_v41 = vadd.f32 %v4306_v17, %v4216_v22  ;;  %v4371_v25 = vadd.f32 %v4307_v18, %v4217_v23  ;;  %v4372_v58 = vadd.f32 %v4308_v16, %v4218_v42  ;;  %v4373_v48 = vadd.f32 %v4309_v29, %v4219_v20  ;;  %v9280_v18 = vld [vmem:[#allocation6_spill] sm:$0xff] }
 0x2e0   : > { %v4374_v24 = vadd.f32 %v9279_v26, %v4220_v32  ;;  %v4458_v60 = vadd.f32 %v6942_v8, %v4367_v43  ;;  %v4459_v2 = vadd.f32 %v9139_v36, %v4368_v34  ;;  %v4460_v1 = vadd.f32 %v9140_v28, %v4369_v4 }
 0x2e1   : > { %v4461_v55 = vadd.f32 %v9141_v50, %v4370_v41  ;;  %v4462_v45 = vadd.f32 %v6942_v8, %v4371_v25  ;;  %v4463_v40 = vadd.f32 %v9139_v36, %v4372_v58  ;;  %v4464_v57 = vadd.f32 %v9140_v28, %v4373_v48  ;;  %v9282_v25 = vld [vmem:[#allocation5_spill] sm:$0xff]  ;;  %v9283_v48 = vld [vmem:[#allocation23_spill] sm:$0xff] }
 0x2e2   : > { %v4465_v59 = vadd.f32 %v9141_v50, %v4374_v24  ;;  %v4522_v27 = vmax.f32 %v4458_v60, 0.0  ;;  %v4523_v11 = vmax.f32 %v4459_v2, 0.0  ;;  %v4524_v49 = vmax.f32 %v4460_v1, 0.0  ;;  %v9281_v24 = vld [vmem:[#allocation2_spill] sm:$0xff]  ;;  %v9284_v2 = vld [vmem:[#allocation3_spill] sm:$0xff] }
 0x2e3   : > { %v4525_v35 = vmax.f32 %v4461_v55, 0.0  ;;  %v4526_v6 = vmax.f32 %v4462_v45, 0.0  ;;  %v4527_v52 = vmax.f32 %v4463_v40, 0.0  ;;  %v4528_v10 = vmax.f32 %v4464_v57, 0.0  ;;  %v9285_v55 = vld [vmem:[#allocation7_spill] sm:$0xff]  ;;  %v9286_v57 = vld [vmem:[#allocation10_spill] sm:$0xff] }
 0x2e4   : > { %v4529_v21 = vmax.f32 %v4465_v59, 0.0  ;;  %v4586_v62 = vmin.f32 %v4522_v27, 6.0  ;;  %v4587_v5 = vmin.f32 %v4523_v11, 6.0  ;;  %v4588_v30 = vmin.f32 %v4524_v49, 6.0  ;;  %v9287_v11 = vld [vmem:[#allocation13_spill] sm:$0xff] }
 0x2e5   : > { %v4589_v23 = vmin.f32 %v4525_v35, 6.0  ;;  %v4590_v42 = vmin.f32 %v4526_v6, 6.0  ;;  %v4591_v20 = vmin.f32 %v4527_v52, 6.0  ;;  %v4592_v32 = vmin.f32 %v4528_v10, 6.0 }
 0x2e6   : > { %v4593_v22 = vmin.f32 %v4529_v21, 6.0  ;;  %v4870_v14 = vcombine.low %v4586_v62, %v4587_v5  ;;  %v1998_v17 = vmul.f32 %v9233_v19, %v9215_v39  ;;  %v1999_v16 = vmul.f32 %v9280_v18, %v9217_v46 }
 0x2e7   : > { %v2002_v29 = vmul.f32 %v9233_v19, %v9223_v13  ;;  %v4871_v43 = vcombine.low %v4588_v30, %v4589_v23  ;;  %v4887_v34 = vcombine.low %v4590_v42, %v4591_v20  ;;  %v2003_v26 = vmul.f32 %v9280_v18, %v9224_v44 }
 0x2e8   : > { %v4888_v4 = vcombine.low %v4592_v32, %v4593_v22  ;;  %v4878_v41 = vrot.slane %v4870_v14, %v9281_v24  ;;  %v2004_v58 = vmul.f32 %v9282_v25, %v9225_v51  ;;  %v2005_v60 = vmul.f32 %v9283_v48, %v9185_v0  ;;  %v9289_v14 = vld [vmem:[#allocation155_spill] sm:$0xff] }
 0x2e9   : > { %v2180_v1 = vmul.f32 %v9284_v2, %v9215_v39  ;;  %v4885_v59 = vrot.slane %v4871_v43, %v9281_v24  ;;  %v4895_v13 = vrot.slane %v4887_v34, %v9281_v24  ;;  %v2181_v45 = vmul.f32 %v9285_v55, %v9217_v46  ;;  %v9288_v39 = vld [vmem:[#allocation14_spill] sm:$0xff] }
 0x2ea   : > { %v4902_v19 = vrot.slane %v4888_v4, %v9281_v24  ;;  %v2185_v40 = vmul.f32 %v9285_v55, %v9224_v44  ;;  %v2186_v27 = vmul.f32 %v9286_v57, %v9225_v51  ;;  %v2187_v49 = vmul.f32 %v9287_v11, %v9185_v0 }
 0x2eb   : > { %v2188_v21 = vmul.f32 %v9288_v39, %v7748_v54  ;;  %v4886_v35 = vcombine.low %v4878_v41, %v4885_v59  ;;  %v5322_v52 = vrot.slane %v2180_v1, 9  ;;  %v2438_v10 = vrot.slane %v2181_v45, 7  ;;  %v9290_v41 = vld [vmem:[#allocation147_spill] sm:$0xff] }
 0x2ec   : > { %v4903_v6 = vcombine.low %v4895_v13, %v4902_v19  ;;  %v2450_v62 = vrot.slane %v2185_v40, 7  ;;  %v2453_v5 = vrot.slane %v2186_v27, 7  ;;  %v2456_v30 = vrot.slane %v2187_v49, 7  ;;  %v8216_v49 = vpop.f32.mrf.mxu1 }
 0x2ed   : > { %v2459_v22 = vrot.slane %v2188_v21, 7  ;;  %v2439_v42 = vsel %vm5804_vm8, %v5322_v52, %v2438_v10  ;;  %v2440_v20 = vrot.slane %v2438_v10, 2  ;;  %v2671_v32 = vmul.f32 %v9194_v53, %v9217_v46 }
 0x2ee   : > { %v4960_v23 = vpack.c.bf16 %v4903_v6, %v4886_v35  ;;  %v2451_v18 = vsel %vm5804_vm8, %v9289_v14, %v2450_v62  ;;  %v2452_v43 = vrot.slane %v2450_v62, 2  ;;  %v2455_v34 = vrot.slane %v2453_v5, 2  ;;  %v9294_v6 = vld [vmem:[#allocation154_spill] sm:$0xff]  ;;  %v9301_v14 = vld [vmem:[#allocation137_spill] sm:$0xff] }
 0x2ef   : > { %v2458_v4 = vrot.slane %v2456_v30, 2  ;;  %v9291_v25 = vrot.slane %v9290_v41, 7  ;;  %v2581_v2 = vadd.f32 %v2439_v42, %v1998_v17  ;;  %v2585_v1 = vadd.f32 %v2451_v18, %v2002_v29 }
 0x2f0   : > { %5418 = vmatprep.mubr.msk.bf16.mxu1 %vm4981_vm10, %v4960_v23  ;;  %v2672_v59 = vmul.f32 %v9195_v7, %v9219_v12  ;;  %v2454_v46 = vsel %vm5804_vm8, %v2452_v43, %v2453_v5  ;;  %v2457_v13 = vsel %vm5804_vm8, %v2455_v34, %v2456_v30  ;;  %v2675_v17 = vmul.f32 %v9194_v53, %v9224_v44  ;;  %v8232_v5 = vpop.f32.mrf.mxu1 }
 0x2f1   : > { %v2442_v48 = vsel %vm5804_vm8, %v2440_v20, %v9291_v25  ;;  %v2460_v19 = vsel %vm5804_vm8, %v2458_v4, %v2459_v22  ;;  %v2586_v45 = vadd.f32 %v2454_v46, %v2003_v26  ;;  %v2587_v40 = vadd.f32 %v2457_v13, %v2004_v58  ;;  %v9293_v58 = vld [vmem:[#allocation152_spill] sm:$0xff]  ;;  %v9298_v22 = vld [vmem:[#allocation138_spill] sm:$0xff]  ;;  %v9299_v20 = vld [vmem:[#allocation153_spill] sm:$0xff] }
 0x2f2   : > { %v2582_v55 = vadd.f32 %v2442_v48, %v1999_v16  ;;  %v2588_v57 = vadd.f32 %v2460_v19, %v2005_v60  ;;  %v2676_v29 = vmul.f32 %v9195_v7, %v9225_v51  ;;  %v2677_v12 = vmul.f32 %v9196_v61, %v9185_v0  ;;  %v9292_v61 = vld [vmem:[#allocation128_spill] sm:$0xff]  ;;  %v9302_v4 = vld [vmem:[#allocation15_spill] sm:$0xff]  ;;  %v9303_v25 = vld [vmem:[#allocation22_spill] sm:$0xff] }
 0x2f3   : > { %v2678_v27 = vmul.f32 %v9197_v31, %v7748_v54  ;;  %v2735_v11 = vadd.f32 %v2671_v32, %v2581_v2  ;;  %v2739_v16 = vadd.f32 %v2675_v17, %v2585_v1  ;;  %v2826_v26 = vmul.f32 %v9245_v3, %v9258_v33  ;;  %v9304_v2 = vld [vmem:[#allocation160_spill] sm:$0xff] }
 0x2f4   : > { %v2736_v39 = vadd.f32 %v2672_v59, %v2582_v55  ;;  %v2830_v53 = vmul.f32 %v9245_v3, %v9266_v47  ;;  %v2740_v44 = vadd.f32 %v2676_v29, %v2586_v45  ;;  %v2741_v7 = vadd.f32 %v2677_v12, %v2587_v40  ;;  %v9295_v3 = vld [vmem:[#allocation30_spill] sm:$0xff]  ;;  %v9306_v55 = vld [vmem:[#allocation20_spill] sm:$0xff]  ;;  %v8263_v40 = vpop.f32.mrf.mxu1 }
 0x2f5   : > { %v2742_v51 = vadd.f32 %v2678_v27, %v2588_v57  ;;  %v2832_v0 = vmul.f32 %v9247_v63, %v9268_v15  ;;  %v2889_v54 = vadd.f32 %v9292_v61, %v2735_v11  ;;  %v2893_v60 = vadd.f32 %v9293_v58, %v2739_v16  ;;  %v9296_v63 = vld [vmem:[#allocation156_spill] sm:$0xff] }
 0x2f6   : > { %v2890_v31 = vadd.f32 %v2826_v26, %v2736_v39  ;;  %v3005_v21 = vmul.f32 %v9249_v9, %v9266_v47  ;;  %v2894_v35 = vadd.f32 %v2830_v53, %v2740_v44  ;;  %v2895_v52 = vadd.f32 %v9294_v6, %v2741_v7  ;;  %v9308_v12 = vld [vmem:[#allocation132_spill] sm:$0xff]  ;;  %v9310_v26 = vld [vmem:[#allocation122_spill] sm:$0xff] }
 0x2f7   : > { %v2896_v10 = vadd.f32 %v2832_v0, %v2742_v51  ;;  %v3007_v62 = vmul.f32 %v9295_v3, %v9268_v15  ;;  %v9297_v30 = vrot.slane %v9296_v63, 7  ;;  %v9300_v9 = vrot.slane %v9299_v20, 7  ;;  %v9313_v0 = vld [vmem:[#allocation134_spill] sm:$0xff]  ;;  %v9318_v3 = vld [vmem:[#allocation133_spill] sm:$0xff]  ;;  %v9319_v63 = vld [vmem:[#allocation159_spill] sm:$0xff] }
 0x2f8   : > { %v3270_v42 = vrot.slane %v3005_v21, 7  ;;  %v3401_v18 = vadd.f32 %v9301_v14, %v2889_v54  ;;  %v3491_v41 = vmul.f32 %v9302_v4, %v9258_v33  ;;  %v3492_v48 = vmul.f32 %v9303_v25, %v9260_v56  ;;  %v9314_v54 = vld [vmem:[#allocation135_spill] sm:$0xff] }
 0x2f9   : > { %v3262_v23 = vsel %vm5804_vm8, %v9298_v22, %v9297_v30  ;;  %v3275_v32 = vrot.slane %v9300_v9, 2  ;;  %v3276_v43 = vrot.slane %v3007_v62, 7  ;;  %v3495_v46 = vmul.f32 %v9302_v4, %v9266_v47  ;;  %v9320_v22 = vld [vmem:[#allocation143_spill] sm:$0xff] }
 0x2fa   : > { %v3402_v34 = vadd.f32 %v3262_v23, %v2890_v31  ;;  %v3271_v1 = vsel %vm5804_vm8, %v9304_v2, %v3270_v42  ;;  %v3272_v59 = vrot.slane %v3270_v42, 2  ;;  %v3496_v13 = vmul.f32 %v9303_v25, %v9267_v37  ;;  %v9321_v42 = vld [vmem:[#allocation146_spill] sm:$0xff]  ;;  %v9325_v2 = vld [vmem:[#allocation31_spill] sm:$0xff] }
 0x2fb   : > { %v3277_v33 = vsel %vm5804_vm8, %v3275_v32, %v3276_v43  ;;  %v3278_v56 = vrot.slane %v3276_v43, 2  ;;  %v3405_v19 = vadd.f32 %v3271_v1, %v2893_v60  ;;  %v3497_v45 = vmul.f32 %v9306_v55, %v9268_v15  ;;  %v9312_v15 = vld [vmem:[#allocation162_spill] sm:$0xff]  ;;  %v9315_v60 = vld [vmem:[#allocation157_spill] sm:$0xff] }
 0x2fc   : > { %v9307_v47 = vmov %v9300_v9  ;;  %v3407_v57 = vadd.f32 %v3277_v33, %v2895_v52  ;;  %v3555_v17 = vadd.f32 %v3491_v41, %v3401_v18  ;;  %v3556_v29 = vadd.f32 %v3492_v48, %v3402_v34  ;;  %v9317_v52 = vld [vmem:[#allocation165_spill] sm:$0xff]  ;;  %v8299_v9 = vld [vmem:[%s8449_s6] ss:$0 sm:$0xff]  ;;  %v9323_v18 = vld [vmem:[#allocation163_spill] sm:$0xff] }
 0x2fd   : > { %v3274_v37 = vsel %vm5804_vm8, %v3272_v59, %v9307_v47  ;;  %v9309_v27 = vrot.slane %v9308_v12, 7  ;;  %v3559_v16 = vadd.f32 %v3495_v46, %v3405_v19  ;;  %v9311_v53 = vrot.slane %v9310_v26, 7  ;;  %v9322_v32 = vld [vmem:[#allocation158_spill] sm:$0xff]  ;;  %v9324_v41 = vld [vmem:[#allocation123_spill] sm:$0xff]  ;;  %v9326_v59 = vld [vmem:[#allocation41_spill] sm:$0xff] }
 0x2fe   : > { %v3406_v39 = vadd.f32 %v3274_v37, %v2894_v35  ;;  %v3561_v51 = vadd.f32 %v3497_v45, %v3407_v57  ;;  %v3709_v61 = vadd.f32 %v9313_v0, %v3555_v17  ;;  %v3710_v31 = vadd.f32 %v9314_v54, %v3556_v29  ;;  %v9316_v35 = vld [vmem:[#allocation49_spill] sm:$0xff]  ;;  %v9329_v37 = vld [vmem:[#allocation127_spill] sm:$0xff]  ;;  %v9330_v17 = vld [vmem:[#allocation32_spill] sm:$0xff] }
 0x2ff   : > { %v3280_v11 = vsel %vm5804_vm8, %v3278_v56, %v9309_v27  ;;  %v4097_v44 = vsel %vm5804_vm8, %v9312_v15, %v9311_v53  ;;  %v3713_v21 = vadd.f32 %v9315_v60, %v3559_v16  ;;  %v4469_v6 = vadd.f32 %v9141_v50, %v9316_v35  ;;  %v9328_v56 = vld [vmem:[#allocation161_spill] sm:$0xff]  ;;  %v5493_v54 = vld [vmem:[%s5653_s15 + $0x30] sm:$0xff] }
 0x300   : > { %v3408_v7 = vadd.f32 %v3280_v11, %v2896_v10  ;;  %v3560_v58 = vadd.f32 %v3496_v13, %v3406_v39  ;;  %v4532_v38 = vmax.f32 %v9317_v52, 0.0  ;;  %v8290_v10 = vpop.f32.mrf.mxu1  ;;  %v3715_v30 = vadd.f32 %v9319_v63, %v3561_v51  ;;  %v9327_v13 = vld [vmem:[#allocation50_spill] sm:$0xff]  ;;  %v9331_v11 = vld [vmem:[#allocation164_spill] sm:$0xff]  ;;  %v5494_v52 = vld [vmem:[%s5653_s15 + $0x38] sm:$0xff] }
 0x301   : > { %v4221_v23 = vadd.f32 %v9320_v22, %v3709_v61  ;;  %v4222_v20 = vadd.f32 %v9321_v42, %v3710_v31  ;;  %v4225_v43 = vadd.f32 %v9323_v18, %v3713_v21  ;;  %v4533_v34 = vmax.f32 %v4469_v6, 0.0  ;;  %v5496_v42 = vld [vmem:[%s5653_s15 + $0x20] sm:$0xff] }
 0x302   : > { %v3562_v62 = vadd.f32 %v9318_v3, %v3408_v7  ;;  %v3714_v14 = vadd.f32 %v9322_v32, %v3560_v58  ;;  %v4596_v4 = vmin.f32 %v4532_v38, 6.0  ;;  %v4227_v48 = vadd.f32 %v4097_v44, %v3715_v30  ;;  %v5412_v47 = vpop.f32.mrf.mxu1  ;;  %v5495_v30 = vld [vmem:[%s5653_s15 + $0x18] sm:$0xff] }
 0x303   : > { %v4375_v1 = vadd.f32 %v9325_v2, %v4221_v23  ;;  %v4376_v46 = vadd.f32 %v9326_v59, %v4222_v20  ;;  %v4379_v19 = vadd.f32 %v9328_v56, %v4225_v43  ;;  %v4597_v55 = vmin.f32 %v4533_v34, 6.0  ;;  %v5497_v34 = vld [vmem:[%s5653_s15 + $0x40] sm:$0x3]  ;;  %v5498_v2 = vld [vmem:[%s5653_s15 + $0x28] sm:$0x3] }
 0x304   : > { %v3716_v25 = vadd.f32 %v9324_v41, %v3562_v62  ;;  %v4226_v33 = vadd.f32 %v9327_v13, %v3714_v14  ;;  %v5053_v45 = vadd.f32 %v8216_v49, %v8299_v9  ;;  %v4381_v29 = vadd.f32 %v9330_v17, %v4227_v48  ;;  %v9332_v49 = vld [vmem:[#allocation40_spill] sm:$0xff]  ;;  %v5060_v31 = vpop.f32.mrf.mxu1 }
 0x305   : > { %v4466_v12 = vadd.f32 %v6942_v8, %v4375_v1  ;;  %v4467_v27 = vadd.f32 %v9139_v36, %v4376_v46  ;;  %v4470_v16 = vadd.f32 %v6942_v8, %v4379_v19  ;;  %v4905_v26 = vcombine.low %v4596_v4, %v4597_v55 }
 0x306   : > { %v4228_v57 = vadd.f32 %v9329_v37, %v3716_v25  ;;  %v4380_v39 = vadd.f32 %v9331_v11, %v4226_v33  ;;  %v4472_v15 = vadd.f32 %v9140_v28, %v4381_v29  ;;  %v5113_v8 = vrot.slane %v5493_v54, 1  ;;  %v5413_v32 = vpop.f32.mrf.mxu1  ;;  %v5500_v29 = vld [vmem:[%s5653_s15 + $0x68] sm:$0xff] }
 0x307   : > { %v4530_v44 = vmax.f32 %v4466_v12, 0.0  ;;  %v4531_v7 = vmax.f32 %v4467_v27, 0.0  ;;  %v4534_v0 = vmax.f32 %v4470_v16, 0.0  ;;  %v8324_v61 = vrot.slane %v4905_v26, %v9281_v24  ;;  %v5501_v11 = vld [vmem:[%s5653_s15 + $0x48] sm:$0xff] }
 0x308   : > { %v4382_v53 = vadd.f32 %v9332_v49, %v4228_v57  ;;  %v4471_v51 = vadd.f32 %v9139_v36, %v4380_v39  ;;  %v4536_v60 = vmax.f32 %v4472_v15, 0.0  ;;  %v5114_v38 = vrot.slane %v5494_v52, 1  ;;  %v5063_v55 = vpop.f32.mrf.mxu1  ;;  %v5499_v57 = vld [vmem:[%s5653_s15 + $0x60] sm:$0xff] }
 0x309   : > { %v4594_v21 = vmin.f32 %v4530_v44, 6.0  ;;  %v4595_v35 = vmin.f32 %v4531_v7, 6.0  ;;  %v4598_v6 = vmin.f32 %v4534_v0, 6.0  ;;  %v5045_v36 = vadd.f32 %v8299_v9, %v8232_v5  ;;  %v5504_v0 = vld [vmem:[%s5653_s15 + $0x58] sm:$0x3] }
 0x30a   : > { %v4473_v58 = vadd.f32 %v9141_v50, %v4382_v53  ;;  %v4535_v28 = vmax.f32 %v4471_v51, 0.0  ;;  %v4600_v62 = vmin.f32 %v4536_v60, 6.0  ;;  %v5108_v22 = vrot.slane %v5495_v30, 1  ;;  %v5503_v53 = vld [vmem:[%s5653_s15 + $0x70] sm:$0x3] }
 0x30b   : > { %v4904_v63 = vcombine.low %v4594_v21, %v4595_v35  ;;  %v5115_v23 = vsel %vm5107_vm11, %v5113_v8, %v5114_v38  ;;  %v5109_v20 = vrot.slane %v5496_v42, 1  ;;  %v5056_v5 = vadd.f32 %v8263_v40, %v8299_v9  ;;  %v5505_v35 = vld [vmem:[%s5653_s15 + $0x90] sm:$0xff] }
 0x30c   : > { %v4537_v3 = vmax.f32 %v4473_v58, 0.0  ;;  %v4599_v50 = vmin.f32 %v4535_v28, 6.0  ;;  %v5166_v43 = vadd.f32 %v5115_v23, %v5053_v45  ;;  %v5116_v4 = vrot.slane %v5497_v34, 1 }
 0x30d   : > { %v4912_v18 = vrot.slane %v4904_v63, %v9281_v24  ;;  %v5110_v25 = vsel %vm5107_vm11, %v5108_v22, %v5109_v20  ;;  %v5048_v48 = vadd.f32 %v8299_v9, %v8290_v10  ;;  %v5111_v1 = vrot.slane %v5498_v2, 1  ;;  %v5509_v22 = vld [vmem:[%s5653_s15 + $0xa0] sm:$0x3] }
 0x30e   : > { %v4601_v14 = vmin.f32 %v4537_v3, 6.0  ;;  %v4921_v41 = vcombine.low %v4598_v6, %v4599_v50  ;;  %5182 = vst.msk [vmem:[%s8336_s11 + $0x10] sm:$0xff] %vm1203_vm1, %v5166_v43  ;;  %v5164_v46 = vadd.f32 %v5110_v25, %v5045_v36  ;;  %v5117_v13 = vsel %vm5107_vm11, %v5114_v38, %v5116_v4  ;;  %v5506_v6 = vld [vmem:[%s5653_s15 + $0x98] sm:$0xff]  ;;  %v5508_v3 = vld [vmem:[%s5653_s15 + $0x80] sm:$0xff] }
 0x30f   : > { %v4920_v40 = vcombine.low %v4912_v18, %v8324_v61  ;;  %v5167_v56 = vadd.f32 %v5117_v13, %v5056_v5  ;;  %v5112_v10 = vsel %vm5107_vm11, %v5109_v20, %v5111_v1  ;;  %v5069_v19 = vadd.f32 %v5412_v47, %v8299_v9  ;;  %v5502_v47 = vld [vmem:[%s5653_s15 + $0x50] sm:$0xff]  ;;  %v5507_v38 = vld [vmem:[%s5653_s15 + $0x78] sm:$0xff]  ;;  %v5510_v5 = vld [vmem:[%s5653_s15 + $0x88] sm:$0x3] }
 0x310   : > { %v4922_v59 = vcombine.low %v4600_v62, %v4601_v14  ;;  %v4929_v33 = vrot.slane %v4921_v41, %v9281_v24  ;;  %5180 = vst.msk [vmem:[%s8336_s11] sm:$0xff] %vm1203_vm1, %v5164_v46  ;;  %v5165_v37 = vadd.f32 %v5112_v10, %v5048_v48  ;;  %v5123_v17 = vrot.slane %v5499_v57, 1  ;;  %v5512_v13 = vld [vmem:[%s5653_s15 + $0xc8] sm:$0xff]  ;;  %v5515_v57 = vld [vmem:[%s5653_s15 + $0xd0] sm:$0x3] }
 0x311   : > { %v5124_v12 = vrot.slane %v5500_v29, 1  ;;  %5183 = vst.msk [vmem:[%s8336_s11 + $0x18] sm:$0xff] %vm1203_vm1, %v5167_v56  ;;  %v5061_v27 = vadd.f32 %v8299_v9, %v5060_v31  ;;  %v5118_v39 = vrot.slane %v5501_v11, 1  ;;  %v5119_v16 = vrot.slane %v5502_v47, 1  ;;  %v5513_v56 = vld [vmem:[%s5653_s15 + $0xa8] sm:$0xff] }
 0x312   : > { %v4936_v45 = vrot.slane %v4922_v59, %v9281_v24  ;;  %v5072_v24 = vadd.f32 %v5413_v32, %v8299_v9  ;;  %5181 = vst.msk [vmem:[%s8336_s11 + $0x8] sm:$0xff] %vm1203_vm1, %v5165_v37  ;;  %v5126_v15 = vrot.slane %v5503_v53, 1  ;;  %v5064_v44 = vadd.f32 %v8299_v9, %v5063_v55  ;;  %v5511_v59 = vld [vmem:[%s5653_s15 + $0xc0] sm:$0xff]  ;;  %v5516_v11 = vld [vmem:[%s5653_s15 + $0xb8] sm:$0x3] }
 0x313   : > { %v5125_v49 = vsel %vm5107_vm11, %v5123_v17, %v5124_v12  ;;  %v5120_v51 = vsel %vm5107_vm11, %v5118_v39, %v5119_v16  ;;  %v5121_v61 = vrot.slane %v5504_v0, 1  ;;  %v5133_v28 = vrot.slane %v5505_v35, 1 }
 0x314   : > { %v4937_v26 = vcombine.low %v4929_v33, %v4936_v45  ;;  %v5170_v7 = vadd.f32 %v5125_v49, %v5069_v19  ;;  %v5168_v8 = vadd.f32 %v5120_v51, %v5061_v27  ;;  %v5127_v31 = vsel %vm5107_vm11, %v5124_v12, %v5126_v15  ;;  %v5514_v19 = vld [vmem:[%s5653_s15 + $0xb0] sm:$0xff] }
 0x315   : > { %v5171_v58 = vadd.f32 %v5127_v31, %v5072_v24  ;;  %v5122_v60 = vsel %vm5107_vm11, %v5119_v16, %v5121_v61  ;;  %v5134_v52 = vrot.slane %v5506_v6, 1  ;;  %v5128_v36 = vrot.slane %v5507_v38, 1 }
 0x316   : > { %v4961_v54 = vpack.c.bf16 %v4937_v26, %v4920_v40  ;;  %5186 = vst.msk [vmem:[%s8336_s11 + $0x30] sm:$0xff] %vm1203_vm1, %v5170_v7  ;;  %5184 = vst.msk [vmem:[%s8336_s11 + $0x20] sm:$0xff] %vm1203_vm1, %v5168_v8  ;;  %v5169_v21 = vadd.f32 %v5122_v60, %v5064_v44  ;;  %v5129_v62 = vrot.slane %v5508_v3, 1  ;;  %v5136_v50 = vrot.slane %v5509_v22, 1 }
 0x317   : > { %5187 = vst.msk [vmem:[%s8336_s11 + $0x38] sm:$0xff] %vm1203_vm1, %v5171_v58  ;;  %v5135_v30 = vsel %vm5107_vm11, %v5133_v28, %v5134_v52  ;;  %v5131_v32 = vrot.slane %v5510_v5, 1  ;;  %v5143_v46 = vrot.slane %v5511_v59, 1  ;;  %v5144_v33 = vrot.slane %v5512_v13, 1 }
 0x318   : > { %5419 = vmatmul.mubr.msk.bf16.gmra.mxu1 %vm4981_vm10, %v4961_v54  ;;  %5185 = vst.msk [vmem:[%s8336_s11 + $0x28] sm:$0xff] %vm1203_vm1, %v5169_v21  ;;  %v5130_v20 = vsel %vm5107_vm11, %v5128_v36, %v5129_v62  ;;  %v5137_v34 = vsel %vm5107_vm11, %v5134_v52, %v5136_v50  ;;  %v5138_v10 = vrot.slane %v5513_v56, 1  ;;  %v5139_v55 = vrot.slane %v5514_v19, 1 }
 0x319   : > { %v5132_v48 = vsel %vm5107_vm11, %v5129_v62, %v5131_v32  ;;  %v5145_v37 = vsel %vm5107_vm11, %v5143_v46, %v5144_v33  ;;  %v5146_v17 = vrot.slane %v5515_v57, 1  ;;  %v5141_v39 = vrot.slane %v5516_v11, 1 }
 0x31a   : > { %v5140_v27 = vsel %vm5107_vm11, %v5138_v10, %v5139_v55 }
 0x31b   : > { %v5147_v26 = vsel %vm5107_vm11, %v5144_v33, %v5146_v17  ;;  %v5142_v44 = vsel %vm5107_vm11, %v5139_v55, %v5141_v39 }
 0x376   : > { %v5416_v63 = vpop.f32.mrf.mxu1 }
 0x377   : > { %v5085_v23 = vadd.f32 %v5416_v63, %v8299_v9 }
 0x378   : > { %v5076_v42 = vpop.f32.mrf.mxu1 }
 0x379   : > { %v5174_v14 = vadd.f32 %v5135_v30, %v5085_v23  ;;  %v5077_v18 = vadd.f32 %v8299_v9, %v5076_v42 }
 0x37a   : > { %v5417_v43 = vpop.f32.mrf.mxu1 }
 0x37b   : > { %5190 = vst.msk [vmem:[%s8336_s11 + $0x50] sm:$0xff] %vm1203_vm1, %v5174_v14  ;;  %v5172_v4 = vadd.f32 %v5130_v20, %v5077_v18  ;;  %v5088_v41 = vadd.f32 %v5417_v43, %v8299_v9 }
 0x37c   : > { %v5079_v25 = vpop.f32.mrf.mxu1 }
 0x37d   : > { %5188 = vst.msk [vmem:[%s8336_s11 + $0x40] sm:$0xff] %vm1203_vm1, %v5172_v4  ;;  %v5175_v2 = vadd.f32 %v5137_v34, %v5088_v41  ;;  %v5080_v1 = vadd.f32 %v8299_v9, %v5079_v25 }
 0x37f   : > { %5191 = vst.msk [vmem:[%s8336_s11 + $0x58] sm:$0xff] %vm1203_vm1, %v5175_v2  ;;  %v5173_v40 = vadd.f32 %v5132_v48, %v5080_v1 }
 0x381   : > { %5189 = vst.msk [vmem:[%s8336_s11 + $0x48] sm:$0xff] %vm1203_vm1, %v5173_v40 }
 0x3d8   : > { %v5420_v45 = vpop.f32.mrf.mxu1 }
 0x3d9   : > { %v5101_v29 = vadd.f32 %v5420_v45, %v8299_v9 }
 0x3da   : > { %v5092_v12 = vpop.f32.mrf.mxu1 }
 0x3db   : > { %v5178_v47 = vadd.f32 %v5145_v37, %v5101_v29  ;;  %v5093_v16 = vadd.f32 %v8299_v9, %v5092_v12 }
 0x3dc   : > { %v5421_v24 = vpop.f32.mrf.mxu1 }
 0x3dd   : > { %5194 = vst.msk [vmem:[%s8336_s11 + $0x70] sm:$0xff] %vm1203_vm1, %v5178_v47  ;;  %v5176_v49 = vadd.f32 %v5140_v27, %v5093_v16  ;;  %v5104_v53 = vadd.f32 %v5421_v24, %v8299_v9 }
 0x3de   : > { %v5095_v15 = vpop.f32.mrf.mxu1 }
 0x3df   : > { %5192 = vst.msk [vmem:[%s8336_s11 + $0x60] sm:$0xff] %vm1203_vm1, %v5176_v49  ;;  %v5179_v7 = vadd.f32 %v5147_v26, %v5104_v53  ;;  %v5096_v51 = vadd.f32 %v8299_v9, %v5095_v15 }
 0x3e1   : > { %5195 = vst.msk [vmem:[%s8336_s11 + $0x78] sm:$0xff] %vm1203_vm1, %v5179_v7  ;;  %v5177_v0 = vadd.f32 %v5142_v44, %v5096_v51 }
 0x3e3   : > { %5193 = vst.msk [vmem:[%s8336_s11 + $0x68] sm:$0xff] %vm1203_vm1, %v5177_v0 }
 0x3e4 PF: > { %s17_s28 = sadd.s32 1, %s5563_s28   ;;  %s9333_s24 = smov %s5555_s26 }
 0x3e5   : > { %p14_p7 = scmp.ge.s32.totalorder %s17_s28, 6   ;;  %s9334_s25 = smov %s5559_s27 }
 0x3e6   : > { %s9335_s26 = smov %s9338_s29  ;;  %s9336_s27 = smov %s9342_s30 }
 0x3e7   :  { %16 = sbr.rel (!%p14_p7) target bundleno = 3 (0x3), region = 79 }

</bundles_post_ra>
